<compile_context>
chip_gen: v7x
topology: tpu7x:2x2x1
jax: 0.10.0
libtpu: 0.0.40
codegen_flags: <defaults>
</compile_context>

<pallas_src>
import math

import jax
import jax.numpy as jnp
from jax import lax
from jax.experimental import pallas as pl
from jax.experimental.pallas import tpu as pltpu

# ----------------------------------------------------------------------------
# Hyperparameters implied by the module (model_scale = 1.0)
# ----------------------------------------------------------------------------
RESIDUAL_DEPTH = 384                      # to_nearest_64(384 * log2(2.0))
NUM_BLOCKS = 8                            # round(8 * log2(2.0))
QK_DIM = RESIDUAL_DEPTH // 8              # 48
QK_PAD = 128                              # lane-aligned padded q/k width
EXPAND_DIM = RESIDUAL_DEPTH * 2           # 768
LOCAL_DIM = EXPAND_DIM - RESIDUAL_DEPTH   # 384
OUT_DIM = 100
OUT_PAD = 128                             # lane-dense padded output width
E_FUSED = 2 * EXPAND_DIM + 2 * QK_DIM     # 1632 (torch expand width)
E_PAD = 2 * EXPAND_DIM + 2 * QK_PAD       # 1792 = 14 * 128 (kernel expand width)
LN_EPS = 1e-5


# ----------------------------------------------------------------------------
# Helpers traced inside kernels / references
# ----------------------------------------------------------------------------
def _layer_norm(x, eps=LN_EPS):
    mean = jnp.mean(x, axis=-1, keepdims=True)
    var = jnp.mean((x - mean) ** 2, axis=-1, keepdims=True)
    return (x - mean) * lax.rsqrt(var + eps)


def _erf_approx(x):
    # Abramowitz & Stegun 7.1.26, |err| <= 1.5e-7.  Uses only exp / mul / add /
    # div / where, which are guaranteed to lower in Mosaic (avoids depending on
    # a hardware erf lowering).
    a = jnp.abs(x)
    t = 1.0 / (1.0 + 0.3275911 * a)
    poly = t * (0.254829592 + t * (-0.284496736 + t * (1.421413741
             + t * (-1.453152027 + t * 1.061405429))))
    e = 1.0 - poly * jnp.exp(-a * a)
    return jnp.where(x < 0.0, -e, e)


def _gelu_kernel(x):
    # matches torch.nn.functional.gelu (exact erf formulation) to ~1.5e-7
    return 0.5 * x * (1.0 + _erf_approx(x * 0.7071067811865476))


def _gelu_exact(x):
    # true erf formulation for the fp32 reference (runs in XLA, not Pallas)
    return 0.5 * x * (1.0 + jax.scipy.special.erf(x * 0.7071067811865476))


# ----------------------------------------------------------------------------
# Fused whole-model Pallas kernel
#   grid = (batch_tiles, NUM_BLOCKS); blocks axis is the inner "arbitrary" axis.
# ----------------------------------------------------------------------------
def _fused_model_kernel(bm_ref,                      # (L,)    f32  SMEM
                        x_ref,                       # (R, D)  f32  embedded input tile
                        pb_ref,                      # (R, R)  f32  position bias (j - i)
                        valid_ref,                   # (R, R)  f32  same-seq & causal (0/1)
                        we_ref,                      # (1, D, E_PAD)       bf16 fused expand
                        wp_ref,                      # (1, EXPAND_DIM, D)  bf16 project
                        gamma_ref, beta_ref,         # (1, D)  f32  final LayerNorm affine
                        wout_ref,                    # (D, OUT_PAD) bf16 final linear (padded)
                        out_ref,                     # (R, OUT_PAD) f32
                        x_acc):                      # (R, D)  f32  VMEM scratch (residual)
    l = pl.program_id(1)

    @pl.when(l == 0)
    def _():
        x_acc[...] = x_ref[...]

    x = x_acc[...]                                   # (R, D) f32 residual stream
    nx = _layer_norm(x).astype(jnp.bfloat16)

    # Single fused, lane-aligned expand matmul:
    # columns = [lin(768) | pre_gelu(768) | q(pad 128) | k(pad 128)].
    y = jnp.dot(nx, we_ref[0], preferred_element_type=jnp.float32)   # (R, E_PAD) f32
    lin = y[:, :EXPAND_DIM]
    pre = y[:, EXPAND_DIM:2 * EXPAND_DIM]
    q = y[:, 2 * EXPAND_DIM:2 * EXPAND_DIM + QK_PAD]          # zero-padded 48 -> 128
    k = y[:, 2 * EXPAND_DIM + QK_PAD:]                         # zero-padded 48 -> 128

    gated = lin * _gelu_kernel(pre)                  # (R, 768) f32
    local = gated[:, :LOCAL_DIM]                     # (R, 384)
    v = gated[:, LOCAL_DIM:]                         # (R, 384)

    # Block-diagonal causal attention over the flattened (batch_tile * seq) rows.
    bm = bm_ref[l]                                   # scalar position_bias_mult
    mask = jnp.where(valid_ref[...] > 0.0,
                     jax.nn.sigmoid(pb_ref[...] + bm),
                     -jnp.inf)

    # q @ k^T without materializing a transpose (contract last axes of both).
    # The zero-padded lanes of q/k contribute exactly 0 to the dot product.
    logits = lax.dot_general(q.astype(jnp.bfloat16), k.astype(jnp.bfloat16),
                             (((1,), (1,)), ((), ())),
                             preferred_element_type=jnp.float32)      # (R, R)
    logits = logits * (1.0 / math.sqrt(QK_DIM)) + mask
    logits = logits - jnp.max(logits, axis=-1, keepdims=True)
    e = jnp.exp(logits)
    scores = e * pl.reciprocal(jnp.sum(e, axis=-1, keepdims=True), approx=True)

    sv = jnp.dot(scores.astype(jnp.bfloat16), v.astype(jnp.bfloat16),
                 preferred_element_type=jnp.float32)                  # (R, 384)

    # cat([local, sv], -1) @ project == local @ P[:384] + sv @ P[384:]
    proj = (jnp.dot(local.astype(jnp.bfloat16), wp_ref[0, :LOCAL_DIM, :],
                    preferred_element_type=jnp.float32)
            + jnp.dot(sv.astype(jnp.bfloat16), wp_ref[0, LOCAL_DIM:, :],
                      preferred_element_type=jnp.float32))
    x_new = x + proj
    x_acc[...] = x_new

    # Fused final LayerNorm + output Linear (written only on the last block).
    @pl.when(l == pl.num_programs(1) - 1)
    def _():
        nf = _layer_norm(x_new) * gamma_ref[...] + beta_ref[...]
        out_ref[...] = jnp.dot(nf.astype(jnp.bfloat16), wout_ref[...],
                               preferred_element_type=jnp.float32)


# ----------------------------------------------------------------------------
# Parameter construction (deterministic, xavier-uniform like the module)
# ----------------------------------------------------------------------------
def _xavier_uniform(key, shape):
    fan_in, fan_out = shape[0], shape[1]
    limit = math.sqrt(6.0 / (fan_in + fan_out))
    return jax.random.uniform(key, shape, jnp.float32, -limit, limit)


def make_params(key):
    params = {"blocks": []}
    for _ in range(NUM_BLOCKS):
        key, k_e, k_p = jax.random.split(key, 3)
        expand = _xavier_uniform(k_e, (RESIDUAL_DEPTH, E_FUSED))
        project = _xavier_uniform(k_p, (EXPAND_DIM, RESIDUAL_DEPTH))
        params["blocks"].append({
            # torch column order of `expand` is [q | k | linear | pre_gelu]
            "wq": expand[:, 0:QK_DIM],
            "wk": expand[:, QK_DIM:2 * QK_DIM],
            "wl": expand[:, 2 * QK_DIM:2 * QK_DIM + EXPAND_DIM],
            "wg": expand[:, 2 * QK_DIM + EXPAND_DIM:],
            "wp": project,
            "bm": jnp.float32(4.0),                  # position_bias_mult init
        })
    key, k_out = jax.random.split(key)
    params["wout"] = _xavier_uniform(k_out, (RESIDUAL_DEPTH, OUT_DIM))
    params["gamma"] = jnp.ones((1, RESIDUAL_DEPTH), jnp.float32)
    params["beta"] = jnp.zeros((1, RESIDUAL_DEPTH), jnp.float32)
    return params


def pack_params_for_kernel(params):
    """Stack per-block weights, reorder/pad the fused expand, cast to bf16."""
    zq = jnp.zeros((RESIDUAL_DEPTH, QK_PAD - QK_DIM), jnp.float32)
    we = jnp.stack([
        jnp.concatenate([b["wl"], b["wg"], b["wq"], zq, b["wk"], zq], axis=1)
        for b in params["blocks"]]).astype(jnp.bfloat16)          # (L, 384, 1792)
    wp = jnp.stack([b["wp"] for b in params["blocks"]]).astype(jnp.bfloat16)
    bm = jnp.stack([b["bm"] for b in params["blocks"]]).astype(jnp.float32)
    wout = jnp.pad(params["wout"],
                   ((0, 0), (0, OUT_PAD - OUT_DIM))).astype(jnp.bfloat16)
    return we, wp, bm, params["gamma"], params["beta"], wout


def embed(q):
    # q: (B, N) -> (B, N, D) via freqs * q[..., None] then cat(sin, cos)
    freqs = jnp.exp(jnp.arange(0, RESIDUAL_DEPTH, 2, dtype=jnp.float32)
                    * (-9.0 / RESIDUAL_DEPTH))
    x = freqs * q[..., None]
    return jnp.concatenate([jnp.sin(x), jnp.cos(x)], axis=-1)


# ----------------------------------------------------------------------------
# Forward pass: one fused pallas_call for the whole model
# ----------------------------------------------------------------------------
def model_forward(params, q, batch_tile=None):
    B, N = q.shape
    D = RESIDUAL_DEPTH
    N_pad = -(-N // 8) * 8                 # pad seq len to a sublane multiple
    if batch_tile is None:
        batch_tile = B                     # fold whole batch into the matmul M dim
    assert B % batch_tile == 0, "batch_tile must divide the batch size"
    rows = batch_tile * N_pad
    num_tiles = B // batch_tile

    x = embed(q)                                              # (B, N, D) f32
    if N_pad != N:
        x = jnp.pad(x, ((0, 0), (0, N_pad - N), (0, 0)))
    x_flat = x.reshape(B * N_pad, D)

    # Per-tile position-bias / validity (same-sequence & causal) masks.
    idx = jnp.arange(rows, dtype=jnp.int32)
    pos = idx % N_pad
    seq = idx // N_pad
    pb = (pos[None, :] - pos[:, None]).astype(jnp.float32)
    valid = ((seq[None, :] == seq[:, None]) &
             (pos[None, :] <= pos[:, None])).astype(jnp.float32)

    we, wp, bm, gamma, beta, wout = pack_params_for_kernel(params)

    out = pl.pallas_call(
        _fused_model_kernel,
        out_shape=jax.ShapeDtypeStruct((B * N_pad, OUT_PAD), jnp.float32),
        grid=(num_tiles, NUM_BLOCKS),
        in_specs=[
            pl.BlockSpec(memory_space=pltpu.MemorySpace.SMEM),           # bm (L,)
            pl.BlockSpec((rows, D), lambda t, l: (t, 0)),                # x tile
            pl.BlockSpec((rows, rows), lambda t, l: (0, 0)),             # pos bias
            pl.BlockSpec((rows, rows), lambda t, l: (0, 0)),             # validity
            pl.BlockSpec((1, D, E_PAD), lambda t, l: (l, 0, 0)),         # expand (stacked)
            pl.BlockSpec((1, EXPAND_DIM, D), lambda t, l: (l, 0, 0)),    # project (stacked)
            pl.BlockSpec((1, D), lambda t, l: (0, 0)),                   # gamma
            pl.BlockSpec((1, D), lambda t, l: (0, 0)),                   # beta
            pl.BlockSpec((D, OUT_PAD), lambda t, l: (0, 0)),             # wout (padded)
        ],
        out_specs=pl.BlockSpec((rows, OUT_PAD), lambda t, l: (t, 0)),
        scratch_shapes=[pltpu.VMEM((rows, D), jnp.float32)],             # resident residual
        compiler_params=pltpu.CompilerParams(
            dimension_semantics=("parallel", "arbitrary")),
    )(bm, x_flat, pb, valid, we, wp, gamma, beta, wout)

    return out.reshape(B, N_pad, OUT_PAD)[:, :N, :OUT_DIM]


# ----------------------------------------------------------------------------
# Pure-JAX references for correctness checks
# ----------------------------------------------------------------------------
def _mm_bf16(a, b):
    return jnp.einsum("...ik,kj->...ij", a.astype(jnp.bfloat16),
                      b.astype(jnp.bfloat16),
                      preferred_element_type=jnp.float32)


def _attn_mask(n, bm):
    i = jnp.arange(n, dtype=jnp.float32)
    pos_bias = i[None, :] - i[:, None]
    causal = jnp.tril(jnp.ones((n, n), bool))
    return jnp.where(causal, jax.nn.sigmoid(pos_bias + bm), -jnp.inf)


def _ref_block_f32(x, blk):
    nx = _layer_norm(x)
    qh, kh = nx @ blk["wq"], nx @ blk["wk"]
    gated = (nx @ blk["wl"]) * _gelu_exact(nx @ blk["wg"])
    local, v = gated[..., :LOCAL_DIM], gated[..., LOCAL_DIM:]
    mask = _attn_mask(x.shape[1], blk["bm"])
    logits = jnp.einsum("bik,bjk->bij", qh, kh) / math.sqrt(QK_DIM) + mask
    scores = jax.nn.softmax(logits, axis=-1)
    sv = jnp.einsum("bij,bjd->bid", scores, v)
    return x + jnp.concatenate([local, sv], axis=-1) @ blk["wp"]


def model_reference_f32(params, q):
    x = embed(q)
    for blk in params["blocks"]:
        x = _ref_block_f32(x, blk)
    x = _layer_norm(x) * params["gamma"][0] + params["beta"][0]
    return x @ params["wout"]


def _ref_block_bf16(x, blk):
    # Mirrors the kernel's mixed precision (bf16 MXU inputs, f32 accumulation).
    nx = _layer_norm(x)
    wef = jnp.concatenate([blk["wl"], blk["wg"], blk["wq"], blk["wk"]], axis=1)
    y = _mm_bf16(nx, wef)
    lin = y[..., :EXPAND_DIM]
    pre = y[..., EXPAND_DIM:2 * EXPAND_DIM]
    qh = y[..., 2 * EXPAND_DIM:2 * EXPAND_DIM + QK_DIM]
    kh = y[..., 2 * EXPAND_DIM + QK_DIM:]
    gated = lin * _gelu_kernel(pre)
    local, v = gated[..., :LOCAL_DIM], gated[..., LOCAL_DIM:]
    mask = _attn_mask(x.shape[1], blk["bm"])
    logits = jnp.einsum("bik,bjk->bij", qh.astype(jnp.bfloat16),
                        kh.astype(jnp.bfloat16),
                        preferred_element_type=jnp.float32) / math.sqrt(QK_DIM) + mask
    scores = jax.nn.softmax(logits, axis=-1)
    sv = jnp.einsum("bij,bjd->bid", scores.astype(jnp.bfloat16),
                    v.astype(jnp.bfloat16), preferred_element_type=jnp.float32)
    h = jnp.concatenate([local, sv], axis=-1)
    return x + _mm_bf16(h, blk["wp"])


def model_reference_bf16(params, q):
    x = embed(q)
    for blk in params["blocks"]:
        x = _ref_block_bf16(x, blk)
    x = _layer_norm(x) * params["gamma"][0] + params["beta"][0]
    return _mm_bf16(x, params["wout"])


# ----------------------------------------------------------------------------
if __name__ == "__main__":
    key = jax.random.PRNGKey(0)
    k_param, k_in = jax.random.split(key)
    params = make_params(k_param)

    B, N = 2, 8                          # small shapes consistent with the module
    q_in = jax.random.normal(k_in, (B, N), jnp.float32)

    fwd = jax.jit(model_forward)
    out = jax.block_until_ready(fwd(params, q_in))

    ref16 = model_reference_bf16(params, q_in)   # same mixed precision as kernel
    ref32 = model_reference_f32(params, q_in)    # full fp32 / exact-erf semantics

    assert out.shape == (B, N, OUT_DIM), out.shape
    err16 = float(jnp.max(jnp.abs(out - ref16)))
    err32 = float(jnp.max(jnp.abs(out - ref32)))
    assert jnp.allclose(out, ref16, rtol=2e-2, atol=2e-2), ("bf16-ref mismatch", err16)
    # Looser tolerance vs the pure-fp32 reference: bf16 MXU rounding accumulates
    # over 8 residual blocks.
    assert jnp.allclose(out, ref32, rtol=5e-2, atol=2.5e-1), ("fp32-ref mismatch", err32)

    print("KERNEL_OK")
</pallas_src>

<mosaic_0001>
module attributes {stable_mosaic.version = 11 : i64} {
  func.func @_fused_model_kernel(%arg0: i32, %arg1: i32, %arg2: memref<8xf32, #tpu.memory_space<smem>>, %arg3: memref<16x384xf32, #tpu.memory_space<vmem>>, %arg4: memref<16x16xf32, #tpu.memory_space<vmem>>, %arg5: memref<16x16xf32, #tpu.memory_space<vmem>>, %arg6: memref<1x384x1792xbf16, #tpu.memory_space<vmem>>, %arg7: memref<1x768x384xbf16, #tpu.memory_space<vmem>>, %arg8: memref<1x384xf32, #tpu.memory_space<vmem>>, %arg9: memref<1x384xf32, #tpu.memory_space<vmem>>, %arg10: memref<384x128xbf16, #tpu.memory_space<vmem>>, %arg11: memref<16x128xf32, #tpu.memory_space<vmem>>, %arg12: memref<16x384xf32, #tpu.memory_space<vmem>>) attributes {dimension_semantics = [#tpu.dimension_semantics<parallel>, #tpu.dimension_semantics<arbitrary>], iteration_bounds = array<i64: 1, 8>, scalar_prefetch = 0 : i64, scratch_operands = 1 : i64, tpu.core_type = #tpu.core_type<tc>, window_params = [{transform_indices = @transform_0, window_bounds = array<i64: 8>}, {transform_indices = @transform_1, window_bounds = array<i64: 16, 384>}, {pipeline_mode = #tpu.pipeline_mode<synchronous>, transform_indices = @transform_2, window_bounds = array<i64: 16, 16>}, {pipeline_mode = #tpu.pipeline_mode<synchronous>, transform_indices = @transform_3, window_bounds = array<i64: 16, 16>}, {transform_indices = @transform_4, window_bounds = array<i64: 1, 384, 1792>}, {transform_indices = @transform_5, window_bounds = array<i64: 1, 768, 384>}, {pipeline_mode = #tpu.pipeline_mode<synchronous>, transform_indices = @transform_6, window_bounds = array<i64: 1, 384>}, {pipeline_mode = #tpu.pipeline_mode<synchronous>, transform_indices = @transform_7, window_bounds = array<i64: 1, 384>}, {pipeline_mode = #tpu.pipeline_mode<synchronous>, transform_indices = @transform_8, window_bounds = array<i64: 384, 128>}, {transform_indices = @transform_9, window_bounds = array<i64: 16, 128>}]} {
    %c0_i32 = arith.constant 0 : i32
    %0 = arith.cmpi eq, %arg1, %c0_i32 : i32
    %1 = arith.extui %0 : i1 to i32
    %c0_i32_0 = arith.constant 0 : i32
    %2 = arith.cmpi ne, %1, %c0_i32_0 : i32
    scf.if %2 {
      %c0_47 = arith.constant 0 : index
      %c0_48 = arith.constant 0 : index
      %121 = vector.load %arg3[%c0_47, %c0_48] : memref<16x384xf32, #tpu.memory_space<vmem>>, vector<16x384xf32>
      %c0_49 = arith.constant 0 : index
      %c0_50 = arith.constant 0 : index
      %122 = vector.load %arg12[%c0_49, %c0_50] : memref<16x384xf32, #tpu.memory_space<vmem>>, vector<16x384xf32>
      tpu.vector_store %arg12[%c0_49, %c0_50], %121 {strides = array<i32>} : memref<16x384xf32, #tpu.memory_space<vmem>>, vector<16x384xf32>,
    } else {
    }
    %c0 = arith.constant 0 : index
    %c0_1 = arith.constant 0 : index
    %3 = vector.load %arg12[%c0, %c0_1] : memref<16x384xf32, #tpu.memory_space<vmem>>, vector<16x384xf32>
    %cst = arith.constant dense<0.000000e+00> : vector<16xf32>
    %4 = vector.multi_reduction <add>, %3, %cst [1] : vector<16x384xf32> to vector<16xf32>
    %5 = vector.shape_cast %4 : vector<16xf32> to vector<16x1xf32>
    %cst_2 = arith.constant 3.840000e+02 : f32
    %6 = vector.broadcast %cst_2 : f32 to vector<16x1xf32>
    %7 = arith.divf %5, %6 : vector<16x1xf32>
    %8 = vector.broadcast %7 : vector<16x1xf32> to vector<16x384xf32>
    %9 = arith.subf %3, %8 : vector<16x384xf32>
    %10 = arith.mulf %9, %9 : vector<16x384xf32>
    %cst_3 = arith.constant dense<0.000000e+00> : vector<16xf32>
    %11 = vector.multi_reduction <add>, %10, %cst_3 [1] : vector<16x384xf32> to vector<16xf32>
    %12 = vector.shape_cast %11 : vector<16xf32> to vector<16x1xf32>
    %cst_4 = arith.constant 3.840000e+02 : f32
    %13 = vector.broadcast %cst_4 : f32 to vector<16x1xf32>
    %14 = arith.divf %12, %13 : vector<16x1xf32>
    %15 = vector.broadcast %7 : vector<16x1xf32> to vector<16x384xf32>
    %16 = arith.subf %3, %15 : vector<16x384xf32>
    %cst_5 = arith.constant 9.99999974E-6 : f32
    %17 = vector.broadcast %cst_5 : f32 to vector<16x1xf32>
    %18 = arith.addf %14, %17 : vector<16x1xf32>
    %19 = math.rsqrt %18 : vector<16x1xf32>
    %20 = vector.broadcast %19 : vector<16x1xf32> to vector<16x384xf32>
    %21 = arith.mulf %16, %20 : vector<16x384xf32>
    %22 = arith.truncf %21 : vector<16x384xf32> to vector<16x384xbf16>
    %c0_6 = arith.constant 0 : index
    %c0_7 = arith.constant 0 : index
    %c0_8 = arith.constant 0 : index
    %23 = vector.load %arg6[%c0_6, %c0_7, %c0_8] : memref<1x384x1792xbf16, #tpu.memory_space<vmem>>, vector<1x384x1792xbf16>
    %24 = vector.shape_cast %23 : vector<1x384x1792xbf16> to vector<384x1792xbf16>
    %cst_9 = arith.constant dense<0.000000e+00> : vector<16x1792xf32>
    %25 = tpu.matmul %22, %24, %cst_9 {dimension_numbers = #tpu.dot_dimension_numbers<[1], [0], [0], [1], [0, 0, 1, 1], [], []>} : vector<16x384xbf16>, vector<384x1792xbf16>, vector<16x1792xf32> -> vector<16x1792xf32>
    %26 = vector.extract_strided_slice %25 {offsets = [0, 0], sizes = [16, 768], strides = [1, 1]} : vector<16x1792xf32> to vector<16x768xf32>
    %27 = vector.extract_strided_slice %25 {offsets = [0, 768], sizes = [16, 768], strides = [1, 1]} : vector<16x1792xf32> to vector<16x768xf32>
    %28 = vector.extract_strided_slice %25 {offsets = [0, 1536], sizes = [16, 128], strides = [1, 1]} : vector<16x1792xf32> to vector<16x128xf32>
    %29 = vector.extract_strided_slice %25 {offsets = [0, 1664], sizes = [16, 128], strides = [1, 1]} : vector<16x1792xf32> to vector<16x128xf32>
    %cst_10 = arith.constant 5.000000e-01 : f32
    %30 = vector.broadcast %cst_10 : f32 to vector<16x768xf32>
    %31 = arith.mulf %30, %27 : vector<16x768xf32>
    %cst_11 = arith.constant 0.707106769 : f32
    %32 = vector.broadcast %cst_11 : f32 to vector<16x768xf32>
    %33 = arith.mulf %27, %32 : vector<16x768xf32>
    %34 = math.absf %33 : vector<16x768xf32>
    %cst_12 = arith.constant 0.327591091 : f32
    %35 = vector.broadcast %cst_12 : f32 to vector<16x768xf32>
    %36 = arith.mulf %35, %34 : vector<16x768xf32>
    %cst_13 = arith.constant 1.000000e+00 : f32
    %37 = vector.broadcast %cst_13 : f32 to vector<16x768xf32>
    %38 = arith.addf %37, %36 : vector<16x768xf32>
    %cst_14 = arith.constant 1.000000e+00 : f32
    %39 = vector.broadcast %cst_14 : f32 to vector<16x768xf32>
    %40 = arith.divf %39, %38 : vector<16x768xf32>
    %cst_15 = arith.constant 1.06140542 : f32
    %41 = vector.broadcast %cst_15 : f32 to vector<16x768xf32>
    %42 = arith.mulf %40, %41 : vector<16x768xf32>
    %cst_16 = arith.constant -1.45315206 : f32
    %43 = vector.broadcast %cst_16 : f32 to vector<16x768xf32>
    %44 = arith.addf %43, %42 : vector<16x768xf32>
    %45 = arith.mulf %40, %44 : vector<16x768xf32>
    %cst_17 = arith.constant 1.42141378 : f32
    %46 = vector.broadcast %cst_17 : f32 to vector<16x768xf32>
    %47 = arith.addf %46, %45 : vector<16x768xf32>
    %48 = arith.mulf %40, %47 : vector<16x768xf32>
    %cst_18 = arith.constant -0.284496725 : f32
    %49 = vector.broadcast %cst_18 : f32 to vector<16x768xf32>
    %50 = arith.addf %49, %48 : vector<16x768xf32>
    %51 = arith.mulf %40, %50 : vector<16x768xf32>
    %cst_19 = arith.constant 0.254829586 : f32
    %52 = vector.broadcast %cst_19 : f32 to vector<16x768xf32>
    %53 = arith.addf %52, %51 : vector<16x768xf32>
    %54 = arith.mulf %40, %53 : vector<16x768xf32>
    %cst_20 = arith.constant 0.000000e+00 : f32
    %55 = vector.broadcast %cst_20 : f32 to vector<16x768xf32>
    %56 = arith.subf %55, %34 : vector<16x768xf32>
    %57 = arith.mulf %56, %34 : vector<16x768xf32>
    %58 = math.exp %57 : vector<16x768xf32>
    %59 = arith.mulf %54, %58 : vector<16x768xf32>
    %cst_21 = arith.constant 1.000000e+00 : f32
    %60 = vector.broadcast %cst_21 : f32 to vector<16x768xf32>
    %61 = arith.subf %60, %59 : vector<16x768xf32>
    %cst_22 = arith.constant 0.000000e+00 : f32
    %62 = vector.broadcast %cst_22 : f32 to vector<16x768xf32>
    %63 = arith.cmpf olt, %33, %62 : vector<16x768xf32>
    %cst_23 = arith.constant 0.000000e+00 : f32
    %64 = vector.broadcast %cst_23 : f32 to vector<16x768xf32>
    %65 = arith.subf %64, %61 : vector<16x768xf32>
    %66 = arith.select %63, %65, %61 : vector<16x768xi1>, vector<16x768xf32>
    %cst_24 = arith.constant 1.000000e+00 : f32
    %67 = vector.broadcast %cst_24 : f32 to vector<16x768xf32>
    %68 = arith.addf %67, %66 : vector<16x768xf32>
    %69 = arith.mulf %31, %68 : vector<16x768xf32>
    %70 = arith.mulf %26, %69 : vector<16x768xf32>
    %71 = vector.extract_strided_slice %70 {offsets = [0, 0], sizes = [16, 384], strides = [1, 1]} : vector<16x768xf32> to vector<16x384xf32>
    %72 = vector.extract_strided_slice %70 {offsets = [0, 384], sizes = [16, 384], strides = [1, 1]} : vector<16x768xf32> to vector<16x384xf32>
    %73 = arith.index_cast %arg1 : i32 to index
    %74 = memref.load %arg2[%73] : memref<8xf32, #tpu.memory_space<smem>>
    %c0_25 = arith.constant 0 : index
    %c0_26 = arith.constant 0 : index
    %75 = vector.load %arg5[%c0_25, %c0_26] : memref<16x16xf32, #tpu.memory_space<vmem>>, vector<16x16xf32>
    %cst_27 = arith.constant 0.000000e+00 : f32
    %76 = vector.broadcast %cst_27 : f32 to vector<16x16xf32>
    %77 = arith.cmpf ogt, %75, %76 : vector<16x16xf32>
    %c0_28 = arith.constant 0 : index
    %c0_29 = arith.constant 0 : index
    %78 = vector.load %arg4[%c0_28, %c0_29] : memref<16x16xf32, #tpu.memory_space<vmem>>, vector<16x16xf32>
    %79 = vector.broadcast %74 : f32 to vector<16x16xf32>
    %80 = arith.addf %78, %79 : vector<16x16xf32>
    %81 = arith.negf %80 : vector<16x16xf32>
    %82 = math.exp %81 : vector<16x16xf32>
    %cst_30 = arith.constant 1.000000e+00 : f32
    %83 = vector.broadcast %cst_30 : f32 to vector<16x16xf32>
    %84 = arith.addf %83, %82 : vector<16x16xf32>
    %85 = arith.divf %83, %84 : vector<16x16xf32>
    %cst_31 = arith.constant 0xFF800000 : f32
    %86 = vector.broadcast %cst_31 : f32 to vector<16x16xf32>
    %87 = arith.select %77, %85, %86 : vector<16x16xi1>, vector<16x16xf32>
    %88 = arith.truncf %28 : vector<16x128xf32> to vector<16x128xbf16>
    %89 = arith.truncf %29 : vector<16x128xf32> to vector<16x128xbf16>
    %cst_32 = arith.constant dense<0.000000e+00> : vector<16x16xf32>
    %90 = tpu.matmul %88, %89, %cst_32 {dimension_numbers = #tpu.dot_dimension_numbers<[1], [1], [0], [0], [0, 0, 1, 0], [], []>} : vector<16x128xbf16>, vector<16x128xbf16>, vector<16x16xf32> -> vector<16x16xf32>
    %cst_33 = arith.constant 0.144337565 : f32
    %91 = vector.broadcast %cst_33 : f32 to vector<16x16xf32>
    %92 = arith.mulf %90, %91 : vector<16x16xf32>
    %93 = arith.addf %92, %87 : vector<16x16xf32>
    %cst_34 = arith.constant dense<0xFF800000> : vector<16xf32>
    %94 = vector.multi_reduction <maximumf>, %93, %cst_34 [1] : vector<16x16xf32> to vector<16xf32>
    %95 = vector.shape_cast %94 : vector<16xf32> to vector<16x1xf32>
    %96 = vector.broadcast %95 : vector<16x1xf32> to vector<16x16xf32>
    %97 = arith.subf %93, %96 : vector<16x16xf32>
    %98 = math.exp %97 : vector<16x16xf32>
    %cst_35 = arith.constant dense<0.000000e+00> : vector<16xf32>
    %99 = vector.multi_reduction <add>, %98, %cst_35 [1] : vector<16x16xf32> to vector<16xf32>
    %100 = vector.shape_cast %99 : vector<16xf32> to vector<16x1xf32>
    %101 = tpu.reciprocal %100 {approx = true} : vector<16x1xf32> -> vector<16x1xf32>
    %102 = vector.broadcast %101 : vector<16x1xf32> to vector<16x16xf32>
    %103 = arith.mulf %98, %102 : vector<16x16xf32>
    %104 = arith.truncf %103 : vector<16x16xf32> to vector<16x16xbf16>
    %105 = arith.truncf %72 : vector<16x384xf32> to vector<16x384xbf16>
    %cst_36 = arith.constant dense<0.000000e+00> : vector<16x384xf32>
    %106 = tpu.matmul %104, %105, %cst_36 {dimension_numbers = #tpu.dot_dimension_numbers<[1], [0], [0], [1], [0, 0, 1, 1], [], []>} : vector<16x16xbf16>, vector<16x384xbf16>, vector<16x384xf32> -> vector<16x384xf32>
    %107 = arith.truncf %71 : vector<16x384xf32> to vector<16x384xbf16>
    %c0_37 = arith.constant 0 : index
    %c0_38 = arith.constant 0 : index
    %c0_39 = arith.constant 0 : index
    %108 = vector.load %arg7[%c0_37, %c0_38, %c0_39] : memref<1x768x384xbf16, #tpu.memory_space<vmem>>, vector<1x384x384xbf16>
    %109 = vector.shape_cast %108 : vector<1x384x384xbf16> to vector<384x384xbf16>
    %cst_40 = arith.constant dense<0.000000e+00> : vector<16x384xf32>
    %110 = tpu.matmul %107, %109, %cst_40 {dimension_numbers = #tpu.dot_dimension_numbers<[1], [0], [0], [1], [0, 0, 1, 1], [], []>} : vector<16x384xbf16>, vector<384x384xbf16>, vector<16x384xf32> -> vector<16x384xf32>
    %111 = arith.truncf %106 : vector<16x384xf32> to vector<16x384xbf16>
    %c0_41 = arith.constant 0 : index
    %c384 = arith.constant 384 : index
    %c0_42 = arith.constant 0 : index
    %112 = vector.load %arg7[%c0_41, %c384, %c0_42] : memref<1x768x384xbf16, #tpu.memory_space<vmem>>, vector<1x384x384xbf16>
    %113 = vector.shape_cast %112 : vector<1x384x384xbf16> to vector<384x384xbf16>
    %cst_43 = arith.constant dense<0.000000e+00> : vector<16x384xf32>
    %114 = tpu.matmul %111, %113, %cst_43 {dimension_numbers = #tpu.dot_dimension_numbers<[1], [0], [0], [1], [0, 0, 1, 1], [], []>} : vector<16x384xbf16>, vector<384x384xbf16>, vector<16x384xf32> -> vector<16x384xf32>
    %115 = arith.addf %110, %114 : vector<16x384xf32>
    %116 = arith.addf %3, %115 : vector<16x384xf32>
    %c0_44 = arith.constant 0 : index
    %c0_45 = arith.constant 0 : index
    %117 = vector.load %arg12[%c0_44, %c0_45] : memref<16x384xf32, #tpu.memory_space<vmem>>, vector<16x384xf32>
    tpu.vector_store %arg12[%c0_44, %c0_45], %116 {strides = array<i32>} : memref<16x384xf32, #tpu.memory_space<vmem>>, vector<16x384xf32>,
    %c7_i32 = arith.constant 7 : i32
    %118 = arith.cmpi eq, %arg1, %c7_i32 : i32
    %119 = arith.extui %118 : i1 to i32
    %c0_i32_46 = arith.constant 0 : i32
    %120 = arith.cmpi ne, %119, %c0_i32_46 : i32
    scf.if %120 {
      %cst_47 = arith.constant dense<0.000000e+00> : vector<16xf32>
      %121 = vector.multi_reduction <add>, %116, %cst_47 [1] : vector<16x384xf32> to vector<16xf32>
      %122 = vector.shape_cast %121 : vector<16xf32> to vector<16x1xf32>
      %cst_48 = arith.constant 3.840000e+02 : f32
      %123 = vector.broadcast %cst_48 : f32 to vector<16x1xf32>
      %124 = arith.divf %122, %123 : vector<16x1xf32>
      %125 = vector.broadcast %124 : vector<16x1xf32> to vector<16x384xf32>
      %126 = arith.subf %116, %125 : vector<16x384xf32>
      %127 = arith.mulf %126, %126 : vector<16x384xf32>
      %cst_49 = arith.constant dense<0.000000e+00> : vector<16xf32>
      %128 = vector.multi_reduction <add>, %127, %cst_49 [1] : vector<16x384xf32> to vector<16xf32>
      %129 = vector.shape_cast %128 : vector<16xf32> to vector<16x1xf32>
      %cst_50 = arith.constant 3.840000e+02 : f32
      %130 = vector.broadcast %cst_50 : f32 to vector<16x1xf32>
      %131 = arith.divf %129, %130 : vector<16x1xf32>
      %132 = vector.broadcast %124 : vector<16x1xf32> to vector<16x384xf32>
      %133 = arith.subf %116, %132 : vector<16x384xf32>
      %cst_51 = arith.constant 9.99999974E-6 : f32
      %134 = vector.broadcast %cst_51 : f32 to vector<16x1xf32>
      %135 = arith.addf %131, %134 : vector<16x1xf32>
      %136 = math.rsqrt %135 : vector<16x1xf32>
      %137 = vector.broadcast %136 : vector<16x1xf32> to vector<16x384xf32>
      %138 = arith.mulf %133, %137 : vector<16x384xf32>
      %c0_52 = arith.constant 0 : index
      %c0_53 = arith.constant 0 : index
      %139 = vector.load %arg8[%c0_52, %c0_53] : memref<1x384xf32, #tpu.memory_space<vmem>>, vector<1x384xf32>
      %140 = vector.broadcast %139 : vector<1x384xf32> to vector<16x384xf32>
      %141 = arith.mulf %138, %140 : vector<16x384xf32>
      %c0_54 = arith.constant 0 : index
      %c0_55 = arith.constant 0 : index
      %142 = vector.load %arg9[%c0_54, %c0_55] : memref<1x384xf32, #tpu.memory_space<vmem>>, vector<1x384xf32>
      %143 = vector.broadcast %142 : vector<1x384xf32> to vector<16x384xf32>
      %144 = arith.addf %141, %143 : vector<16x384xf32>
      %145 = arith.truncf %144 : vector<16x384xf32> to vector<16x384xbf16>
      %c0_56 = arith.constant 0 : index
      %c0_57 = arith.constant 0 : index
      %146 = vector.load %arg10[%c0_56, %c0_57] : memref<384x128xbf16, #tpu.memory_space<vmem>>, vector<384x128xbf16>
      %cst_58 = arith.constant dense<0.000000e+00> : vector<16x128xf32>
      %147 = tpu.matmul %145, %146, %cst_58 {dimension_numbers = #tpu.dot_dimension_numbers<[1], [0], [0], [1], [0, 0, 1, 1], [], []>} : vector<16x384xbf16>, vector<384x128xbf16>, vector<16x128xf32> -> vector<16x128xf32>
      %c0_59 = arith.constant 0 : index
      %c0_60 = arith.constant 0 : index
      %148 = vector.load %arg11[%c0_59, %c0_60] : memref<16x128xf32, #tpu.memory_space<vmem>>, vector<16x128xf32>
      tpu.vector_store %arg11[%c0_59, %c0_60], %147 {strides = array<i32>} : memref<16x128xf32, #tpu.memory_space<vmem>>, vector<16x128xf32>,
    } else {
    }
    return
  }
  func.func @transform_0(%arg0: i32, %arg1: i32) -> i32 {
    %c0_i32 = arith.constant 0 : i32
    %c0_i32_0 = arith.constant 0 : i32
    return %c0_i32 : i32
  }
  func.func @transform_1(%arg0: i32, %arg1: i32) -> (i32, i32) {
    %c0_i32 = arith.constant 0 : i32
    %c0_i32_0 = arith.constant 0 : i32
    return %arg0, %c0_i32 : i32, i32
  }
  func.func @transform_2(%arg0: i32, %arg1: i32) -> (i32, i32) {
    %c0_i32 = arith.constant 0 : i32
    %c0_i32_0 = arith.constant 0 : i32
    %c0_i32_1 = arith.constant 0 : i32
    return %c0_i32, %c0_i32_0 : i32, i32
  }
  func.func @transform_3(%arg0: i32, %arg1: i32) -> (i32, i32) {
    %c0_i32 = arith.constant 0 : i32
    %c0_i32_0 = arith.constant 0 : i32
    %c0_i32_1 = arith.constant 0 : i32
    return %c0_i32, %c0_i32_0 : i32, i32
  }
  func.func @transform_4(%arg0: i32, %arg1: i32) -> (i32, i32, i32) {
    %c0_i32 = arith.constant 0 : i32
    %c0_i32_0 = arith.constant 0 : i32
    %c0_i32_1 = arith.constant 0 : i32
    return %arg1, %c0_i32, %c0_i32_0 : i32, i32, i32
  }
  func.func @transform_5(%arg0: i32, %arg1: i32) -> (i32, i32, i32) {
    %c0_i32 = arith.constant 0 : i32
    %c0_i32_0 = arith.constant 0 : i32
    %c0_i32_1 = arith.constant 0 : i32
    return %arg1, %c0_i32, %c0_i32_0 : i32, i32, i32
  }
  func.func @transform_6(%arg0: i32, %arg1: i32) -> (i32, i32) {
    %c0_i32 = arith.constant 0 : i32
    %c0_i32_0 = arith.constant 0 : i32
    %c0_i32_1 = arith.constant 0 : i32
    return %c0_i32, %c0_i32_0 : i32, i32
  }
  func.func @transform_7(%arg0: i32, %arg1: i32) -> (i32, i32) {
    %c0_i32 = arith.constant 0 : i32
    %c0_i32_0 = arith.constant 0 : i32
    %c0_i32_1 = arith.constant 0 : i32
    return %c0_i32, %c0_i32_0 : i32, i32
  }
  func.func @transform_8(%arg0: i32, %arg1: i32) -> (i32, i32) {
    %c0_i32 = arith.constant 0 : i32
    %c0_i32_0 = arith.constant 0 : i32
    %c0_i32_1 = arith.constant 0 : i32
    return %c0_i32, %c0_i32_0 : i32, i32
  }
  func.func @transform_9(%arg0: i32, %arg1: i32) -> (i32, i32) {
    %c0_i32 = arith.constant 0 : i32
    %c0_i32_0 = arith.constant 0 : i32
    return %arg0, %c0_i32 : i32, i32
  }
}

</mosaic_0001>

<bundles_post_ra>
// kernel: model_forward.1
= control target key start
LH: loop header
LB: loop body
LE: loop exit
PB: predicated region body
PF: predicated region fallthrough
CT: control target
= control target key end

     0   :  { %14 = vsyncpa [#allocation5], 0  ;;  %s8128_s0 = inlined_call_operand.vmem [shape: f32[8], index: 0, kind: input, shape index: {}]   ;;  %s8129_s1 = inlined_call_operand.vmem [shape: f32[16,384], index: 1, kind: input, shape index: {}]   ;;  %s8130_s2 = inlined_call_operand.vmem [shape: f32[16,16], index: 2, kind: input, shape index: {}]   ;;  %s8131_s3 = inlined_call_operand.vmem [shape: f32[16,16], index: 3, kind: input, shape index: {}]   ;;  %s8132_s4 = inlined_call_operand.vmem [shape: bf16[8,384,1792], index: 4, kind: input, shape index: {}]   ;;  %s8133_s5 = inlined_call_operand.vmem [shape: bf16[8,768,384], index: 5, kind: input, shape index: {}]   ;;  %s8134_s6 = inlined_call_operand.vmem [shape: f32[1,384], index: 6, kind: input, shape index: {}]   ;;  %s8135_s7 = inlined_call_operand.vmem [shape: f32[1,384], index: 7, kind: input, shape index: {}]   ;;  %s8136_s8 = inlined_call_operand.vmem [shape: bf16[384,128], index: 8, kind: input, shape index: {}]   ;;  %s8137_s9 = inlined_call_operand.hbm [shape: f32[16,128], index: 9, kind: output, shape index: {}]  }
   0x1   :  { %15 = vsyncpa [#allocation4], 0  ;;  %s7106_s30 = smov 0   ;;  %s7108_s10 = smov 0  }
   0x2   :  { %s7110_s11 = smov 0  }
   0x3 LB: > { %s5390_s12 = sadd.s32 4294967295, %s7045_s11   ;;  %s30_s13 = sadd.s32 1, %s7041_s10  ;;  %s7045_s11 = sphi %s7110_s11, %s21_s11   ;;  %s7041_s10 = sphi %s7108_s10, %s8142_s10   ;;  %s7037_s30 = sphi %s7106_s30, %s8141_s30  }
   0x4   : > { %p31_p0 = scmp.ge.s32.totalorder %s30_s13, 8  ;;  %p5391_p1 = scmp.ge.s32.totalorder %s7045_s11, 1 }
   0x5   : > { %p268_p2 = scmp.lt.s32.totalorder %s7045_s11, 9  ;;  %p7133_p4 = scmp.eq.s32.totalorder %s5390_s12, 0 }
   0x6   : > { %s8144_s13 = smov (%p31_p0, %s30_s13), 0  ;;  %s281_s18 = sshll.u32 %s8128_s0, 4  ;;  %s282_s18 = int_to_ptr.vmem [resolvable:$true] %s281_s18 }
   0x7   : > { %p7127_p3 = pnand %p5391_p1, %p268_p2  ;;  %s6974_s19 = scalar_lea.vmem %s282_s18, 16 }
   0x8   : > { %p6975_p7 = scmp.ne.s32.totalorder %s282_s18, %s6974_s19  ;;  %p6982_p11 = scmp.lt.s32.totalorder %s282_s18, %s282_s18 }
   0x9   : > { %p6132_p5 = pneg %p7127_p3  ;;  %p6983_p12 = scmp.lt.s32.totalorder %s6974_s19, %s6974_s19 }
   0xb   : > { %p6133_p6 = pnand %p7133_p4, %p6132_p5  ;;  %p6984_p13 = por %p6983_p12, %p6982_p11 }
   0xd   : > { %p6976_p8 = pneg %p6133_p6 }
   0xf   : > { %p6977_p9 = pnand %p6976_p8, %p6975_p7 }
  0x11   : > { %p6978_p10 = pneg %p6977_p9 }
  0x13   : > { %p6985_p0 = pnand %p6984_p13, %p6978_p10 }
  0x15   : > { %6988 = shalt.err (!%p6985_p0)
}
  0x16   : > { %s7047_s20 = smov [#allocation3]   ;;  %335 = sbr.rel (%p7127_p3) target bundleno = 2640 (0xa50), region = 56 }
  0x17   : > { %6135 = dma.vmem_to_smem (!%p6133_p6), %s282_s18, 16, %s7047_s20, [#allocation5]  }
  0x1d   : > { %7028 = dma.done.wait (%p7133_p4), [#allocation5], 16  }
  0x1e   : > { %7030 = vsyncadd (%p7133_p4), [#allocation5], 4294967280 }
  0x1f   : > { %341 = sfence }
  0x20   : > { %p385_p1 = scmp.lt.s32.totalorder %s7037_s30, 7  ;;  %p5399_p2 = scmp.ne.s32.totalorder %s7037_s30, 0 }
  0x21   : > { %v401_v0 = vld [vmem:[%s8129_s1] sm:$0xff] (!%p5399_p2)  ;;  %v402_v1 = vld [vmem:[%s8129_s1 + $0x8] sm:$0xff] (!%p5399_p2)  ;;  %v403_v2 = vld [vmem:[%s8129_s1 + $0x10] sm:$0xff] (!%p5399_p2) }
  0x22   : > { %s386_s21 = scalar_select %p385_p1, %s7037_s30, 7 }
  0x23   : > { %400 = sbr.rel (%p5399_p2) target bundleno = 42 (0x2a), region = 64  ;;  %407 = vst [vmem:[#allocation2] sm:$0xff] (!%p5399_p2), %v401_v0  ;;  %408 = vst [vmem:[#allocation2 + $0x8] sm:$0xff] (!%p5399_p2), %v402_v1  ;;  %v404_v3 = vld [vmem:[%s8129_s1 + $0x18] sm:$0xff] (!%p5399_p2)  ;;  %v405_v4 = vld [vmem:[%s8129_s1 + $0x20] sm:$0xff] (!%p5399_p2) }
  0x24   : > { %s6122_s22 = smul.u32 2688, %s386_s21  ;;  %409 = vst [vmem:[#allocation2 + $0x10] sm:$0xff] (!%p5399_p2), %v403_v2  ;;  %v406_v5 = vld [vmem:[%s8129_s1 + $0x28] sm:$0xff] (!%p5399_p2)  ;;  %410 = vst [vmem:[#allocation2 + $0x18] sm:$0xff] (!%p5399_p2), %v404_v3 }
  0x25   : > { %s6123_s23 = smul.u32 1152, %s386_s21  ;;  %411 = vst [vmem:[#allocation2 + $0x20] sm:$0xff] (!%p5399_p2), %v405_v4  ;;  %412 = vst [vmem:[#allocation2 + $0x28] sm:$0xff] (!%p5399_p2), %v406_v5 }
  0x26   : > { %s7155_s26 = scalar_lea.vmem %s8132_s4, %s6122_s22 }
  0x27   : > { %s7160_s29 = scalar_lea.vmem %s8133_s5, %s6123_s23 }
  0x2a PF: > { %v7181_v6 = vld [vmem:[#allocation2] sm:$0xff]  ;;  %v7183_v7 = vld [vmem:[#allocation2 + $0x8] sm:$0xff]  ;;  %v6181_v21 = vld [vmem:[%s7155_s26 + $0x7c] ss:$56 sps:$4 sm:$0xff]   ;;  %vm7050_vm4 = vmmov 0   ;;  %vm3490_vm15 = vcmask 130048  }
  0x2b   : > { %v7185_v8 = vld [vmem:[#allocation2 + $0x10] sm:$0xff]  ;;  %v419_v9 = vadd.f32 %v7183_v7, %v7181_v6  ;;  %v416_v10 = vld [vmem:[#allocation2 + $0x18] sm:$0xff]  ;;  %v6175_v17 = vld [vmem:[%s7155_s26 + $0xc] ss:$56 sps:$4 sm:$0xff]   ;;  %p5884_p3 = scmp.ne.s32.totalorder %s7037_s30, 7 }
  0x2c   : > { %v417_v11 = vld [vmem:[#allocation2 + $0x20] sm:$0xff]  ;;  %v418_v12 = vld [vmem:[#allocation2 + $0x28] sm:$0xff]  ;;  %2567 = vmatprep.subr.bf16.mxu1 %v6175_v17  ;;  %v6184_v23 = vld [vmem:[%s7155_s26 + $0x78] ss:$56 sps:$4 sm:$0xff]  }
  0x2d   : > { %v423_v13 = vadd.f32 %v417_v11, %v416_v10  ;;  %v420_v14 = vadd.f32 %v419_v9, %v7185_v8  ;;  %v6173_v16 = vld [vmem:[%s7155_s26 + $0x4] ss:$56 sps:$4 sm:$0xff]   ;;  %v6177_v18 = vld [vmem:[%s7155_s26] ss:$56 sps:$4 sm:$0xff]   ;;  %v6179_v20 = vld [vmem:[%s7155_s26 + $0x74] ss:$56 sps:$4 sm:$0xff]  }
  0x2e   : > { %v6178_v19 = vld [vmem:[%s7155_s26 + $0x8] ss:$56 sps:$4 sm:$0xff]   ;;  %2481 = vmatprep.subr.bf16.mxu0 %v6173_v16  ;;  %v6185_v24 = vld [vmem:[%s7155_s26 + $0xe4] ss:$56 sps:$4 sm:$0xff]   ;;  %v6191_v28 = vld [vmem:[%s7155_s26 + $0x154] ss:$56 sps:$4 sm:$0xff]  }
  0x2f   : > { %421 = vadd.xlane.f32.xlu0 %v420_v14  ;;  %v424_v15 = vadd.f32 %v423_v13, %v418_v12  ;;  %2482 = vmatpush1.bf16.msra.mxu0 %v6177_v18  ;;  %v6183_v22 = vld [vmem:[%s7155_s26 + $0x70] ss:$56 sps:$4 sm:$0xff]   ;;  %v6187_v25 = vld [vmem:[%s7155_s26 + $0xec] ss:$56 sps:$4 sm:$0xff]   ;;  %v6189_v26 = vld [vmem:[%s7155_s26 + $0xe0] ss:$56 sps:$4 sm:$0xff]  }
  0x30   : > { %2568 = vmatpush1.bf16.msra.mxu1 %v6178_v19  ;;  %2483 = vmatprep.subr.bf16.mxu0 %v6179_v20  ;;  %v6190_v27 = vld [vmem:[%s7155_s26 + $0xe8] ss:$56 sps:$4 sm:$0xff]   ;;  %v6193_v29 = vld [vmem:[%s7155_s26 + $0x15c] ss:$56 sps:$4 sm:$0xff]   ;;  %v6196_v31 = vld [vmem:[%s7155_s26 + $0x158] ss:$56 sps:$4 sm:$0xff]  }
  0x31   : > { %2569 = vmatprep.subr.bf16.mxu1 %v6181_v21  ;;  %v6195_v30 = vld [vmem:[%s7155_s26 + $0x150] ss:$56 sps:$4 sm:$0xff]   ;;  %v6197_v32 = vld [vmem:[%s7155_s26 + $0x1c4] ss:$56 sps:$4 sm:$0xff]   ;;  %v6201_v34 = vld [vmem:[%s7155_s26 + $0x1c0] ss:$56 sps:$4 sm:$0xff]  }
  0x32   : > { %v6199_v33 = vld [vmem:[%s7155_s26 + $0x1cc] ss:$56 sps:$4 sm:$0xff]   ;;  %v6202_v35 = vld [vmem:[%s7155_s26 + $0x1c8] ss:$56 sps:$4 sm:$0xff]   ;;  %v6205_v37 = vld [vmem:[%s7155_s26 + $0x23c] ss:$56 sps:$4 sm:$0xff]  }
  0x33   : > { %425 = vadd.xlane.f32.xlu0 %v424_v15  ;;  %2484 = vmatpush1.bf16.msra.mxu0 %v6183_v22  ;;  %v6203_v36 = vld [vmem:[%s7155_s26 + $0x234] ss:$56 sps:$4 sm:$0xff]   ;;  %v6207_v38 = vld [vmem:[%s7155_s26 + $0x230] ss:$56 sps:$4 sm:$0xff]   ;;  %v6209_v40 = vld [vmem:[%s7155_s26 + $0x2a4] ss:$56 sps:$4 sm:$0xff]  }
  0x34   : > { %2570 = vmatpush1.bf16.msra.mxu1 %v6184_v23  ;;  %2485 = vmatprep.subr.bf16.mxu0 %v6185_v24  ;;  %v6208_v39 = vld [vmem:[%s7155_s26 + $0x238] ss:$56 sps:$4 sm:$0xff]   ;;  %v6211_v41 = vld [vmem:[%s7155_s26 + $0x2ac] ss:$56 sps:$4 sm:$0xff]   ;;  %v6214_v43 = vld [vmem:[%s7155_s26 + $0x2a8] ss:$56 sps:$4 sm:$0xff]  }
  0x35   : > { %2571 = vmatprep.subr.bf16.mxu1 %v6187_v25  ;;  %v6213_v42 = vld [vmem:[%s7155_s26 + $0x2a0] ss:$56 sps:$4 sm:$0xff]   ;;  %v6215_v44 = vld [vmem:[%s7155_s26 + $0x314] ss:$56 sps:$4 sm:$0xff]   ;;  %v6219_v46 = vld [vmem:[%s7155_s26 + $0x310] ss:$56 sps:$4 sm:$0xff]  }
  0x36   : > { %v6217_v45 = vld [vmem:[%s7155_s26 + $0x31c] ss:$56 sps:$4 sm:$0xff]   ;;  %v6220_v47 = vld [vmem:[%s7155_s26 + $0x318] ss:$56 sps:$4 sm:$0xff]   ;;  %v6223_v49 = vld [vmem:[%s7155_s26 + $0x38c] ss:$56 sps:$4 sm:$0xff]  }
  0x37   : > { %2486 = vmatpush1.bf16.msra.mxu0 %v6189_v26  ;;  %v6221_v48 = vld [vmem:[%s7155_s26 + $0x384] ss:$56 sps:$4 sm:$0xff]   ;;  %v6225_v50 = vld [vmem:[%s7155_s26 + $0x380] ss:$56 sps:$4 sm:$0xff]   ;;  %v6227_v52 = vld [vmem:[%s7155_s26 + $0x3f4] ss:$56 sps:$4 sm:$0xff]  }
  0x38   : > { %2572 = vmatpush1.bf16.msra.mxu1 %v6190_v27  ;;  %2487 = vmatprep.subr.bf16.mxu0 %v6191_v28  ;;  %v6226_v51 = vld [vmem:[%s7155_s26 + $0x388] ss:$56 sps:$4 sm:$0xff]   ;;  %v6229_v53 = vld [vmem:[%s7155_s26 + $0x3fc] ss:$56 sps:$4 sm:$0xff]   ;;  %v6232_v55 = vld [vmem:[%s7155_s26 + $0x3f8] ss:$56 sps:$4 sm:$0xff]  }
  0x39   : > { %2573 = vmatprep.subr.bf16.mxu1 %v6193_v29  ;;  %v6231_v54 = vld [vmem:[%s7155_s26 + $0x3f0] ss:$56 sps:$4 sm:$0xff]   ;;  %v6233_v56 = vld [vmem:[%s7155_s26 + $0x464] ss:$56 sps:$4 sm:$0xff]   ;;  %v6237_v17 = vld [vmem:[%s7155_s26 + $0x460] ss:$56 sps:$4 sm:$0xff]  }
  0x3a   : > { %v6235_v57 = vld [vmem:[%s7155_s26 + $0x46c] ss:$56 sps:$4 sm:$0xff]   ;;  %v6937_v4 = vld [vmem:[#allocation2 + $0x18] sm:$0xff]  ;;  %v6238_v18 = vld [vmem:[%s7155_s26 + $0x468] ss:$56 sps:$4 sm:$0xff]  }
  0x3b   : > { %2488 = vmatpush1.bf16.msra.mxu0 %v6195_v30  ;;  %v6239_v19 = vld [vmem:[%s7155_s26 + $0x4d4] ss:$56 sps:$4 sm:$0xff]   ;;  %v6243_v21 = vld [vmem:[%s7155_s26 + $0x4d0] ss:$56 sps:$4 sm:$0xff]   ;;  %v6245_v23 = vld [vmem:[%s7155_s26 + $0x544] ss:$56 sps:$4 sm:$0xff]  }
  0x3c   : > { %2574 = vmatpush1.bf16.msra.mxu1 %v6196_v31  ;;  %2489 = vmatprep.subr.bf16.mxu0 %v6197_v32  ;;  %v6241_v20 = vld [vmem:[%s7155_s26 + $0x4dc] ss:$56 sps:$4 sm:$0xff]   ;;  %v6244_v22 = vld [vmem:[%s7155_s26 + $0x4d8] ss:$56 sps:$4 sm:$0xff]   ;;  %v6247_v24 = vld [vmem:[%s7155_s26 + $0x54c] ss:$56 sps:$4 sm:$0xff]  }
  0x3d   : > { %2575 = vmatprep.subr.bf16.mxu1 %v6199_v33  ;;  %v6249_v25 = vld [vmem:[%s7155_s26 + $0x540] ss:$56 sps:$4 sm:$0xff]   ;;  %v6251_v27 = vld [vmem:[%s7155_s26 + $0x5b4] ss:$56 sps:$4 sm:$0xff]   ;;  %v6255_v29 = vld [vmem:[%s7155_s26 + $0x5b0] ss:$56 sps:$4 sm:$0xff]  }
  0x3e   : > { %v6250_v26 = vld [vmem:[%s7155_s26 + $0x548] ss:$56 sps:$4 sm:$0xff]   ;;  %v6253_v28 = vld [vmem:[%s7155_s26 + $0x5bc] ss:$56 sps:$4 sm:$0xff]   ;;  %v6256_v30 = vld [vmem:[%s7155_s26 + $0x5b8] ss:$56 sps:$4 sm:$0xff]  }
  0x3f   : > { %2490 = vmatpush1.bf16.msra.mxu0 %v6201_v34  ;;  %v6257_v31 = vld [vmem:[%s7155_s26 + $0x624] ss:$56 sps:$4 sm:$0xff]   ;;  %v6261_v33 = vld [vmem:[%s7155_s26 + $0x620] ss:$56 sps:$4 sm:$0xff]  }
  0x40   : > { %2576 = vmatpush1.bf16.msra.mxu1 %v6202_v35  ;;  %2491 = vmatprep.subr.bf16.mxu0 %v6203_v36  ;;  %v6259_v32 = vld [vmem:[%s7155_s26 + $0x62c] ss:$56 sps:$4 sm:$0xff]   ;;  %v6262_v34 = vld [vmem:[%s7155_s26 + $0x628] ss:$56 sps:$4 sm:$0xff]   ;;  %v6265_v36 = vld [vmem:[%s7155_s26 + $0x69c] ss:$56 sps:$4 sm:$0xff]  }
  0x41   : > { %2577 = vmatprep.subr.bf16.mxu1 %v6205_v37  ;;  %v6263_v35 = vld [vmem:[%s7155_s26 + $0x694] ss:$56 sps:$4 sm:$0xff]   ;;  %v6267_v37 = vld [vmem:[%s7155_s26 + $0x690] ss:$56 sps:$4 sm:$0xff]  }
  0x43   : > { %2492 = vmatpush1.bf16.msra.mxu0 %v6207_v38  ;;  %v6268_v38 = vld [vmem:[%s7155_s26 + $0x698] ss:$56 sps:$4 sm:$0xff]  }
  0x44   : > { %2578 = vmatpush1.bf16.msra.mxu1 %v6208_v39  ;;  %2493 = vmatprep.subr.bf16.mxu0 %v6209_v40  ;;  %v6271_v39 = vld [vmem:[%s7155_s26 + $0x704] ss:$56 sps:$4 sm:$0xff]  }
  0x45   : > { %2579 = vmatprep.subr.bf16.mxu1 %v6211_v41  ;;  %v6274_v40 = vld [vmem:[%s7155_s26 + $0x1c] ss:$56 sps:$4 sm:$0xff]  }
  0x47   : > { %2494 = vmatpush1.bf16.msra.mxu0 %v6213_v42 }
  0x48   : > { %2580 = vmatpush1.bf16.msra.mxu1 %v6214_v43  ;;  %2495 = vmatprep.subr.bf16.mxu0 %v6215_v44 }
  0x49   : > { %2581 = vmatprep.subr.bf16.mxu1 %v6217_v45 }
  0x4b   : > { %2496 = vmatpush1.bf16.msra.mxu0 %v6219_v46 }
  0x4c   : > { %2582 = vmatpush1.bf16.msra.mxu1 %v6220_v47  ;;  %2497 = vmatprep.subr.bf16.mxu0 %v6221_v48 }
  0x4d   : > { %2583 = vmatprep.subr.bf16.mxu1 %v6223_v49 }
  0x4f   : > { %2498 = vmatpush1.bf16.msra.mxu0 %v6225_v50 }
  0x50   : > { %2584 = vmatpush1.bf16.msra.mxu1 %v6226_v51  ;;  %2499 = vmatprep.subr.bf16.mxu0 %v6227_v52 }
  0x51   : > { %2585 = vmatprep.subr.bf16.mxu1 %v6229_v53 }
  0x53   : > { %2500 = vmatpush1.bf16.msra.mxu0 %v6231_v54  ;;  %v6269_v54 = vld [vmem:[%s7155_s26 + $0x700] ss:$56 sps:$4 sm:$0xff]  }
  0x54   : > { %2586 = vmatpush1.bf16.msra.mxu1 %v6232_v55  ;;  %2501 = vmatprep.subr.bf16.mxu0 %v6233_v56  ;;  %v6272_v55 = vld [vmem:[%s7155_s26 + $0x18] ss:$56 sps:$4 sm:$0xff]  }
  0x55   : > { %2587 = vmatprep.subr.bf16.mxu1 %v6235_v57  ;;  %v6277_v57 = vld [vmem:[%s7155_s26 + $0x774] ss:$56 sps:$4 sm:$0xff]  }
  0x57   : > { %2502 = vmatpush1.bf16.msra.mxu0 %v6237_v17  ;;  %v6310_v17 = vld [vmem:[%s7155_s26 + $0x2bc] ss:$56 sps:$4 sm:$0xff]  }
  0x58   : > { %2588 = vmatpush1.bf16.msra.mxu1 %v6238_v18  ;;  %2503 = vmatprep.subr.bf16.mxu0 %v6239_v19  ;;  %v6305_v18 = vld [vmem:[%s7155_s26 + $0x9a0] ss:$56 sps:$4 sm:$0xff]  }
  0x59   : > { %2589 = vmatprep.subr.bf16.mxu1 %v6241_v20  ;;  %v6308_v19 = vld [vmem:[%s7155_s26 + $0x2b8] ss:$56 sps:$4 sm:$0xff]   ;;  %v6313_v20 = vld [vmem:[%s7155_s26 + $0xa14] ss:$56 sps:$4 sm:$0xff]  }
  0x5b   : > { %2504 = vmatpush1.bf16.msra.mxu0 %v6243_v21  ;;  %v6316_v21 = vld [vmem:[%s7155_s26 + $0x32c] ss:$56 sps:$4 sm:$0xff]  }
  0x5c   : > { %2590 = vmatpush1.bf16.msra.mxu1 %v6244_v22  ;;  %2505 = vmatprep.subr.bf16.mxu0 %v6245_v23  ;;  %v6311_v22 = vld [vmem:[%s7155_s26 + $0xa10] ss:$56 sps:$4 sm:$0xff]  }
  0x5d   : > { %2591 = vmatprep.subr.bf16.mxu1 %v6247_v24  ;;  %v6314_v23 = vld [vmem:[%s7155_s26 + $0x328] ss:$56 sps:$4 sm:$0xff]  }
  0x5f   : > { %2506 = vmatpush1.bf16.msra.mxu0 %v6249_v25  ;;  %v6319_v25 = vld [vmem:[%s7155_s26 + $0x70c] ss:$56 sps:$4 sm:$0xff]  }
  0x60   : > { %2592 = vmatpush1.bf16.msra.mxu1 %v6250_v26  ;;  %2507 = vmatprep.subr.bf16.mxu0 %v6251_v27  ;;  %v6322_v26 = vld [vmem:[%s7155_s26 + $0x39c] ss:$56 sps:$4 sm:$0xff]  }
  0x61   : > { %2593 = vmatprep.subr.bf16.mxu1 %v6253_v28  ;;  %v6317_v28 = vld [vmem:[%s7155_s26 + $0x708] ss:$56 sps:$4 sm:$0xff]  }
  0x63   : > { %2508 = vmatpush1.bf16.msra.mxu0 %v6255_v29  ;;  %v6320_v29 = vld [vmem:[%s7155_s26 + $0x398] ss:$56 sps:$4 sm:$0xff]  }
  0x64   : > { %2594 = vmatpush1.bf16.msra.mxu1 %v6256_v30  ;;  %2509 = vmatprep.subr.bf16.mxu0 %v6257_v31  ;;  %v6328_v31 = vld [vmem:[%s7155_s26 + $0x40c] ss:$56 sps:$4 sm:$0xff]  }
  0x65   : > { %2595 = vmatprep.subr.bf16.mxu1 %v6259_v32  ;;  %v6326_v32 = vld [vmem:[%s7155_s26 + $0x408] ss:$56 sps:$4 sm:$0xff]  }
  0x67   : > { %2510 = vmatpush1.bf16.msra.mxu0 %v6261_v33  ;;  %v6331_v33 = vld [vmem:[%s7155_s26 + $0x7ec] ss:$56 sps:$4 sm:$0xff]  }
  0x68   : > { %2596 = vmatpush1.bf16.msra.mxu1 %v6262_v34  ;;  %2511 = vmatprep.subr.bf16.mxu0 %v6263_v35  ;;  %v6334_v34 = vld [vmem:[%s7155_s26 + $0x47c] ss:$56 sps:$4 sm:$0xff]   ;;  %v6329_v35 = vld [vmem:[%s7155_s26 + $0x7e8] ss:$56 sps:$4 sm:$0xff]  }
  0x69   : > { %2597 = vmatprep.subr.bf16.mxu1 %v6265_v36  ;;  %v6332_v36 = vld [vmem:[%s7155_s26 + $0x478] ss:$56 sps:$4 sm:$0xff]  }
  0x6b   : > { %2512 = vmatpush1.bf16.msra.mxu0 %v6267_v37  ;;  %v6337_v37 = vld [vmem:[%s7155_s26 + $0x85c] ss:$56 sps:$4 sm:$0xff]  }
  0x6c   : > { %2598 = vmatpush1.bf16.msra.mxu1 %v6268_v38  ;;  %2524 = vmatprep.subr.bf16.mxu0 %v6271_v39  ;;  %v6340_v38 = vld [vmem:[%s7155_s26 + $0x4ec] ss:$56 sps:$4 sm:$0xff]   ;;  %v6335_v39 = vld [vmem:[%s7155_s26 + $0x858] ss:$56 sps:$4 sm:$0xff]  }
  0x6d   : > { %2739 = vmatprep.subr.bf16.mxu1 %v6274_v40  ;;  %v6338_v40 = vld [vmem:[%s7155_s26 + $0x4e8] ss:$56 sps:$4 sm:$0xff]  }
  0xbc   : > { %v422_v58 = vpop.xlane.xlu0 %421 }
  0xbd   : > { %v428_v59 = vmul.f32 0.0026041667, %v422_v58  ;;  %v6280_v58 = vld [vmem:[%s7155_s26 + $0x8c] ss:$56 sps:$4 sm:$0xff]  }
  0xbf   : > { %v7233_v60 = vsub.f32 %v7181_v6, %v428_v59  ;;  %v7236_v61 = vsub.f32 %v7183_v7, %v428_v59  ;;  %v7239_v62 = vsub.f32 %v7185_v8, %v428_v59  ;;  %v6938_v6 = vld [vmem:[#allocation2 + $0x20] sm:$0xff]  ;;  %v6939_v8 = vld [vmem:[#allocation2 + $0x28] sm:$0xff] }
  0xc0   : > { %v426_v63 = vpop.xlane.xlu0 %425  ;;  %v6275_v59 = vld [vmem:[%s7155_s26 + $0x770] ss:$56 sps:$4 sm:$0xff]  }
  0xc1   : > { %v429_v0 = vmul.f32 0.0026041667, %v426_v63  ;;  %v436_v1 = vmul.f32 %v7233_v60, %v7233_v60  ;;  %v437_v2 = vmul.f32 %v7236_v61, %v7236_v61  ;;  %v438_v3 = vmul.f32 %v7239_v62, %v7239_v62  ;;  %v6286_v63 = vld [vmem:[%s7155_s26 + $0xfc] ss:$56 sps:$4 sm:$0xff]  }
  0xc3   : > { %v7247_v5 = vsub.f32 %v6937_v4, %v429_v0  ;;  %v7249_v7 = vsub.f32 %v6938_v6, %v429_v0  ;;  %v7251_v9 = vsub.f32 %v6939_v8, %v429_v0  ;;  %v442_v10 = vadd.f32 %v437_v2, %v436_v1  ;;  %v6281_v1 = vld [vmem:[%s7155_s26 + $0x7e0] ss:$56 sps:$4 sm:$0xff]   ;;  %v6292_v4 = vld [vmem:[%s7155_s26 + $0x16c] ss:$56 sps:$4 sm:$0xff]   ;;  %v6298_v8 = vld [vmem:[%s7155_s26 + $0x1dc] ss:$56 sps:$4 sm:$0xff]  }
  0xc4   : > { %v7048_v0 = vmov 0   ;;  %v6284_v2 = vld [vmem:[%s7155_s26 + $0xf8] ss:$56 sps:$4 sm:$0xff]   ;;  %v6290_v6 = vld [vmem:[%s7155_s26 + $0x168] ss:$56 sps:$4 sm:$0xff]  }
  0xc5   : > { %v443_v11 = vadd.f32 %v442_v10, %v438_v3  ;;  %v439_v12 = vmul.f32 %v7247_v5, %v7247_v5  ;;  %v440_v13 = vmul.f32 %v7249_v7, %v7249_v7  ;;  %v441_v14 = vmul.f32 %v7251_v9, %v7251_v9  ;;  %v6289_v3 = vld [vmem:[%s7155_s26 + $0x854] ss:$56 sps:$4 sm:$0xff]   ;;  %v6293_v10 = vld [vmem:[%s7155_s26 + $0x8c0] ss:$56 sps:$4 sm:$0xff]  }
  0xc7   : > { %444 = vadd.xlane.f32.xlu1 %v443_v11  ;;  %v446_v15 = vadd.f32 %v440_v13, %v439_v12  ;;  %v6296_v11 = vld [vmem:[%s7155_s26 + $0x1d8] ss:$56 sps:$4 sm:$0xff]   ;;  %v6301_v12 = vld [vmem:[%s7155_s26 + $0x934] ss:$56 sps:$4 sm:$0xff]  }
  0xc8   : > { %v6304_v13 = vld [vmem:[%s7155_s26 + $0x24c] ss:$56 sps:$4 sm:$0xff]  }
  0xc9   : > { %v447_v16 = vadd.f32 %v446_v15, %v441_v14  ;;  %v6299_v14 = vld [vmem:[%s7155_s26 + $0x930] ss:$56 sps:$4 sm:$0xff]  }
  0xca   : > { %v6302_v15 = vld [vmem:[%s7155_s26 + $0x248] ss:$56 sps:$4 sm:$0xff]  }
  0xcb   : > { %448 = vadd.xlane.f32.xlu1 %v447_v16  ;;  %v6307_v16 = vld [vmem:[%s7155_s26 + $0x9a4] ss:$56 sps:$4 sm:$0xff]  }
 0x154   : > { %v445_v41 = vpop.xlane.xlu1 %444 }
 0x155   : > { %v450_v42 = vmul.f32 0.0026041667, %v445_v41  ;;  %v6343_v41 = vld [vmem:[%s7155_s26 + $0x8cc] ss:$56 sps:$4 sm:$0xff]  }
 0x157   : > { %v452_v43 = vadd.f32 1e-05, %v450_v42  ;;  %v6346_v42 = vld [vmem:[%s7155_s26 + $0x55c] ss:$56 sps:$4 sm:$0xff]  }
 0x158   : > { %v449_v44 = vpop.xlane.xlu1 %448 }
 0x159   : > { %v451_v45 = vmul.f32 0.0026041667, %v449_v44  ;;  %6869 = vrsqrt.f32 %v452_v43  ;;  %v6341_v43 = vld [vmem:[%s7155_s26 + $0x8c8] ss:$56 sps:$4 sm:$0xff]   ;;  %v6344_v44 = vld [vmem:[%s7155_s26 + $0x558] ss:$56 sps:$4 sm:$0xff]  }
 0x15b   : > { %v453_v46 = vadd.f32 1e-05, %v451_v45  ;;  %v6349_v45 = vld [vmem:[%s7155_s26 + $0x93c] ss:$56 sps:$4 sm:$0xff]  }
 0x15d   : > { %6871 = vrsqrt.f32 %v453_v46  ;;  %v6352_v46 = vld [vmem:[%s7155_s26 + $0x5cc] ss:$56 sps:$4 sm:$0xff]  }
 0x163   : > { %v7283_v47 = vpop.eup %6869 }
 0x164   : > { %v457_v49 = vmul.f32 %v7283_v47, %v7236_v61  ;;  %v456_v51 = vmul.f32 %v7283_v47, %v7233_v60  ;;  %v6278_v60 = vld [vmem:[%s7155_s26 + $0x88] ss:$56 sps:$4 sm:$0xff]   ;;  %v6283_v61 = vld [vmem:[%s7155_s26 + $0x7e4] ss:$56 sps:$4 sm:$0xff]   ;;  %v458_v27 = vmul.f32 %v7283_v47, %v7239_v62  ;;  %v6323_v62 = vld [vmem:[%s7155_s26 + $0x778] ss:$56 sps:$4 sm:$0xff]  }
 0x165   : > { %v6347_v47 = vld [vmem:[%s7155_s26 + $0x938] ss:$56 sps:$4 sm:$0xff]  }
 0x167   : > { %v7285_v48 = vpop.eup %6871 }
 0x168   : > { %v460_v50 = vmul.f32 %v7285_v48, %v7249_v7  ;;  %v459_v52 = vmul.f32 %v7285_v48, %v7247_v5  ;;  %v6287_v5 = vld [vmem:[%s7155_s26 + $0x850] ss:$56 sps:$4 sm:$0xff]   ;;  %v6295_v7 = vld [vmem:[%s7155_s26 + $0x8c4] ss:$56 sps:$4 sm:$0xff]   ;;  %v461_v24 = vmul.f32 %v7285_v48, %v7251_v9 }
 0x169   : > { %v6325_v9 = vld [vmem:[%s7155_s26 + $0x77c] ss:$56 sps:$4 sm:$0xff]   ;;  %v6350_v48 = vld [vmem:[%s7155_s26 + $0x5c8] ss:$56 sps:$4 sm:$0xff]  }
 0x16a   : > { %v7295_v53 = vpack.c.bf16 %v460_v50, %v457_v49  ;;  %v7299_v56 = vpack.c.bf16 %v459_v52, %v456_v51  ;;  %v7343_v30 = vpack.c.bf16 %v461_v24, %v458_v27  ;;  %v6355_v49 = vld [vmem:[%s7155_s26 + $0x9ac] ss:$56 sps:$4 sm:$0xff]   ;;  %v6358_v50 = vld [vmem:[%s7155_s26 + $0x63c] ss:$56 sps:$4 sm:$0xff]   ;;  %v6353_v51 = vld [vmem:[%s7155_s26 + $0x9a8] ss:$56 sps:$4 sm:$0xff]  }
 0x16b   : > { %v6356_v52 = vld [vmem:[%s7155_s26 + $0x638] ss:$56 sps:$4 sm:$0xff]   ;;  %v6412_v27 = vld [vmem:[%s7155_s26 + $0xa2c] ss:$56 sps:$4 sm:$0xff]  }
 0x16c   : > { %2513 = vmatprep.mubr.bf16.mxu0 %v7295_v53  ;;  %2599 = vmatprep.mubr.bf16.mxu1 %v7295_v53  ;;  %v6401_v24 = vld [vmem:[%s7155_s26 + $0x2b0] ss:$56 sps:$4 sm:$0xff]  }
 0x16d   : > { %2514 = vmatmul.mubr.bf16.vlgmr.msra.gmra.mrb[0].mxu0 %v7299_v56  ;;  %2600 = vmatmul.mubr.bf16.vlgmr.msra.gmra.mrb[0].mxu1 %v7299_v56 }
 0x16e   : > { %2525 = vmatpush1.bf16.msra.mxu0 %v6269_v54  ;;  %2740 = vmatpush1.bf16.msra.mxu1 %v6272_v55  ;;  %v6361_v54 = vld [vmem:[%s7155_s26 + $0xa1c] ss:$56 sps:$4 sm:$0xff]   ;;  %v6364_v55 = vld [vmem:[%s7155_s26 + $0x6ac] ss:$56 sps:$4 sm:$0xff]  }
 0x16f   : > { %2771 = vmatprep.mubr.bf16.mxu1 %v7295_v53  ;;  %2526 = vmatprep.subr.bf16.mxu0 %v6277_v57  ;;  %v6359_v57 = vld [vmem:[%s7155_s26 + $0xa18] ss:$56 sps:$4 sm:$0xff]  }
 0x170   : > { %2741 = vmatprep.subr.bf16.mxu1 %v6280_v58  ;;  %2556 = vmatprep.mubr.bf16.mxu0 %v7048_v0  ;;  %v6362_v58 = vld [vmem:[%s7155_s26 + $0x6a8] ss:$56 sps:$4 sm:$0xff]  }
 0x172   : > { %2527 = vmatpush1.bf16.msra.mxu0 %v6275_v59  ;;  %2742 = vmatpush1.bf16.msra.mxu1 %v6278_v60  ;;  %v6367_v59 = vld [vmem:[%s7155_s26 + $0x14] ss:$56 sps:$4 sm:$0xff]  }
 0x173   : > { %2528 = vmatprep.subr.bf16.mxu0 %v6283_v61  ;;  %2743 = vmatprep.subr.bf16.mxu1 %v6286_v63  ;;  %v6370_v60 = vld [vmem:[%s7155_s26 + $0x71c] ss:$56 sps:$4 sm:$0xff]   ;;  %v6365_v61 = vld [vmem:[%s7155_s26 + $0x10] ss:$56 sps:$4 sm:$0xff]  }
 0x174   : > { %v6368_v63 = vld [vmem:[%s7155_s26 + $0x718] ss:$56 sps:$4 sm:$0xff]  }
 0x176   : > { %2529 = vmatpush1.bf16.msra.mxu0 %v6281_v1  ;;  %2744 = vmatpush1.bf16.msra.mxu1 %v6284_v2  ;;  %v6373_v1 = vld [vmem:[%s7155_s26 + $0x84] ss:$56 sps:$4 sm:$0xff]  }
 0x177   : > { %2530 = vmatprep.subr.bf16.mxu0 %v6289_v3  ;;  %2745 = vmatprep.subr.bf16.mxu1 %v6292_v4  ;;  %v6376_v2 = vld [vmem:[%s7155_s26 + $0x78c] ss:$56 sps:$4 sm:$0xff]   ;;  %v6371_v3 = vld [vmem:[%s7155_s26 + $0x80] ss:$56 sps:$4 sm:$0xff]  }
 0x178   : > { %v6374_v4 = vld [vmem:[%s7155_s26 + $0x788] ss:$56 sps:$4 sm:$0xff]  }
 0x17a   : > { %2531 = vmatpush1.bf16.msra.mxu0 %v6287_v5  ;;  %2746 = vmatpush1.bf16.msra.mxu1 %v6290_v6  ;;  %v6379_v5 = vld [vmem:[%s7155_s26 + $0xf4] ss:$56 sps:$4 sm:$0xff]  }
 0x17b   : > { %2532 = vmatprep.subr.bf16.mxu0 %v6295_v7  ;;  %2747 = vmatprep.subr.bf16.mxu1 %v6298_v8  ;;  %v6382_v6 = vld [vmem:[%s7155_s26 + $0x7fc] ss:$56 sps:$4 sm:$0xff]   ;;  %v6377_v7 = vld [vmem:[%s7155_s26 + $0xf0] ss:$56 sps:$4 sm:$0xff]  }
 0x17c   : > { %v6380_v8 = vld [vmem:[%s7155_s26 + $0x7f8] ss:$56 sps:$4 sm:$0xff]  }
 0x17e   : > { %2533 = vmatpush1.bf16.msra.mxu0 %v6293_v10  ;;  %2748 = vmatpush1.bf16.msra.mxu1 %v6296_v11  ;;  %v6385_v10 = vld [vmem:[%s7155_s26 + $0x164] ss:$56 sps:$4 sm:$0xff]  }
 0x17f   : > { %2534 = vmatprep.subr.bf16.mxu0 %v6301_v12  ;;  %2749 = vmatprep.subr.bf16.mxu1 %v6304_v13  ;;  %v6388_v11 = vld [vmem:[%s7155_s26 + $0x86c] ss:$56 sps:$4 sm:$0xff]   ;;  %v6383_v12 = vld [vmem:[%s7155_s26 + $0x160] ss:$56 sps:$4 sm:$0xff]  }
 0x180   : > { %v6386_v13 = vld [vmem:[%s7155_s26 + $0x868] ss:$56 sps:$4 sm:$0xff]  }
 0x182   : > { %2535 = vmatpush1.bf16.msra.mxu0 %v6299_v14  ;;  %2750 = vmatpush1.bf16.msra.mxu1 %v6302_v15  ;;  %v6391_v14 = vld [vmem:[%s7155_s26 + $0x1d4] ss:$56 sps:$4 sm:$0xff]  }
 0x183   : > { %2536 = vmatprep.subr.bf16.mxu0 %v6307_v16  ;;  %2751 = vmatprep.subr.bf16.mxu1 %v6310_v17  ;;  %v6394_v15 = vld [vmem:[%s7155_s26 + $0x8dc] ss:$56 sps:$4 sm:$0xff]   ;;  %v6389_v16 = vld [vmem:[%s7155_s26 + $0x1d0] ss:$56 sps:$4 sm:$0xff]  }
 0x184   : > { %v6392_v17 = vld [vmem:[%s7155_s26 + $0x8d8] ss:$56 sps:$4 sm:$0xff]  }
 0x186   : > { %2537 = vmatpush1.bf16.msra.mxu0 %v6305_v18  ;;  %2752 = vmatpush1.bf16.msra.mxu1 %v6308_v19  ;;  %v6397_v18 = vld [vmem:[%s7155_s26 + $0x244] ss:$56 sps:$4 sm:$0xff]  }
 0x187   : > { %2538 = vmatprep.subr.bf16.mxu0 %v6313_v20  ;;  %2753 = vmatprep.subr.bf16.mxu1 %v6316_v21  ;;  %v6400_v19 = vld [vmem:[%s7155_s26 + $0x94c] ss:$56 sps:$4 sm:$0xff]   ;;  %v6395_v20 = vld [vmem:[%s7155_s26 + $0x240] ss:$56 sps:$4 sm:$0xff]  }
 0x188   : > { %v6398_v21 = vld [vmem:[%s7155_s26 + $0x948] ss:$56 sps:$4 sm:$0xff]  }
 0x18a   : > { %2539 = vmatpush1.bf16.msra.mxu0 %v6311_v22  ;;  %2754 = vmatpush1.bf16.msra.mxu1 %v6314_v23  ;;  %v6403_v22 = vld [vmem:[%s7155_s26 + $0x2b4] ss:$56 sps:$4 sm:$0xff]  }
 0x18b   : > { %2610 = vmatprep.subr.bf16.mxu0 %v6319_v25  ;;  %2755 = vmatprep.subr.bf16.mxu1 %v6322_v26  ;;  %v6406_v23 = vld [vmem:[%s7155_s26 + $0x9bc] ss:$56 sps:$4 sm:$0xff]   ;;  %v6404_v25 = vld [vmem:[%s7155_s26 + $0x9b8] ss:$56 sps:$4 sm:$0xff]  }
 0x18c   : > { %v6409_v26 = vld [vmem:[%s7155_s26 + $0x324] ss:$56 sps:$4 sm:$0xff]  }
 0x18d   : > { %2557 = vmatmul.mubr.bf16.vlgmr.msra.gmra.mrb[0].mxu0 %v7343_v30 }
 0x18e   : > { %2611 = vmatpush1.bf16.msra.mxu0 %v6317_v28  ;;  %2756 = vmatpush1.bf16.msra.mxu1 %v6320_v29  ;;  %v6407_v28 = vld [vmem:[%s7155_s26 + $0x320] ss:$56 sps:$4 sm:$0xff]  }
 0x18f   : > { %2612 = vmatprep.subr.bf16.mxu0 %v6325_v9  ;;  %2757 = vmatprep.subr.bf16.mxu1 %v6328_v31  ;;  %v6410_v29 = vld [vmem:[%s7155_s26 + $0xa28] ss:$56 sps:$4 sm:$0xff]   ;;  %v6415_v9 = vld [vmem:[%s7155_s26 + $0x394] ss:$56 sps:$4 sm:$0xff]  }
 0x190   : > { %2642 = vmatprep.mubr.bf16.mxu0 %v7048_v0  ;;  %v6418_v31 = vld [vmem:[%s7155_s26 + $0x2c] ss:$56 sps:$4 sm:$0xff]  }
 0x192   : > { %2613 = vmatpush1.bf16.msra.mxu0 %v6323_v62  ;;  %2758 = vmatpush1.bf16.msra.mxu1 %v6326_v32  ;;  %v6413_v62 = vld [vmem:[%s7155_s26 + $0x390] ss:$56 sps:$4 sm:$0xff]  }
 0x193   : > { %2614 = vmatprep.subr.bf16.mxu0 %v6331_v33  ;;  %2759 = vmatprep.subr.bf16.mxu1 %v6334_v34  ;;  %v6416_v32 = vld [vmem:[%s7155_s26 + $0x28] ss:$56 sps:$4 sm:$0xff]   ;;  %v6421_v33 = vld [vmem:[%s7155_s26 + $0x404] ss:$56 sps:$4 sm:$0xff]  }
 0x194   : > { %v6424_v34 = vld [vmem:[%s7155_s26 + $0x9c] ss:$56 sps:$4 sm:$0xff]  }
 0x196   : > { %2615 = vmatpush1.bf16.msra.mxu0 %v6329_v35  ;;  %2760 = vmatpush1.bf16.msra.mxu1 %v6332_v36  ;;  %v6419_v35 = vld [vmem:[%s7155_s26 + $0x400] ss:$56 sps:$4 sm:$0xff]  }
 0x197   : > { %2616 = vmatprep.subr.bf16.mxu0 %v6337_v37  ;;  %2761 = vmatprep.subr.bf16.mxu1 %v6340_v38  ;;  %v6422_v36 = vld [vmem:[%s7155_s26 + $0x98] ss:$56 sps:$4 sm:$0xff]   ;;  %v6427_v37 = vld [vmem:[%s7155_s26 + $0x474] ss:$56 sps:$4 sm:$0xff]  }
 0x198   : > { %v6430_v38 = vld [vmem:[%s7155_s26 + $0x10c] ss:$56 sps:$4 sm:$0xff]  }
 0x19a   : > { %2617 = vmatpush1.bf16.msra.mxu0 %v6335_v39  ;;  %2762 = vmatpush1.bf16.msra.mxu1 %v6338_v40  ;;  %v6425_v39 = vld [vmem:[%s7155_s26 + $0x470] ss:$56 sps:$4 sm:$0xff]  }
 0x19b   : > { %2618 = vmatprep.subr.bf16.mxu0 %v6343_v41  ;;  %2763 = vmatprep.subr.bf16.mxu1 %v6346_v42  ;;  %v6428_v40 = vld [vmem:[%s7155_s26 + $0x108] ss:$56 sps:$4 sm:$0xff]   ;;  %v6433_v41 = vld [vmem:[%s7155_s26 + $0x4e4] ss:$56 sps:$4 sm:$0xff]  }
 0x19c   : > { %v6436_v42 = vld [vmem:[%s7155_s26 + $0x17c] ss:$56 sps:$4 sm:$0xff]  }
 0x19e   : > { %2619 = vmatpush1.bf16.msra.mxu0 %v6341_v43  ;;  %2764 = vmatpush1.bf16.msra.mxu1 %v6344_v44  ;;  %v6431_v43 = vld [vmem:[%s7155_s26 + $0x4e0] ss:$56 sps:$4 sm:$0xff]  }
 0x19f   : > { %2620 = vmatprep.subr.bf16.mxu0 %v6349_v45  ;;  %2765 = vmatprep.subr.bf16.mxu1 %v6352_v46  ;;  %v6434_v44 = vld [vmem:[%s7155_s26 + $0x178] ss:$56 sps:$4 sm:$0xff]   ;;  %v6439_v45 = vld [vmem:[%s7155_s26 + $0x554] ss:$56 sps:$4 sm:$0xff]  }
 0x1a0   : > { %v6442_v46 = vld [vmem:[%s7155_s26 + $0x1ec] ss:$56 sps:$4 sm:$0xff]  }
 0x1a2   : > { %2621 = vmatpush1.bf16.msra.mxu0 %v6347_v47  ;;  %2766 = vmatpush1.bf16.msra.mxu1 %v6350_v48  ;;  %v6437_v47 = vld [vmem:[%s7155_s26 + $0x550] ss:$56 sps:$4 sm:$0xff]  }
 0x1a3   : > { %2622 = vmatprep.subr.bf16.mxu0 %v6355_v49  ;;  %2767 = vmatprep.subr.bf16.mxu1 %v6358_v50  ;;  %v6440_v48 = vld [vmem:[%s7155_s26 + $0x1e8] ss:$56 sps:$4 sm:$0xff]   ;;  %v6445_v49 = vld [vmem:[%s7155_s26 + $0x5c4] ss:$56 sps:$4 sm:$0xff]  }
 0x1a4   : > { %v6448_v50 = vld [vmem:[%s7155_s26 + $0x25c] ss:$56 sps:$4 sm:$0xff]  }
 0x1a6   : > { %2623 = vmatpush1.bf16.msra.mxu0 %v6353_v51  ;;  %2768 = vmatpush1.bf16.msra.mxu1 %v6356_v52  ;;  %v6443_v51 = vld [vmem:[%s7155_s26 + $0x5c0] ss:$56 sps:$4 sm:$0xff]  }
 0x1a7   : > { %2624 = vmatprep.subr.bf16.mxu0 %v6361_v54  ;;  %2769 = vmatprep.subr.bf16.mxu1 %v6364_v55  ;;  %v6446_v52 = vld [vmem:[%s7155_s26 + $0x258] ss:$56 sps:$4 sm:$0xff]   ;;  %v6451_v54 = vld [vmem:[%s7155_s26 + $0x634] ss:$56 sps:$4 sm:$0xff]  }
 0x1a8   : > { %v6454_v55 = vld [vmem:[%s7155_s26 + $0x2cc] ss:$56 sps:$4 sm:$0xff]  }
 0x1aa   : > { %2625 = vmatpush1.bf16.msra.mxu0 %v6359_v57  ;;  %2770 = vmatpush1.bf16.msra.mxu1 %v6362_v58  ;;  %v6449_v57 = vld [vmem:[%s7155_s26 + $0x630] ss:$56 sps:$4 sm:$0xff]  }
 0x1ab   : > { %2653 = vmatprep.subr.bf16.mxu0 %v6367_v59  ;;  %2782 = vmatprep.subr.bf16.mxu1 %v6370_v60  ;;  %v6452_v58 = vld [vmem:[%s7155_s26 + $0x2c8] ss:$56 sps:$4 sm:$0xff]   ;;  %v6457_v59 = vld [vmem:[%s7155_s26 + $0x6a4] ss:$56 sps:$4 sm:$0xff]  }
 0x1ac   : > { %v6460_v60 = vld [vmem:[%s7155_s26 + $0x33c] ss:$56 sps:$4 sm:$0xff]  }
 0x1ad   : > { %2643 = vmatmul.mubr.bf16.vlgmr.msra.gmra.mrb[4].mxu0 %v7343_v30  ;;  %2772 = vmatmul.mubr.bf16.vlgmr.msra.gmra.mrb[4].mxu1 %v7299_v56 }
 0x1ae   : > { %2654 = vmatpush1.bf16.msra.mxu0 %v6365_v61  ;;  %2685 = vmatprep.mubr.bf16.mxu0 %v7295_v53  ;;  %v6455_v61 = vld [vmem:[%s7155_s26 + $0x6a0] ss:$56 sps:$4 sm:$0xff]  }
 0x1af   : > { %2783 = vmatpush1.bf16.msra.mxu1 %v6368_v63  ;;  %2655 = vmatprep.subr.bf16.mxu0 %v6373_v1  ;;  %v6458_v63 = vld [vmem:[%s7155_s26 + $0x338] ss:$56 sps:$4 sm:$0xff]   ;;  %v6463_v1 = vld [vmem:[%s7155_s26 + $0x714] ss:$56 sps:$4 sm:$0xff]  }
 0x1b0   : > { %2784 = vmatprep.subr.bf16.mxu1 %v6376_v2  ;;  %2814 = vmatprep.mubr.bf16.mxu1 %v7048_v0  ;;  %v6466_v2 = vld [vmem:[%s7155_s26 + $0x3ac] ss:$56 sps:$4 sm:$0xff]  }
 0x1b2   : > { %2656 = vmatpush1.bf16.msra.mxu0 %v6371_v3  ;;  %v6461_v3 = vld [vmem:[%s7155_s26 + $0x710] ss:$56 sps:$4 sm:$0xff]  }
 0x1b3   : > { %2785 = vmatpush1.bf16.msra.mxu1 %v6374_v4  ;;  %2657 = vmatprep.subr.bf16.mxu0 %v6379_v5  ;;  %v6464_v4 = vld [vmem:[%s7155_s26 + $0x3a8] ss:$56 sps:$4 sm:$0xff]   ;;  %v6469_v5 = vld [vmem:[%s7155_s26 + $0x784] ss:$56 sps:$4 sm:$0xff]  }
 0x1b4   : > { %2786 = vmatprep.subr.bf16.mxu1 %v6382_v6  ;;  %v6472_v6 = vld [vmem:[%s7155_s26 + $0x41c] ss:$56 sps:$4 sm:$0xff]  }
 0x1b6   : > { %2658 = vmatpush1.bf16.msra.mxu0 %v6377_v7  ;;  %v6467_v7 = vld [vmem:[%s7155_s26 + $0x780] ss:$56 sps:$4 sm:$0xff]  }
 0x1b7   : > { %2787 = vmatpush1.bf16.msra.mxu1 %v6380_v8  ;;  %2659 = vmatprep.subr.bf16.mxu0 %v6385_v10  ;;  %v6470_v8 = vld [vmem:[%s7155_s26 + $0x418] ss:$56 sps:$4 sm:$0xff]   ;;  %v6475_v10 = vld [vmem:[%s7155_s26 + $0x7f4] ss:$56 sps:$4 sm:$0xff]  }
 0x1b8   : > { %2788 = vmatprep.subr.bf16.mxu1 %v6388_v11  ;;  %v6478_v11 = vld [vmem:[%s7155_s26 + $0x48c] ss:$56 sps:$4 sm:$0xff]  }
 0x1ba   : > { %2660 = vmatpush1.bf16.msra.mxu0 %v6383_v12  ;;  %v6473_v12 = vld [vmem:[%s7155_s26 + $0x7f0] ss:$56 sps:$4 sm:$0xff]  }
 0x1bb   : > { %2789 = vmatpush1.bf16.msra.mxu1 %v6386_v13  ;;  %2661 = vmatprep.subr.bf16.mxu0 %v6391_v14  ;;  %v6476_v13 = vld [vmem:[%s7155_s26 + $0x488] ss:$56 sps:$4 sm:$0xff]   ;;  %v6481_v14 = vld [vmem:[%s7155_s26 + $0x864] ss:$56 sps:$4 sm:$0xff]  }
 0x1bc   : > { %2790 = vmatprep.subr.bf16.mxu1 %v6394_v15  ;;  %v6484_v15 = vld [vmem:[%s7155_s26 + $0x4fc] ss:$56 sps:$4 sm:$0xff]  }
 0x1be   : > { %2662 = vmatpush1.bf16.msra.mxu0 %v6389_v16  ;;  %v6479_v16 = vld [vmem:[%s7155_s26 + $0x860] ss:$56 sps:$4 sm:$0xff]  }
 0x1bf   : > { %2791 = vmatpush1.bf16.msra.mxu1 %v6392_v17  ;;  %2663 = vmatprep.subr.bf16.mxu0 %v6397_v18  ;;  %v6482_v17 = vld [vmem:[%s7155_s26 + $0x4f8] ss:$56 sps:$4 sm:$0xff]   ;;  %v6487_v18 = vld [vmem:[%s7155_s26 + $0x8d4] ss:$56 sps:$4 sm:$0xff]  }
 0x1c0   : > { %2792 = vmatprep.subr.bf16.mxu1 %v6400_v19  ;;  %v6490_v19 = vld [vmem:[%s7155_s26 + $0x56c] ss:$56 sps:$4 sm:$0xff]  }
 0x1c2   : > { %2664 = vmatpush1.bf16.msra.mxu0 %v6395_v20  ;;  %v6485_v20 = vld [vmem:[%s7155_s26 + $0x8d0] ss:$56 sps:$4 sm:$0xff]  }
 0x1c3   : > { %2793 = vmatpush1.bf16.msra.mxu1 %v6398_v21  ;;  %2665 = vmatprep.subr.bf16.mxu0 %v6403_v22  ;;  %v6488_v21 = vld [vmem:[%s7155_s26 + $0x568] ss:$56 sps:$4 sm:$0xff]   ;;  %v6493_v22 = vld [vmem:[%s7155_s26 + $0x944] ss:$56 sps:$4 sm:$0xff]  }
 0x1c4   : > { %2794 = vmatprep.subr.bf16.mxu1 %v6406_v23  ;;  %v6496_v23 = vld [vmem:[%s7155_s26 + $0x5dc] ss:$56 sps:$4 sm:$0xff]  }
 0x1c6   : > { %2666 = vmatpush1.bf16.msra.mxu0 %v6401_v24  ;;  %v6491_v24 = vld [vmem:[%s7155_s26 + $0x940] ss:$56 sps:$4 sm:$0xff]  }
 0x1c7   : > { %2795 = vmatpush1.bf16.msra.mxu1 %v6404_v25  ;;  %2667 = vmatprep.subr.bf16.mxu0 %v6409_v26  ;;  %v6494_v25 = vld [vmem:[%s7155_s26 + $0x5d8] ss:$56 sps:$4 sm:$0xff]   ;;  %v6499_v26 = vld [vmem:[%s7155_s26 + $0x9b4] ss:$56 sps:$4 sm:$0xff]  }
 0x1c8   : > { %2796 = vmatprep.subr.bf16.mxu1 %v6412_v27  ;;  %v6502_v27 = vld [vmem:[%s7155_s26 + $0x64c] ss:$56 sps:$4 sm:$0xff]  }
 0x1ca   : > { %2668 = vmatpush1.bf16.msra.mxu0 %v6407_v28  ;;  %v6497_v28 = vld [vmem:[%s7155_s26 + $0x9b0] ss:$56 sps:$4 sm:$0xff]  }
 0x1cb   : > { %2797 = vmatpush1.bf16.msra.mxu1 %v6410_v29  ;;  %2669 = vmatprep.subr.bf16.mxu0 %v6415_v9  ;;  %v6500_v29 = vld [vmem:[%s7155_s26 + $0x648] ss:$56 sps:$4 sm:$0xff]   ;;  %v6505_v9 = vld [vmem:[%s7155_s26 + $0xa24] ss:$56 sps:$4 sm:$0xff]  }
 0x1cc   : > { %2911 = vmatprep.subr.bf16.mxu1 %v6418_v31  ;;  %v6508_v31 = vld [vmem:[%s7155_s26 + $0x6bc] ss:$56 sps:$4 sm:$0xff]  }
 0x1ce   : > { %2815 = vmatmul.mubr.bf16.vlgmr.msra.gmra.mrb[4].mxu1 %v7343_v30  ;;  %2670 = vmatpush1.bf16.msra.mxu0 %v6413_v62  ;;  %v6503_v62 = vld [vmem:[%s7155_s26 + $0xa20] ss:$56 sps:$4 sm:$0xff]  }
 0x1cf   : > { %2912 = vmatpush1.bf16.msra.mxu1 %v6416_v32  ;;  %2943 = vmatprep.mubr.bf16.mxu1 %v7295_v53  ;;  %v6506_v32 = vld [vmem:[%s7155_s26 + $0x6b8] ss:$56 sps:$4 sm:$0xff]  }
 0x1d0   : > { %2671 = vmatprep.subr.bf16.mxu0 %v6421_v33  ;;  %2913 = vmatprep.subr.bf16.mxu1 %v6424_v34  ;;  %v6511_v33 = vld [vmem:[%s7155_s26 + $0x24] ss:$56 sps:$4 sm:$0xff]  }
 0x1d1   : > { %v6514_v34 = vld [vmem:[%s7155_s26 + $0x72c] ss:$56 sps:$4 sm:$0xff]  }
 0x1d2   : > { %2672 = vmatpush1.bf16.msra.mxu0 %v6419_v35  ;;  %v6509_v35 = vld [vmem:[%s7155_s26 + $0x20] ss:$56 sps:$4 sm:$0xff]  }
 0x1d3   : > { %2914 = vmatpush1.bf16.msra.mxu1 %v6422_v36  ;;  %2673 = vmatprep.subr.bf16.mxu0 %v6427_v37  ;;  %v6512_v36 = vld [vmem:[%s7155_s26 + $0x728] ss:$56 sps:$4 sm:$0xff]   ;;  %v6517_v37 = vld [vmem:[%s7155_s26 + $0x94] ss:$56 sps:$4 sm:$0xff]  }
 0x1d4   : > { %2915 = vmatprep.subr.bf16.mxu1 %v6430_v38  ;;  %v6520_v38 = vld [vmem:[%s7155_s26 + $0x79c] ss:$56 sps:$4 sm:$0xff]  }
 0x1d6   : > { %2674 = vmatpush1.bf16.msra.mxu0 %v6425_v39  ;;  %v6515_v39 = vld [vmem:[%s7155_s26 + $0x90] ss:$56 sps:$4 sm:$0xff]  }
 0x1d7   : > { %2916 = vmatpush1.bf16.msra.mxu1 %v6428_v40  ;;  %2675 = vmatprep.subr.bf16.mxu0 %v6433_v41  ;;  %v6518_v40 = vld [vmem:[%s7155_s26 + $0x798] ss:$56 sps:$4 sm:$0xff]   ;;  %v6523_v41 = vld [vmem:[%s7155_s26 + $0x104] ss:$56 sps:$4 sm:$0xff]  }
 0x1d8   : > { %2917 = vmatprep.subr.bf16.mxu1 %v6436_v42  ;;  %v6526_v42 = vld [vmem:[%s7155_s26 + $0x80c] ss:$56 sps:$4 sm:$0xff]  }
 0x1da   : > { %2676 = vmatpush1.bf16.msra.mxu0 %v6431_v43  ;;  %v6521_v43 = vld [vmem:[%s7155_s26 + $0x100] ss:$56 sps:$4 sm:$0xff]  }
 0x1db   : > { %2918 = vmatpush1.bf16.msra.mxu1 %v6434_v44  ;;  %2677 = vmatprep.subr.bf16.mxu0 %v6439_v45  ;;  %v6524_v44 = vld [vmem:[%s7155_s26 + $0x808] ss:$56 sps:$4 sm:$0xff]   ;;  %v6529_v45 = vld [vmem:[%s7155_s26 + $0x174] ss:$56 sps:$4 sm:$0xff]  }
 0x1dc   : > { %2919 = vmatprep.subr.bf16.mxu1 %v6442_v46  ;;  %v6532_v46 = vld [vmem:[%s7155_s26 + $0x87c] ss:$56 sps:$4 sm:$0xff]  }
 0x1de   : > { %2678 = vmatpush1.bf16.msra.mxu0 %v6437_v47  ;;  %v6527_v47 = vld [vmem:[%s7155_s26 + $0x170] ss:$56 sps:$4 sm:$0xff]  }
 0x1df   : > { %2920 = vmatpush1.bf16.msra.mxu1 %v6440_v48  ;;  %2679 = vmatprep.subr.bf16.mxu0 %v6445_v49  ;;  %v6530_v48 = vld [vmem:[%s7155_s26 + $0x878] ss:$56 sps:$4 sm:$0xff]   ;;  %v6535_v49 = vld [vmem:[%s7155_s26 + $0x1e4] ss:$56 sps:$4 sm:$0xff]  }
 0x1e0   : > { %2921 = vmatprep.subr.bf16.mxu1 %v6448_v50  ;;  %v6538_v50 = vld [vmem:[%s7155_s26 + $0x8ec] ss:$56 sps:$4 sm:$0xff]  }
 0x1e2   : > { %2680 = vmatpush1.bf16.msra.mxu0 %v6443_v51  ;;  %v6533_v51 = vld [vmem:[%s7155_s26 + $0x1e0] ss:$56 sps:$4 sm:$0xff]  }
 0x1e3   : > { %2922 = vmatpush1.bf16.msra.mxu1 %v6446_v52  ;;  %2681 = vmatprep.subr.bf16.mxu0 %v6451_v54  ;;  %v6536_v52 = vld [vmem:[%s7155_s26 + $0x8e8] ss:$56 sps:$4 sm:$0xff]   ;;  %v6541_v54 = vld [vmem:[%s7155_s26 + $0x254] ss:$56 sps:$4 sm:$0xff]  }
 0x1e4   : > { %2923 = vmatprep.subr.bf16.mxu1 %v6454_v55  ;;  %v6544_v55 = vld [vmem:[%s7155_s26 + $0x95c] ss:$56 sps:$4 sm:$0xff]  }
 0x1e6   : > { %2682 = vmatpush1.bf16.msra.mxu0 %v6449_v57  ;;  %v6539_v57 = vld [vmem:[%s7155_s26 + $0x250] ss:$56 sps:$4 sm:$0xff]  }
 0x1e7   : > { %2924 = vmatpush1.bf16.msra.mxu1 %v6452_v58  ;;  %2683 = vmatprep.subr.bf16.mxu0 %v6457_v59  ;;  %v6542_v58 = vld [vmem:[%s7155_s26 + $0x958] ss:$56 sps:$4 sm:$0xff]   ;;  %v6547_v59 = vld [vmem:[%s7155_s26 + $0x2c4] ss:$56 sps:$4 sm:$0xff]  }
 0x1e8   : > { %2925 = vmatprep.subr.bf16.mxu1 %v6460_v60  ;;  %v6550_v60 = vld [vmem:[%s7155_s26 + $0x9cc] ss:$56 sps:$4 sm:$0xff]  }
 0x1ea   : > { %2684 = vmatpush1.bf16.msra.mxu0 %v6455_v61  ;;  %v6545_v61 = vld [vmem:[%s7155_s26 + $0x2c0] ss:$56 sps:$4 sm:$0xff]  }
 0x1eb   : > { %2926 = vmatpush1.bf16.msra.mxu1 %v6458_v63  ;;  %2696 = vmatprep.subr.bf16.mxu0 %v6463_v1  ;;  %v6548_v63 = vld [vmem:[%s7155_s26 + $0x9c8] ss:$56 sps:$4 sm:$0xff]   ;;  %v6553_v1 = vld [vmem:[%s7155_s26 + $0x334] ss:$56 sps:$4 sm:$0xff]  }
 0x1ec   : > { %2927 = vmatprep.subr.bf16.mxu1 %v6466_v2  ;;  %v6556_v2 = vld [vmem:[%s7155_s26 + $0xa3c] ss:$56 sps:$4 sm:$0xff]  }
 0x1ed   : > { %2686 = vmatmul.mubr.bf16.vlgmr.msra.gmra.mrb[8].mxu0 %v7299_v56 }
 0x1ee   : > { %2697 = vmatpush1.bf16.msra.mxu0 %v6461_v3  ;;  %2728 = vmatprep.mubr.bf16.mxu0 %v7048_v0  ;;  %v6551_v3 = vld [vmem:[%s7155_s26 + $0x330] ss:$56 sps:$4 sm:$0xff]  }
 0x1ef   : > { %2928 = vmatpush1.bf16.msra.mxu1 %v6464_v4  ;;  %2698 = vmatprep.subr.bf16.mxu0 %v6469_v5  ;;  %v6554_v4 = vld [vmem:[%s7155_s26 + $0xa38] ss:$56 sps:$4 sm:$0xff]   ;;  %v6559_v5 = vld [vmem:[%s7155_s26 + $0x3a4] ss:$56 sps:$4 sm:$0xff]  }
 0x1f0   : > { %2929 = vmatprep.subr.bf16.mxu1 %v6472_v6  ;;  %v6557_v6 = vld [vmem:[%s7155_s26 + $0x3a0] ss:$56 sps:$4 sm:$0xff]  }
 0x1f2   : > { %2699 = vmatpush1.bf16.msra.mxu0 %v6467_v7  ;;  %v6562_v7 = vld [vmem:[%s7155_s26 + $0x414] ss:$56 sps:$4 sm:$0xff]  }
 0x1f3   : > { %2930 = vmatpush1.bf16.msra.mxu1 %v6470_v8  ;;  %2700 = vmatprep.subr.bf16.mxu0 %v6475_v10  ;;  %v6560_v8 = vld [vmem:[%s7155_s26 + $0x410] ss:$56 sps:$4 sm:$0xff]   ;;  %v6565_v10 = vld [vmem:[%s7155_s26 + $0x484] ss:$56 sps:$4 sm:$0xff]  }
 0x1f4   : > { %2931 = vmatprep.subr.bf16.mxu1 %v6478_v11  ;;  %v6563_v11 = vld [vmem:[%s7155_s26 + $0x480] ss:$56 sps:$4 sm:$0xff]  }
 0x1f6   : > { %2701 = vmatpush1.bf16.msra.mxu0 %v6473_v12  ;;  %v6568_v12 = vld [vmem:[%s7155_s26 + $0x4f4] ss:$56 sps:$4 sm:$0xff]  }
 0x1f7   : > { %2932 = vmatpush1.bf16.msra.mxu1 %v6476_v13  ;;  %2702 = vmatprep.subr.bf16.mxu0 %v6481_v14  ;;  %v6566_v13 = vld [vmem:[%s7155_s26 + $0x4f0] ss:$56 sps:$4 sm:$0xff]   ;;  %v6571_v14 = vld [vmem:[%s7155_s26 + $0x564] ss:$56 sps:$4 sm:$0xff]  }
 0x1f8   : > { %2933 = vmatprep.subr.bf16.mxu1 %v6484_v15  ;;  %v6569_v15 = vld [vmem:[%s7155_s26 + $0x560] ss:$56 sps:$4 sm:$0xff]  }
 0x1fa   : > { %2703 = vmatpush1.bf16.msra.mxu0 %v6479_v16  ;;  %v6574_v16 = vld [vmem:[%s7155_s26 + $0x5d4] ss:$56 sps:$4 sm:$0xff]  }
 0x1fb   : > { %2934 = vmatpush1.bf16.msra.mxu1 %v6482_v17  ;;  %2704 = vmatprep.subr.bf16.mxu0 %v6487_v18  ;;  %v6572_v17 = vld [vmem:[%s7155_s26 + $0x5d0] ss:$56 sps:$4 sm:$0xff]   ;;  %v6577_v18 = vld [vmem:[%s7155_s26 + $0x644] ss:$56 sps:$4 sm:$0xff]  }
 0x1fc   : > { %2935 = vmatprep.subr.bf16.mxu1 %v6490_v19 }
 0x1fe   : > { %2705 = vmatpush1.bf16.msra.mxu0 %v6485_v20 }
 0x1ff   : > { %2936 = vmatpush1.bf16.msra.mxu1 %v6488_v21  ;;  %2706 = vmatprep.subr.bf16.mxu0 %v6493_v22  ;;  %v6575_v22 = vld [vmem:[%s7155_s26 + $0x640] ss:$56 sps:$4 sm:$0xff]  }
 0x200   : > { %2937 = vmatprep.subr.bf16.mxu1 %v6496_v23 }
 0x202   : > { %2707 = vmatpush1.bf16.msra.mxu0 %v6491_v24  ;;  %v6580_v24 = vld [vmem:[%s7155_s26 + $0x6b4] ss:$56 sps:$4 sm:$0xff]  }
 0x203   : > { %2938 = vmatpush1.bf16.msra.mxu1 %v6494_v25  ;;  %2708 = vmatprep.subr.bf16.mxu0 %v6499_v26  ;;  %v6578_v25 = vld [vmem:[%s7155_s26 + $0x6b0] ss:$56 sps:$4 sm:$0xff]   ;;  %v6583_v26 = vld [vmem:[%s7155_s26 + $0x724] ss:$56 sps:$4 sm:$0xff]  }
 0x204   : > { %2939 = vmatprep.subr.bf16.mxu1 %v6502_v27  ;;  %v6581_v27 = vld [vmem:[%s7155_s26 + $0x720] ss:$56 sps:$4 sm:$0xff]  }
 0x206   : > { %2709 = vmatpush1.bf16.msra.mxu0 %v6497_v28  ;;  %v6586_v28 = vld [vmem:[%s7155_s26 + $0x794] ss:$56 sps:$4 sm:$0xff]  }
 0x207   : > { %2940 = vmatpush1.bf16.msra.mxu1 %v6500_v29  ;;  %2710 = vmatprep.subr.bf16.mxu0 %v6505_v9  ;;  %v6584_v29 = vld [vmem:[%s7155_s26 + $0x790] ss:$56 sps:$4 sm:$0xff]   ;;  %v6589_v9 = vld [vmem:[%s7155_s26 + $0x804] ss:$56 sps:$4 sm:$0xff]  }
 0x208   : > { %2941 = vmatprep.subr.bf16.mxu1 %v6508_v31  ;;  %v6587_v31 = vld [vmem:[%s7155_s26 + $0x800] ss:$56 sps:$4 sm:$0xff]  }
 0x20a   : > { %2711 = vmatpush1.bf16.msra.mxu0 %v6503_v62  ;;  %v6592_v62 = vld [vmem:[%s7155_s26 + $0x874] ss:$56 sps:$4 sm:$0xff]  }
 0x20b   : > { %2942 = vmatpush1.bf16.msra.mxu1 %v6506_v32  ;;  %2825 = vmatprep.subr.bf16.mxu0 %v6511_v33  ;;  %v6590_v32 = vld [vmem:[%s7155_s26 + $0x870] ss:$56 sps:$4 sm:$0xff]   ;;  %v6595_v33 = vld [vmem:[%s7155_s26 + $0x8e4] ss:$56 sps:$4 sm:$0xff]  }
 0x20c   : > { %2954 = vmatprep.subr.bf16.mxu1 %v6514_v34  ;;  %v6593_v34 = vld [vmem:[%s7155_s26 + $0x8e0] ss:$56 sps:$4 sm:$0xff]  }
 0x20d   : > { %2729 = vmatmul.mubr.bf16.vlgmr.msra.gmra.mrb[8].mxu0 %v7343_v30 }
 0x20e   : > { %2944 = vmatmul.mubr.bf16.vlgmr.msra.gmra.mrb[8].mxu1 %v7299_v56  ;;  %2826 = vmatpush1.bf16.msra.mxu0 %v6509_v35  ;;  %v6598_v35 = vld [vmem:[%s7155_s26 + $0x954] ss:$56 sps:$4 sm:$0xff]  }
 0x20f   : > { %2857 = vmatprep.mubr.bf16.mxu0 %v7295_v53  ;;  %2955 = vmatpush1.bf16.msra.mxu1 %v6512_v36  ;;  %v6596_v36 = vld [vmem:[%s7155_s26 + $0x950] ss:$56 sps:$4 sm:$0xff]  }
 0x210   : > { %2827 = vmatprep.subr.bf16.mxu0 %v6517_v37  ;;  %2956 = vmatprep.subr.bf16.mxu1 %v6520_v38  ;;  %v6601_v37 = vld [vmem:[%s7155_s26 + $0x9c4] ss:$56 sps:$4 sm:$0xff]  }
 0x211   : > { %2986 = vmatprep.mubr.bf16.mxu1 %v7048_v0 }
 0x212   : > { %2828 = vmatpush1.bf16.msra.mxu0 %v6515_v39 }
 0x213   : > { %2957 = vmatpush1.bf16.msra.mxu1 %v6518_v40  ;;  %2829 = vmatprep.subr.bf16.mxu0 %v6523_v41  ;;  %v6599_v41 = vld [vmem:[%s7155_s26 + $0x9c0] ss:$56 sps:$4 sm:$0xff]  }
 0x214   : > { %2958 = vmatprep.subr.bf16.mxu1 %v6526_v42 }
 0x216   : > { %2830 = vmatpush1.bf16.msra.mxu0 %v6521_v43  ;;  %v6604_v43 = vld [vmem:[%s7155_s26 + $0xa34] ss:$56 sps:$4 sm:$0xff]  }
 0x217   : > { %2959 = vmatpush1.bf16.msra.mxu1 %v6524_v44  ;;  %2831 = vmatprep.subr.bf16.mxu0 %v6529_v45  ;;  %v6602_v44 = vld [vmem:[%s7155_s26 + $0xa30] ss:$56 sps:$4 sm:$0xff]   ;;  %v6607_v45 = vld [vmem:[%s7155_s26 + $0x34] ss:$56 sps:$4 sm:$0xff]  }
 0x218   : > { %2960 = vmatprep.subr.bf16.mxu1 %v6532_v46  ;;  %v6605_v46 = vld [vmem:[%s7155_s26 + $0x30] ss:$56 sps:$4 sm:$0xff]  }
 0x21a   : > { %2832 = vmatpush1.bf16.msra.mxu0 %v6527_v47  ;;  %v6610_v47 = vld [vmem:[%s7155_s26 + $0xa4] ss:$56 sps:$4 sm:$0xff]  }
 0x21b   : > { %2961 = vmatpush1.bf16.msra.mxu1 %v6530_v48  ;;  %2833 = vmatprep.subr.bf16.mxu0 %v6535_v49  ;;  %v6608_v48 = vld [vmem:[%s7155_s26 + $0xa0] ss:$56 sps:$4 sm:$0xff]   ;;  %v6613_v49 = vld [vmem:[%s7155_s26 + $0x114] ss:$56 sps:$4 sm:$0xff]  }
 0x21c   : > { %2962 = vmatprep.subr.bf16.mxu1 %v6538_v50  ;;  %v6611_v50 = vld [vmem:[%s7155_s26 + $0x110] ss:$56 sps:$4 sm:$0xff]  }
 0x21e   : > { %2834 = vmatpush1.bf16.msra.mxu0 %v6533_v51  ;;  %v6616_v51 = vld [vmem:[%s7155_s26 + $0x184] ss:$56 sps:$4 sm:$0xff]  }
 0x21f   : > { %2963 = vmatpush1.bf16.msra.mxu1 %v6536_v52  ;;  %2835 = vmatprep.subr.bf16.mxu0 %v6541_v54  ;;  %v6614_v52 = vld [vmem:[%s7155_s26 + $0x180] ss:$56 sps:$4 sm:$0xff]   ;;  %v6619_v54 = vld [vmem:[%s7155_s26 + $0x1f4] ss:$56 sps:$4 sm:$0xff]  }
 0x220   : > { %2964 = vmatprep.subr.bf16.mxu1 %v6544_v55  ;;  %v6617_v55 = vld [vmem:[%s7155_s26 + $0x1f0] ss:$56 sps:$4 sm:$0xff]  }
 0x222   : > { %2836 = vmatpush1.bf16.msra.mxu0 %v6539_v57  ;;  %v6622_v57 = vld [vmem:[%s7155_s26 + $0x264] ss:$56 sps:$4 sm:$0xff]  }
 0x223   : > { %2965 = vmatpush1.bf16.msra.mxu1 %v6542_v58  ;;  %2837 = vmatprep.subr.bf16.mxu0 %v6547_v59  ;;  %v6625_v58 = vld [vmem:[%s7155_s26 + $0x2d4] ss:$56 sps:$4 sm:$0xff]  }
 0x224   : > { %2966 = vmatprep.subr.bf16.mxu1 %v6550_v60 }
 0x226   : > { %2838 = vmatpush1.bf16.msra.mxu0 %v6545_v61 }
 0x227   : > { %2967 = vmatpush1.bf16.msra.mxu1 %v6548_v63  ;;  %2839 = vmatprep.subr.bf16.mxu0 %v6553_v1 }
 0x228   : > { %2968 = vmatprep.subr.bf16.mxu1 %v6556_v2  ;;  %v6623_v2 = vld [vmem:[%s7155_s26 + $0x2d0] ss:$56 sps:$4 sm:$0xff]  }
 0x22a   : > { %2840 = vmatpush1.bf16.msra.mxu0 %v6551_v3 }
 0x22b   : > { %2969 = vmatpush1.bf16.msra.mxu1 %v6554_v4  ;;  %2841 = vmatprep.subr.bf16.mxu0 %v6559_v5  ;;  %v6628_v5 = vld [vmem:[%s7155_s26 + $0x344] ss:$56 sps:$4 sm:$0xff]  }
 0x22e   : > { %2987 = vmatmul.mubr.bf16.vlgmr.msra.gmra.mrb[8].mxu1 %v7343_v30  ;;  %2842 = vmatpush1.bf16.msra.mxu0 %v6557_v6 }
 0x22f   : > { %2843 = vmatprep.subr.bf16.mxu0 %v6562_v7  ;;  %v6626_v7 = vld [vmem:[%s7155_s26 + $0x340] ss:$56 sps:$4 sm:$0xff]  }
 0x232   : > { %2844 = vmatpush1.bf16.msra.mxu0 %v6560_v8  ;;  %v6631_v8 = vld [vmem:[%s7155_s26 + $0x3b4] ss:$56 sps:$4 sm:$0xff]  }
 0x233   : > { %2845 = vmatprep.subr.bf16.mxu0 %v6565_v10  ;;  %v6629_v10 = vld [vmem:[%s7155_s26 + $0x3b0] ss:$56 sps:$4 sm:$0xff]  }
 0x236   : > { %2846 = vmatpush1.bf16.msra.mxu0 %v6563_v11  ;;  %v6634_v11 = vld [vmem:[%s7155_s26 + $0x424] ss:$56 sps:$4 sm:$0xff]  }
 0x237   : > { %2847 = vmatprep.subr.bf16.mxu0 %v6568_v12  ;;  %v6632_v12 = vld [vmem:[%s7155_s26 + $0x420] ss:$56 sps:$4 sm:$0xff]  }
 0x23a   : > { %2848 = vmatpush1.bf16.msra.mxu0 %v6566_v13  ;;  %v6637_v13 = vld [vmem:[%s7155_s26 + $0x494] ss:$56 sps:$4 sm:$0xff]  }
 0x23b   : > { %2849 = vmatprep.subr.bf16.mxu0 %v6571_v14  ;;  %v6635_v14 = vld [vmem:[%s7155_s26 + $0x490] ss:$56 sps:$4 sm:$0xff]  }
 0x23e   : > { %2850 = vmatpush1.bf16.msra.mxu0 %v6569_v15  ;;  %v6640_v15 = vld [vmem:[%s7155_s26 + $0x504] ss:$56 sps:$4 sm:$0xff]  }
 0x23f   : > { %2851 = vmatprep.subr.bf16.mxu0 %v6574_v16  ;;  %v6638_v16 = vld [vmem:[%s7155_s26 + $0x500] ss:$56 sps:$4 sm:$0xff]  }
 0x240   : > { %v7529_v19 = vpop.f32.mrb[0].mxu1 }
 0x241   : > { %v7531_v20 = vpop.f32.mrb[1].mxu1 }
 0x242   : > { %2852 = vmatpush1.bf16.msra.mxu0 %v6572_v17  ;;  %v7533_v21 = vpop.f32.mrb[2].mxu1  ;;  %v6643_v17 = vld [vmem:[%s7155_s26 + $0x574] ss:$56 sps:$4 sm:$0xff]  }
 0x243   : > { %v7536_v23 = vpop.f32.mrb[3].mxu1  ;;  %2853 = vmatprep.subr.bf16.mxu0 %v6577_v18  ;;  %v6641_v18 = vld [vmem:[%s7155_s26 + $0x570] ss:$56 sps:$4 sm:$0xff]  }
 0x246   : > { %2854 = vmatpush1.bf16.msra.mxu0 %v6575_v22 }
 0x247   : > { %2855 = vmatprep.subr.bf16.mxu0 %v6580_v24 }
 0x24a   : > { %2856 = vmatpush1.bf16.msra.mxu0 %v6578_v25  ;;  %v6647_v25 = vld [vmem:[%s7155_s26 + $0x650] ss:$56 sps:$4 sm:$0xff]  }
 0x24b   : > { %2868 = vmatprep.subr.bf16.mxu0 %v6583_v26 }
 0x24d   : > { %2858 = vmatmul.mubr.bf16.vlgmr.msra.gmra.mrb[12].mxu0 %v7299_v56 }
 0x24e   : > { %2869 = vmatpush1.bf16.msra.mxu0 %v6581_v27  ;;  %2900 = vmatprep.mubr.bf16.mxu0 %v7048_v0 }
 0x24f   : > { %2870 = vmatprep.subr.bf16.mxu0 %v6586_v28  ;;  %v6652_v28 = vld [vmem:[%s7155_s26 + $0x6c4] ss:$56 sps:$4 sm:$0xff]  }
 0x252   : > { %2871 = vmatpush1.bf16.msra.mxu0 %v6584_v29 }
 0x253   : > { %2872 = vmatprep.subr.bf16.mxu0 %v6589_v9 }
 0x256   : > { %2873 = vmatpush1.bf16.msra.mxu0 %v6587_v31 }
 0x257   : > { %2874 = vmatprep.subr.bf16.mxu0 %v6592_v62 }
 0x25a   : > { %2875 = vmatpush1.bf16.msra.mxu0 %v6590_v32 }
 0x25b   : > { %2876 = vmatprep.subr.bf16.mxu0 %v6595_v33 }
 0x25e   : > { %2877 = vmatpush1.bf16.msra.mxu0 %v6593_v34  ;;  %v6650_v34 = vld [vmem:[%s7155_s26 + $0x6c0] ss:$56 sps:$4 sm:$0xff]  }
 0x25f   : > { %2878 = vmatprep.subr.bf16.mxu0 %v6598_v35 }
 0x260   : > { %v7555_v38 = vpop.f32.mrb[0].mxu0 }
 0x261   : > { %v7557_v39 = vpop.f32.mrb[1].mxu0 }
 0x262   : > { %v7559_v40 = vpop.f32.mrb[2].mxu0  ;;  %2879 = vmatpush1.bf16.msra.mxu0 %v6596_v36 }
 0x263   : > { %v7562_v42 = vpop.f32.mrb[3].mxu0  ;;  %2880 = vmatprep.subr.bf16.mxu0 %v6601_v37  ;;  %v6655_v37 = vld [vmem:[%s7155_s26 + $0x734] ss:$56 sps:$4 sm:$0xff]  }
 0x266   : > { %2881 = vmatpush1.bf16.msra.mxu0 %v6599_v41 }
 0x267   : > { %2882 = vmatprep.subr.bf16.mxu0 %v6604_v43 }
 0x26a   : > { %2883 = vmatpush1.bf16.msra.mxu0 %v6602_v44 }
 0x26b   : > { %2997 = vmatprep.subr.bf16.mxu0 %v6607_v45 }
 0x26d   : > { %2901 = vmatmul.mubr.bf16.vlgmr.msra.gmra.mrb[12].mxu0 %v7343_v30 }
 0x26e   : > { %2998 = vmatpush1.bf16.msra.mxu0 %v6605_v46  ;;  %3029 = vmatprep.mubr.bf16.mxu0 %v7295_v53  ;;  %v6620_v53 = vld [vmem:[%s7155_s26 + $0x260] ss:$56 sps:$4 sm:$0xff]  }
 0x26f   : > { %2999 = vmatprep.subr.bf16.mxu0 %v6610_v47  ;;  %v6653_v47 = vld [vmem:[%s7155_s26 + $0x730] ss:$56 sps:$4 sm:$0xff]  }
 0x272   : > { %3000 = vmatpush1.bf16.msra.mxu0 %v6608_v48 }
 0x273   : > { %3001 = vmatprep.subr.bf16.mxu0 %v6613_v49  ;;  %v6658_v49 = vld [vmem:[%s7155_s26 + $0x7a4] ss:$56 sps:$4 sm:$0xff]  }
 0x276   : > { %3002 = vmatpush1.bf16.msra.mxu0 %v6611_v50 }
 0x277   : > { %3003 = vmatprep.subr.bf16.mxu0 %v6616_v51  ;;  %v6656_v51 = vld [vmem:[%s7155_s26 + $0x7a0] ss:$56 sps:$4 sm:$0xff]  }
 0x27a   : > { %3004 = vmatpush1.bf16.msra.mxu0 %v6614_v52  ;;  %v6661_v52 = vld [vmem:[%s7155_s26 + $0x814] ss:$56 sps:$4 sm:$0xff]  }
 0x27b   : > { %3005 = vmatprep.subr.bf16.mxu0 %v6619_v54 }
 0x27e   : > { %3006 = vmatpush1.bf16.msra.mxu0 %v6617_v55 }
 0x27f   : > { %3007 = vmatprep.subr.bf16.mxu0 %v6622_v57  ;;  %v6659_v57 = vld [vmem:[%s7155_s26 + $0x810] ss:$56 sps:$4 sm:$0xff]  }
 0x280   : > { %v2644_v59 = vpop.f32.mrb[4].mxu0 }
 0x281   : > { %v7582_v60 = vadd.f32 %v2644_v59, %v7529_v19  ;;  %v2646_v61 = vpop.f32.mrb[5].mxu0  ;;  %v6646_v19 = vld [vmem:[%s7155_s26 + $0x5e4] ss:$56 sps:$4 sm:$0xff]  }
 0x282   : > { %v7585_v63 = vadd.f32 %v2646_v61, %v7531_v20  ;;  %v2648_v1 = vpop.f32.mrb[6].mxu0  ;;  %3008 = vmatpush1.bf16.msra.mxu0 %v6620_v53  ;;  %v6644_v20 = vld [vmem:[%s7155_s26 + $0x5e0] ss:$56 sps:$4 sm:$0xff]   ;;  %v6664_v53 = vld [vmem:[%s7155_s26 + $0x884] ss:$56 sps:$4 sm:$0xff]  }
 0x283   : > { %v7589_v3 = vadd.f32 %v2648_v1, %v7533_v21  ;;  %v2650_v4 = vpop.f32.mrb[7].mxu0  ;;  %3009 = vmatprep.subr.bf16.mxu0 %v6625_v58  ;;  %v6649_v21 = vld [vmem:[%s7155_s26 + $0x654] ss:$56 sps:$4 sm:$0xff]  }
 0x284   : > { %v7593_v6 = vadd.f32 %v2650_v4, %v7536_v23 }
 0x286   : > { %3010 = vmatpush1.bf16.msra.mxu0 %v6623_v2 }
 0x287   : > { %3011 = vmatprep.subr.bf16.mxu0 %v6628_v5 }
 0x28a   : > { %3012 = vmatpush1.bf16.msra.mxu0 %v6626_v7  ;;  %v6662_v7 = vld [vmem:[%s7155_s26 + $0x880] ss:$56 sps:$4 sm:$0xff]  }
 0x28b   : > { %3013 = vmatprep.subr.bf16.mxu0 %v6631_v8 }
 0x28e   : > { %3014 = vmatpush1.bf16.msra.mxu0 %v6629_v10  ;;  %v6667_v10 = vld [vmem:[%s7155_s26 + $0x8f4] ss:$56 sps:$4 sm:$0xff]  }
 0x28f   : > { %3015 = vmatprep.subr.bf16.mxu0 %v6634_v11 }
 0x292   : > { %3016 = vmatpush1.bf16.msra.mxu0 %v6632_v12 }
 0x293   : > { %3017 = vmatprep.subr.bf16.mxu0 %v6637_v13 }
 0x296   : > { %3018 = vmatpush1.bf16.msra.mxu0 %v6635_v14 }
 0x297   : > { %3019 = vmatprep.subr.bf16.mxu0 %v6640_v15 }
 0x29a   : > { %3020 = vmatpush1.bf16.msra.mxu0 %v6638_v16 }
 0x29b   : > { %3021 = vmatprep.subr.bf16.mxu0 %v6643_v17 }
 0x29e   : > { %3022 = vmatpush1.bf16.msra.mxu0 %v6641_v18 }
 0x29f   : > { %3023 = vmatprep.subr.bf16.mxu0 %v6646_v19 }
 0x2a1   : > { %v7609_v22 = vpop.f32.mrb[4].mxu1 }
 0x2a2   : > { %v7612_v23 = vmul.f32 0.70710677, %v7609_v22  ;;  %v7614_v24 = vpop.f32.mrb[5].mxu1  ;;  %3024 = vmatpush1.bf16.msra.mxu0 %v6644_v20 }
 0x2a3   : > { %v7618_v26 = vmul.f32 0.70710677, %v7614_v24  ;;  %v7620_v27 = vpop.f32.mrb[6].mxu1  ;;  %3025 = vmatprep.subr.bf16.mxu0 %v6649_v21  ;;  %v6665_v21 = vld [vmem:[%s7155_s26 + $0x8f0] ss:$56 sps:$4 sm:$0xff]  }
 0x2a4   : > { %v3107_v29 = vand.u32 2147483647, %v7612_v23  ;;  %v7625_v9 = vmul.f32 0.70710677, %v7620_v27  ;;  %v7628_v62 = vpop.f32.mrb[7].mxu1  ;;  %vm3347_vm0 = vcmp.lt.f32.partialorder %v7612_v23, 0.0 }
 0x2a5   : > { %v3108_v31 = vand.u32 2147483647, %v7618_v26  ;;  %v7633_v36 = vmul.f32 0.70710677, %v7628_v62  ;;  %vm3348_vm1 = vcmp.lt.f32.partialorder %v7618_v26, 0.0 }
 0x2a6   : > { %v3119_v32 = vmul.f32 0.3275911, %v3107_v29  ;;  %v3113_v33 = vand.u32 2147483647, %v7625_v9  ;;  %3026 = vmatpush1.bf16.msra.mxu0 %v6647_v25  ;;  %v3275_v54 = vsub.f32 0.0, %v3107_v29  ;;  %vm3353_vm2 = vcmp.lt.f32.partialorder %v7625_v9, 0.0 }
 0x2a7   : > { %v3120_v35 = vmul.f32 0.3275911, %v3108_v31  ;;  %3027 = vmatprep.subr.bf16.mxu0 %v6652_v28  ;;  %v3114_v45 = vand.u32 2147483647, %v7633_v36  ;;  %v3276_v55 = vsub.f32 0.0, %v3108_v31  ;;  %vm3354_vm3 = vcmp.lt.f32.partialorder %v7633_v36, 0.0 }
 0x2a8   : > { %v3131_v41 = vadd.f32 1.0, %v3119_v32  ;;  %v3125_v43 = vmul.f32 0.3275911, %v3113_v33  ;;  %v3287_v59 = vmul.f32 %v3275_v54, %v3107_v29  ;;  %v3281_v61 = vsub.f32 0.0, %v3113_v33  ;;  %v6670_v25 = vld [vmem:[%s7155_s26 + $0x964] ss:$56 sps:$4 sm:$0xff]  }
 0x2a9   : > { %v3132_v44 = vadd.f32 1.0, %v3120_v35  ;;  %v3126_v48 = vmul.f32 0.3275911, %v3114_v45  ;;  %v3288_v2 = vmul.f32 %v3276_v55, %v3108_v31  ;;  %v3282_v5 = vsub.f32 0.0, %v3114_v45  ;;  %v6671_v55 = vld [vmem:[%s7155_s26 + $0x9d0] ss:$56 sps:$4 sm:$0xff]  }
 0x2aa   : > { %6873 = vrcp.f32 %v3131_v41  ;;  %v3137_v46 = vadd.f32 1.0, %v3125_v43  ;;  %3028 = vmatpush1.bf16.msra.mxu0 %v6650_v34  ;;  %v3299_v12 = vmul.f32 1.442695, %v3287_v59  ;;  %v3293_v14 = vmul.f32 %v3281_v61, %v3113_v33  ;;  %v6676_v61 = vld [vmem:[%s7155_s26 + $0xa44] ss:$56 sps:$4 sm:$0xff]  }
 0x2ab   : > { %6875 = vrcp.f32 %v3132_v44  ;;  %3040 = vmatprep.subr.bf16.mxu0 %v6655_v37  ;;  %v3138_v50 = vadd.f32 1.0, %v3126_v48  ;;  %v3301_v16 = vmul.f32 1.442695, %v3288_v2  ;;  %v3294_v20 = vmul.f32 %v3282_v5, %v3114_v45  ;;  %v6668_v44 = vld [vmem:[%s7155_s26 + $0x960] ss:$56 sps:$4 sm:$0xff]  }
 0x2ac   : > { %6877 = vrcp.f32 %v3137_v46  ;;  %v3311_v34 = vmul.f32 1.442695, %v3293_v14  ;;  %v6673_v48 = vld [vmem:[%s7155_s26 + $0x9d4] ss:$56 sps:$4 sm:$0xff]  }
 0x2ad   : > { %3030 = vmatmul.mubr.bf16.vlgmr.msra.gmra.mrb[16].mxu0 %v7299_v56  ;;  %6879 = vrcp.f32 %v3138_v50  ;;  %v3313_v43 = vmul.f32 1.442695, %v3294_v20 }
 0x2ae   : > { %3041 = vmatpush1.bf16.msra.mxu0 %v6653_v47  ;;  %3072 = vmatprep.mubr.bf16.mxu0 %v7048_v0  ;;  %6881 = vpow2.f32 %v3299_v12 }
 0x2af   : > { %3042 = vmatprep.subr.bf16.mxu0 %v6658_v49  ;;  %6883 = vpow2.f32 %v3301_v16 }
 0x2b0   : > { %6885 = vpow2.f32 %v3311_v34 }
 0x2b1   : > { %6887 = vpow2.f32 %v3313_v43 }
 0x2b2   : > { %3043 = vmatpush1.bf16.msra.mxu0 %v6656_v51 }
 0x2b3   : > { %3044 = vmatprep.subr.bf16.mxu0 %v6661_v52 }
 0x2b4   : > { %v6874_v58 = vpop.eup %6873 }
 0x2b5   : > { %v6876_v56 = vpop.eup %6875  ;;  %v3167_v1 = vmul.f32 1.0614054, %v6874_v58 }
 0x2b6   : > { %v3168_v4 = vmul.f32 1.0614054, %v6876_v56  ;;  %3045 = vmatpush1.bf16.msra.mxu0 %v6659_v57  ;;  %v6878_v11 = vpop.eup %6877 }
 0x2b7   : > { %v3179_v8 = vadd.f32 -1.4531521, %v3167_v1  ;;  %3046 = vmatprep.subr.bf16.mxu0 %v6664_v53  ;;  %v3173_v17 = vmul.f32 1.0614054, %v6878_v11  ;;  %v6880_v18 = vpop.eup %6879 }
 0x2b8   : > { %v3180_v13 = vadd.f32 -1.4531521, %v3168_v4  ;;  %v3174_v31 = vmul.f32 1.0614054, %v6880_v18 }
 0x2b9   : > { %v3191_v15 = vmul.f32 %v6874_v58, %v3179_v8  ;;  %v3185_v29 = vadd.f32 -1.4531521, %v3173_v17 }
 0x2ba   : > { %v3192_v19 = vmul.f32 %v6876_v56, %v3180_v13  ;;  %3047 = vmatpush1.bf16.msra.mxu0 %v6662_v7  ;;  %v3186_v37 = vadd.f32 -1.4531521, %v3174_v31  ;;  %v6882_v7 = vpop.eup %6881 }
 0x2bb   : > { %v3203_v28 = vadd.f32 1.4214138, %v3191_v15  ;;  %3048 = vmatprep.subr.bf16.mxu0 %v6667_v10  ;;  %v3197_v33 = vmul.f32 %v6878_v11, %v3185_v29  ;;  %v6674_v10 = vld [vmem:[%s7155_s26 + $0xa40] ss:$56 sps:$4 sm:$0xff]   ;;  %v6884_v12 = vpop.eup %6883  ;;  %s3419_s26 = sld [smem:[#allocation3 + %s7037_s30]] }
 0x2bc   : > { %v3204_v32 = vadd.f32 1.4214138, %v3192_v19  ;;  %v3198_v47 = vmul.f32 %v6880_v18, %v3186_v37 }
 0x2bd   : > { %v3215_v35 = vmul.f32 %v6874_v58, %v3203_v28  ;;  %v3209_v46 = vadd.f32 1.4214138, %v3197_v33 }
 0x2be   : > { %v3216_v41 = vmul.f32 %v6876_v56, %v3204_v32  ;;  %3049 = vmatpush1.bf16.msra.mxu0 %v6665_v21  ;;  %v3210_v52 = vadd.f32 1.4214138, %v3198_v47  ;;  %v6886_v21 = vpop.eup %6885 }
 0x2bf   : > { %v3227_v45 = vadd.f32 -0.28449672, %v3215_v35  ;;  %3050 = vmatprep.subr.bf16.mxu0 %v6670_v25  ;;  %v3221_v51 = vmul.f32 %v6878_v11, %v3209_v46  ;;  %v6888_v31 = vpop.eup %6887 }
 0x2c0   : > { %v3228_v49 = vadd.f32 -0.28449672, %v3216_v41  ;;  %v3222_v59 = vmul.f32 %v6880_v18, %v3210_v52  ;;  %v3084_v41 = vmul.f32 0.5, %v7614_v24 }
 0x2c1   : > { %v3239_v50 = vmul.f32 %v6874_v58, %v3227_v45  ;;  %v3233_v53 = vadd.f32 -0.28449672, %v3221_v51 }
 0x2c2   : > { %v3240_v54 = vmul.f32 %v6876_v56, %v3228_v49  ;;  %3051 = vmatpush1.bf16.msra.mxu0 %v6668_v44  ;;  %v3234_v5 = vadd.f32 -0.28449672, %v3222_v59 }
 0x2c3   : > { %v3251_v57 = vadd.f32 0.2548296, %v3239_v50  ;;  %3052 = vmatprep.subr.bf16.mxu0 %v6673_v48  ;;  %v3245_v4 = vmul.f32 %v6878_v11, %v3233_v53  ;;  %v3089_v48 = vmul.f32 0.5, %v7620_v27  ;;  %v3090_v50 = vmul.f32 0.5, %v7628_v62 }
 0x2c4   : > { %v3252_v1 = vadd.f32 0.2548296, %v3240_v54  ;;  %v3246_v15 = vmul.f32 %v6880_v18, %v3234_v5 }
 0x2c5   : > { %v3263_v2 = vmul.f32 %v6874_v58, %v3251_v57  ;;  %v3257_v14 = vadd.f32 0.2548296, %v3245_v4 }
 0x2c6   : > { %v3264_v8 = vmul.f32 %v6876_v56, %v3252_v1  ;;  %3053 = vmatpush1.bf16.msra.mxu0 %v6671_v55  ;;  %v3258_v20 = vadd.f32 0.2548296, %v3246_v15 }
 0x2c7   : > { %v3323_v13 = vmul.f32 %v6882_v7, %v3263_v2  ;;  %3054 = vmatprep.subr.bf16.mxu0 %v6676_v61  ;;  %v3269_v19 = vmul.f32 %v6878_v11, %v3257_v14  ;;  %v3083_v11 = vmul.f32 0.5, %v7609_v22 }
 0x2c8   : > { %v3324_v16 = vmul.f32 %v6884_v12, %v3264_v8  ;;  %v3270_v29 = vmul.f32 %v6880_v18, %v3258_v20 }
 0x2c9   : > { %v3335_v17 = vsub.f32 1.0, %v3323_v13  ;;  %v3329_v58 = vmul.f32 %v6886_v21, %v3269_v19 }
 0x2ca   : > { %v3336_v25 = vsub.f32 1.0, %v3324_v16  ;;  %3055 = vmatpush1.bf16.msra.mxu0 %v6674_v10  ;;  %v3330_v35 = vmul.f32 %v6888_v31, %v3270_v29 }
 0x2cb   : > { %v3359_v28 = vsub.f32 0.0, %v3335_v17  ;;  %v3341_v34 = vsub.f32 1.0, %v3329_v58 }
 0x2cc   : > { %v3360_v56 = vsub.f32 0.0, %v3336_v25  ;;  %v3342_v18 = vsub.f32 1.0, %v3330_v35 }
 0x2cd   : > { %v3371_v32 = vsel %vm3347_vm0, %v3359_v28, %v3335_v17  ;;  %3073 = vmatmul.mubr.bf16.vlgmr.msra.gmra.mrb[16].mxu0 %v7343_v30  ;;  %v3365_v44 = vsub.f32 0.0, %v3341_v34  ;;  %vm7052_vm0 = vmmov (!%p5884_p3), 0  }
 0x2ce   : > { %v3383_v33 = vadd.f32 1.0, %v3371_v32  ;;  %v3372_v37 = vsel %vm3348_vm1, %v3360_v56, %v3336_v25  ;;  %v3366_v47 = vsub.f32 0.0, %v3342_v18 }
 0x2cf   : > { %v3384_v43 = vadd.f32 1.0, %v3372_v37  ;;  %v3377_v46 = vsel %vm3353_vm2, %v3365_v44, %v3341_v34 }
 0x2d0   : > { %v3395_v45 = vmul.f32 %v3383_v33, %v3083_v11  ;;  %v3389_v30 = vadd.f32 1.0, %v3377_v46  ;;  %v3378_v49 = vsel %vm3354_vm3, %v3366_v47, %v3342_v18 }
 0x2d1   : > { %v3396_v23 = vmul.f32 %v3384_v43, %v3084_v41  ;;  %v3390_v51 = vadd.f32 1.0, %v3378_v49 }
 0x2d2   : > { %v3407_v26 = vmul.f32 %v3395_v45, %v7555_v38  ;;  %v3401_v24 = vmul.f32 %v3389_v30, %v3089_v48 }
 0x2d3   : > { %v3408_v22 = vmul.f32 %v3396_v23, %v7557_v39  ;;  %v3402_v9 = vmul.f32 %v3390_v51, %v3090_v50 }
 0x2d4   : > { %v3413_v52 = vmul.f32 %v3401_v24, %v7559_v40 }
 0x2d5   : > { %v3414_v54 = vmul.f32 %v3402_v9, %v7562_v42 }
 0x2d6   : > { %v7667_v55 = vpack.c.bf16 %v3413_v52, %v3407_v26 }
 0x2d7   : > { %v7669_v38 = vpack.c.bf16 %v3414_v54, %v3408_v22 }
 0x2e0   : > { %v7671_v27 = vpop.f32.mrb[8].mxu0 }
 0x2e1   : > { %v7673_v57 = vpop.f32.mrb[9].mxu0 }
 0x2e2   : > { %v7675_v36 = vpop.f32.mrb[10].mxu0 }
 0x2e3   : > { %v7677_v39 = vpop.f32.mrb[11].mxu0 }
 0x301   : > { %v7679_v53 = vpop.f32.mrb[8].mxu1 }
 0x302   : > { %v7682_v62 = vmul.f32 0.70710677, %v7679_v53  ;;  %v7684_v40 = vpop.f32.mrb[9].mxu1 }
 0x303   : > { %v7687_v42 = vmul.f32 0.70710677, %v7684_v40  ;;  %v7689_v59 = vpop.f32.mrb[10].mxu1 }
 0x304   : > { %v3111_v61 = vand.u32 2147483647, %v7682_v62  ;;  %v7693_v1 = vmul.f32 0.70710677, %v7689_v59  ;;  %v7696_v4 = vpop.f32.mrb[11].mxu1  ;;  %vm3351_vm5 = vcmp.lt.f32.partialorder %v7682_v62, 0.0 }
 0x305   : > { %v3112_v2 = vand.u32 2147483647, %v7687_v42  ;;  %v7700_v10 = vmul.f32 0.70710677, %v7696_v4  ;;  %vm3352_vm6 = vcmp.lt.f32.partialorder %v7687_v42, 0.0  ;;  %v3093_v42 = vmul.f32 0.5, %v7689_v59 }
 0x306   : > { %v3123_v5 = vmul.f32 0.3275911, %v3111_v61  ;;  %v3117_v7 = vand.u32 2147483647, %v7693_v1  ;;  %v3279_v20 = vsub.f32 0.0, %v3111_v61  ;;  %vm3357_vm7 = vcmp.lt.f32.partialorder %v7693_v1, 0.0 }
 0x307   : > { %v3124_v8 = vmul.f32 0.3275911, %v3112_v2  ;;  %v3118_v15 = vand.u32 2147483647, %v7700_v10  ;;  %v3280_v21 = vsub.f32 0.0, %v3112_v2  ;;  %vm3358_vm8 = vcmp.lt.f32.partialorder %v7700_v10, 0.0 }
 0x308   : > { %v3135_v12 = vadd.f32 1.0, %v3123_v5  ;;  %v3129_v13 = vmul.f32 0.3275911, %v3117_v7  ;;  %v3291_v28 = vmul.f32 %v3279_v20, %v3111_v61  ;;  %v3285_v58 = vsub.f32 0.0, %v3117_v7 }
 0x309   : > { %v3136_v14 = vadd.f32 1.0, %v3124_v8  ;;  %v3130_v17 = vmul.f32 0.3275911, %v3118_v15  ;;  %v3292_v56 = vmul.f32 %v3280_v21, %v3112_v2  ;;  %v3286_v34 = vsub.f32 0.0, %v3118_v15 }
 0x30a   : > { %6889 = vrcp.f32 %v3135_v12  ;;  %v3141_v16 = vadd.f32 1.0, %v3129_v13  ;;  %v3307_v33 = vmul.f32 1.442695, %v3291_v28  ;;  %v3297_v41 = vmul.f32 %v3285_v58, %v3117_v7 }
 0x30b   : > { %6891 = vrcp.f32 %v3136_v14  ;;  %v3142_v19 = vadd.f32 1.0, %v3130_v17  ;;  %v3309_v44 = vmul.f32 1.442695, %v3292_v56  ;;  %v3298_v46 = vmul.f32 %v3286_v34, %v3118_v15 }
 0x30c   : > { %6893 = vrcp.f32 %v3141_v16  ;;  %v3319_v22 = vmul.f32 1.442695, %v3297_v41  ;;  %v7049_v21 = vmov 0.0  }
 0x30d   : > { %6895 = vrcp.f32 %v3142_v19  ;;  %v3321_v52 = vmul.f32 1.442695, %v3298_v46  ;;  %6010 = vmatprep.subr.bf16.mxu1 %v7049_v21  ;;  %6012 = vmatprep.mubr.msk.bf16.mxu1 %vm7050_vm4, %v7049_v21 }
 0x30e   : > { %6897 = vpow2.f32 %v3307_v33 }
 0x30f   : > { %6899 = vpow2.f32 %v3309_v44 }
 0x310   : > { %6901 = vpow2.f32 %v3319_v22 }
 0x311   : > { %6903 = vpow2.f32 %v3321_v52 }
 0x314   : > { %v6890_v25 = vpop.eup %6889 }
 0x315   : > { %v6892_v29 = vpop.eup %6891  ;;  %v3171_v31 = vmul.f32 1.0614054, %v6890_v25 }
 0x316   : > { %v3172_v32 = vmul.f32 1.0614054, %v6892_v29  ;;  %v6894_v11 = vpop.eup %6893 }
 0x317   : > { %v3183_v35 = vadd.f32 -1.4531521, %v3171_v31  ;;  %v3177_v18 = vmul.f32 1.0614054, %v6894_v11  ;;  %v6896_v45 = vpop.eup %6895 }
 0x318   : > { %v3184_v37 = vadd.f32 -1.4531521, %v3172_v32  ;;  %v3178_v48 = vmul.f32 1.0614054, %v6896_v45  ;;  %v6898_v28 = vpop.eup %6897 }
 0x319   : > { %v3195_v43 = vmul.f32 %v6890_v25, %v3183_v35  ;;  %v3189_v26 = vadd.f32 -1.4531521, %v3177_v18  ;;  %v6900_v31 = vpop.eup %6899 }
 0x31a   : > { %v3196_v23 = vmul.f32 %v6892_v29, %v3184_v37  ;;  %v3190_v50 = vadd.f32 -1.4531521, %v3178_v48 }
 0x31b   : > { %v3207_v47 = vadd.f32 1.4214138, %v3195_v43  ;;  %v3201_v24 = vmul.f32 %v6894_v11, %v3189_v26 }
 0x31c   : > { %v3208_v30 = vadd.f32 1.4214138, %v3196_v23  ;;  %v3202_v61 = vmul.f32 %v6896_v45, %v3190_v50 }
 0x31d   : > { %v3219_v49 = vmul.f32 %v6890_v25, %v3207_v47  ;;  %v3213_v54 = vadd.f32 1.4214138, %v3201_v24 }
 0x31e   : > { %v3220_v51 = vmul.f32 %v6892_v29, %v3208_v30  ;;  %v3214_v8 = vadd.f32 1.4214138, %v3202_v61  ;;  %v3087_v30 = vmul.f32 0.5, %v7679_v53 }
 0x31f   : > { %v3231_v9 = vadd.f32 -0.28449672, %v3219_v49  ;;  %v3225_v7 = vmul.f32 %v6894_v11, %v3213_v54 }
 0x320   : > { %v3232_v2 = vadd.f32 -0.28449672, %v3220_v51  ;;  %v3226_v15 = vmul.f32 %v6896_v45, %v3214_v8 }
 0x321   : > { %v3243_v5 = vmul.f32 %v6890_v25, %v3231_v9  ;;  %v3237_v14 = vadd.f32 -0.28449672, %v3225_v7 }
 0x322   : > { %v3244_v12 = vmul.f32 %v6892_v29, %v3232_v2  ;;  %v3238_v20 = vadd.f32 -0.28449672, %v3226_v15 }
 0x323   : > { %v3255_v13 = vadd.f32 0.2548296, %v3243_v5  ;;  %v3249_v19 = vmul.f32 %v6894_v11, %v3237_v14  ;;  %v3094_v5 = vmul.f32 0.5, %v7696_v4 }
 0x324   : > { %v3256_v16 = vadd.f32 0.2548296, %v3244_v12  ;;  %v3250_v34 = vmul.f32 %v6896_v45, %v3238_v20 }
 0x325   : > { %v3267_v17 = vmul.f32 %v6890_v25, %v3255_v13  ;;  %v3261_v32 = vadd.f32 0.2548296, %v3249_v19  ;;  %v6902_v25 = vpop.eup %6901 }
 0x326   : > { %v3268_v58 = vmul.f32 %v6892_v29, %v3256_v16  ;;  %v3262_v41 = vadd.f32 0.2548296, %v3250_v34  ;;  %v6904_v46 = vpop.eup %6903 }
 0x327   : > { %v3327_v56 = vmul.f32 %v6898_v28, %v3267_v17  ;;  %v3273_v37 = vmul.f32 %v6894_v11, %v3261_v32  ;;  %v3088_v11 = vmul.f32 0.5, %v7684_v40 }
 0x328   : > { %v3328_v35 = vmul.f32 %v6900_v31, %v3268_v58  ;;  %v3274_v23 = vmul.f32 %v6896_v45, %v3262_v41 }
 0x329   : > { %v3339_v33 = vsub.f32 1.0, %v3327_v56  ;;  %v3333_v18 = vmul.f32 %v6902_v25, %v3273_v37 }
 0x32a   : > { %v3340_v43 = vsub.f32 1.0, %v3328_v35  ;;  %v3334_v48 = vmul.f32 %v6904_v46, %v3274_v23 }
 0x32b   : > { %v3363_v44 = vsub.f32 0.0, %v3339_v33  ;;  %v3345_v26 = vsub.f32 1.0, %v3333_v18 }
 0x32c   : > { %v3364_v29 = vsub.f32 0.0, %v3340_v43  ;;  %v3346_v51 = vsub.f32 1.0, %v3334_v48 }
 0x32d   : > { %v3375_v47 = vsel %vm3351_vm5, %v3363_v44, %v3339_v33  ;;  %v3369_v50 = vsub.f32 0.0, %v3345_v26 }
 0x32e   : > { %v3387_v22 = vadd.f32 1.0, %v3375_v47  ;;  %v3376_v49 = vsel %vm3352_vm6, %v3364_v29, %v3340_v43  ;;  %v3370_v9 = vsub.f32 0.0, %v3346_v51 }
 0x32f   : > { %v3388_v24 = vadd.f32 1.0, %v3376_v49  ;;  %v3381_v62 = vsel %vm3357_vm7, %v3369_v50, %v3345_v26 }
 0x330   : > { %v3399_v52 = vmul.f32 %v3387_v22, %v3087_v30  ;;  %v3393_v61 = vadd.f32 1.0, %v3381_v62  ;;  %v3382_v40 = vsel %vm3358_vm8, %v3370_v9, %v3346_v51 }
 0x331   : > { %v3400_v45 = vmul.f32 %v3388_v24, %v3088_v11  ;;  %v3394_v7 = vadd.f32 1.0, %v3382_v40 }
 0x332   : > { %v7712_v54 = vmul.f32 %v3399_v52, %v7671_v27  ;;  %v3405_v2 = vmul.f32 %v3393_v61, %v3093_v42 }
 0x333   : > { %v7717_v53 = vmul.f32 %v3400_v45, %v7673_v57  ;;  %v3406_v8 = vmul.f32 %v3394_v7, %v3094_v5 }
 0x334   : > { %v7721_v1 = vmul.f32 %v3405_v2, %v7675_v36 }
 0x335   : > { %v7724_v27 = vmul.f32 %v3406_v8, %v7677_v39 }
 0x336   : > { %v3515_v59 = vpack.c.bf16 %v7721_v1, %v7712_v54 }
 0x337   : > { %v3516_v10 = vpack.c.bf16 %v7724_v27, %v7717_v53  ;;  %v6683_v53 = vld [vmem:[%s7160_s29 + $0x270] ss:$12 sps:$4 sm:$0xff]   ;;  %v6688_v27 = vld [vmem:[%s7160_s29 + $0x28c] ss:$12 sps:$4 sm:$0xff]  }
 0x340   : > { %v7730_v57 = vpop.f32.mrb[12].mxu0 }
 0x341   : > { %v7733_v12 = vmul.f32 0.70710677, %v7730_v57  ;;  %v7735_v4 = vpop.f32.mrb[13].mxu0 }
 0x342   : > { %v7738_v36 = vmul.f32 0.70710677, %v7735_v4  ;;  %v7740_v13 = vpop.f32.mrb[14].mxu0 }
 0x343   : > { %v3109_v39 = vand.u32 2147483647, %v7733_v12  ;;  %v7744_v14 = vmul.f32 0.70710677, %v7740_v13  ;;  %v7747_v16 = vpop.f32.mrb[15].mxu0  ;;  %vm3349_vm9 = vcmp.lt.f32.partialorder %v7733_v12, 0.0 }
 0x344   : > { %v3110_v15 = vand.u32 2147483647, %v7738_v36  ;;  %v7751_v28 = vmul.f32 0.70710677, %v7747_v16  ;;  %vm3350_vm10 = vcmp.lt.f32.partialorder %v7738_v36, 0.0  ;;  %v3091_v36 = vmul.f32 0.5, %v7740_v13 }
 0x345   : > { %v3121_v17 = vmul.f32 0.3275911, %v3109_v39  ;;  %v3115_v19 = vand.u32 2147483647, %v7744_v14  ;;  %v3277_v37 = vsub.f32 0.0, %v3109_v39  ;;  %vm3355_vm11 = vcmp.lt.f32.partialorder %v7744_v14, 0.0 }
 0x346   : > { %v3122_v20 = vmul.f32 0.3275911, %v3110_v15  ;;  %v3116_v32 = vand.u32 2147483647, %v7751_v28  ;;  %v3278_v41 = vsub.f32 0.0, %v3110_v15  ;;  %vm3356_vm12 = vcmp.lt.f32.partialorder %v7751_v28, 0.0 }
 0x347   : > { %v3133_v58 = vadd.f32 1.0, %v3121_v17  ;;  %v3127_v31 = vmul.f32 0.3275911, %v3115_v19  ;;  %v3289_v43 = vmul.f32 %v3277_v37, %v3109_v39  ;;  %v3283_v44 = vsub.f32 0.0, %v3115_v19 }
 0x348   : > { %v3134_v56 = vadd.f32 1.0, %v3122_v20  ;;  %v3128_v35 = vmul.f32 0.3275911, %v3116_v32  ;;  %v3290_v46 = vmul.f32 %v3278_v41, %v3110_v15  ;;  %v3284_v47 = vsub.f32 0.0, %v3116_v32 }
 0x349   : > { %6905 = vrcp.f32 %v3133_v58  ;;  %v3139_v34 = vadd.f32 1.0, %v3127_v31  ;;  %v3303_v30 = vmul.f32 1.442695, %v3289_v43  ;;  %v3295_v49 = vmul.f32 %v3283_v44, %v3115_v19 }
 0x34a   : > { %6907 = vrcp.f32 %v3134_v56  ;;  %v3140_v33 = vadd.f32 1.0, %v3128_v35  ;;  %v3305_v24 = vmul.f32 1.442695, %v3290_v46  ;;  %v3296_v45 = vmul.f32 %v3284_v47, %v3116_v32 }
 0x34b   : > { %6909 = vrcp.f32 %v3139_v34  ;;  %v3315_v40 = vmul.f32 1.442695, %v3295_v49 }
 0x34c   : > { %6911 = vrcp.f32 %v3140_v33  ;;  %v3317_v39 = vmul.f32 1.442695, %v3296_v45 }
 0x34d   : > { %6913 = vpow2.f32 %v3303_v30 }
 0x34e   : > { %6915 = vpow2.f32 %v3305_v24 }
 0x34f   : > { %6917 = vpow2.f32 %v3315_v40 }
 0x350   : > { %6919 = vpow2.f32 %v3317_v39 }
 0x353   : > { %v6906_v25 = vpop.eup %6905 }
 0x354   : > { %v6908_v18 = vpop.eup %6907  ;;  %v3169_v23 = vmul.f32 1.0614054, %v6906_v25 }
 0x355   : > { %v3170_v29 = vmul.f32 1.0614054, %v6908_v18  ;;  %v6910_v48 = vpop.eup %6909 }
 0x356   : > { %v3181_v26 = vadd.f32 -1.4531521, %v3169_v23  ;;  %v3175_v50 = vmul.f32 1.0614054, %v6910_v48  ;;  %v6912_v51 = vpop.eup %6911 }
 0x357   : > { %v3182_v22 = vadd.f32 -1.4531521, %v3170_v29  ;;  %v3176_v42 = vmul.f32 1.0614054, %v6912_v51  ;;  %v6914_v23 = vpop.eup %6913 }
 0x358   : > { %v3193_v11 = vmul.f32 %v6906_v25, %v3181_v26  ;;  %v3187_v9 = vadd.f32 -1.4531521, %v3175_v50  ;;  %v6916_v29 = vpop.eup %6915 }
 0x359   : > { %v3194_v52 = vmul.f32 %v6908_v18, %v3182_v22  ;;  %v3188_v7 = vadd.f32 -1.4531521, %v3176_v42  ;;  %v6918_v50 = vpop.eup %6917 }
 0x35a   : > { %v3205_v62 = vadd.f32 1.4214138, %v3193_v11  ;;  %v3199_v5 = vmul.f32 %v6910_v48, %v3187_v9  ;;  %v6920_v42 = vpop.eup %6919 }
 0x35b   : > { %v3206_v61 = vadd.f32 1.4214138, %v3194_v52  ;;  %v3200_v19 = vmul.f32 %v6912_v51, %v3188_v7 }
 0x35c   : > { %v3217_v2 = vmul.f32 %v6906_v25, %v3205_v62  ;;  %v3211_v17 = vadd.f32 1.4214138, %v3199_v5 }
 0x35d   : > { %v3218_v8 = vmul.f32 %v6908_v18, %v3206_v61  ;;  %v3212_v56 = vadd.f32 1.4214138, %v3200_v19 }
 0x35e   : > { %v3229_v15 = vadd.f32 -0.28449672, %v3217_v2  ;;  %v3223_v31 = vmul.f32 %v6910_v48, %v3211_v17  ;;  %v3085_v2 = vmul.f32 0.5, %v7730_v57 }
 0x35f   : > { %v3230_v20 = vadd.f32 -0.28449672, %v3218_v8  ;;  %v3224_v33 = vmul.f32 %v6912_v51, %v3212_v56  ;;  %v3092_v56 = vmul.f32 0.5, %v7747_v16  ;;  %v3425_v16 = vld [vmem:[%s8130_s2 + $0x8] sm:$0xff] }
 0x360   : > { %v3241_v58 = vmul.f32 %v6906_v25, %v3229_v15  ;;  %v3235_v35 = vadd.f32 -0.28449672, %v3223_v31 }
 0x361   : > { %v3242_v32 = vmul.f32 %v6908_v18, %v3230_v20  ;;  %v3236_v44 = vadd.f32 -0.28449672, %v3224_v33 }
 0x362   : > { %v3253_v34 = vadd.f32 0.2548296, %v3241_v58  ;;  %v3247_v43 = vmul.f32 %v6910_v48, %v3235_v35 }
 0x363   : > { %v3254_v37 = vadd.f32 0.2548296, %v3242_v32  ;;  %v3248_v30 = vmul.f32 %v6912_v51, %v3236_v44 }
 0x364   : > { %v3265_v41 = vmul.f32 %v6906_v25, %v3253_v34  ;;  %v3259_v26 = vadd.f32 0.2548296, %v3247_v43 }
 0x365   : > { %v3266_v46 = vmul.f32 %v6908_v18, %v3254_v37  ;;  %v3260_v24 = vadd.f32 0.2548296, %v3248_v30  ;;  %v3421_v30 = vld [vmem:[%s8131_s3 + $0x8] sm:$0xff] }
 0x366   : > { %v3325_v47 = vmul.f32 %v6914_v23, %v3265_v41  ;;  %v3271_v11 = vmul.f32 %v6910_v48, %v3259_v26  ;;  %v3086_v48 = vmul.f32 0.5, %v7735_v4  ;;  %v3420_v26 = vld [vmem:[%s8131_s3] sm:$0xff]  ;;  %vm3423_vm14 = vcmp.gt.f32.partialorder %v3421_v30, 0.0  ;;  %v6695_v30 = vld [vmem:[%s7160_s29 + $0x2d0] ss:$12 sps:$4 sm:$0xff]  }
 0x367   : > { %v3326_v22 = vmul.f32 %v6916_v29, %v3266_v46  ;;  %v3272_v9 = vmul.f32 %v6912_v51, %v3260_v24  ;;  %vm3422_vm13 = vcmp.gt.f32.partialorder %v3420_v26, 0.0  ;;  %v6697_v26 = vld [vmem:[%s7160_s29 + $0x2d4] ss:$12 sps:$4 sm:$0xff]  }
 0x368   : > { %v3337_v49 = vsub.f32 1.0, %v3325_v47  ;;  %v3331_v62 = vmul.f32 %v6918_v50, %v3271_v11 }
 0x369   : > { %v3338_v52 = vsub.f32 1.0, %v3326_v22  ;;  %v3332_v40 = vmul.f32 %v6920_v42, %v3272_v9 }
 0x36a   : > { %v3361_v45 = vsub.f32 0.0, %v3337_v49  ;;  %v3343_v18 = vsub.f32 1.0, %v3331_v62 }
 0x36b   : > { %v3362_v25 = vsub.f32 0.0, %v3338_v52  ;;  %v3344_v15 = vsub.f32 1.0, %v3332_v40 }
 0x36c   : > { %v3373_v61 = vsel %vm3349_vm9, %v3361_v45, %v3337_v49  ;;  %v3367_v39 = vsub.f32 0.0, %v3343_v18 }
 0x36d   : > { %v3385_v5 = vadd.f32 1.0, %v3373_v61  ;;  %v3374_v7 = vsel %vm3350_vm10, %v3362_v25, %v3338_v52  ;;  %v3368_v19 = vsub.f32 0.0, %v3344_v15 }
 0x36e   : > { %v3386_v8 = vadd.f32 1.0, %v3374_v7  ;;  %v3379_v12 = vsel %vm3355_vm11, %v3367_v39, %v3343_v18 }
 0x36f   : > { %v3397_v17 = vmul.f32 %v3385_v5, %v3085_v2  ;;  %v3391_v58 = vadd.f32 1.0, %v3379_v12  ;;  %v3380_v31 = vsel %vm3356_vm12, %v3368_v19, %v3344_v15  ;;  %v6704_v19 = vld [vmem:[%s7160_s29 + $0x308] ss:$12 sps:$4 sm:$0xff]  }
 0x370   : > { %v3398_v51 = vmul.f32 %v3386_v8, %v3086_v48  ;;  %v3392_v32 = vadd.f32 1.0, %v3380_v31  ;;  %5917 = vmatprep.subr.bf16.mxu0 %v6704_v19  ;;  %v6715_v31 = vld [vmem:[%s7160_s29 + $0x278] ss:$12 sps:$4 sm:$0xff]  }
 0x371   : > { %v3409_v20 = vmul.f32 %v3397_v17, %v7582_v60  ;;  %v3403_v4 = vmul.f32 %v3391_v58, %v3091_v36  ;;  %v6709_v36 = vld [vmem:[%s7160_s29 + $0x320] ss:$12 sps:$4 sm:$0xff]  }
 0x372   : > { %v3410_v57 = vmul.f32 %v3398_v51, %v7585_v63  ;;  %v3404_v14 = vmul.f32 %v3392_v32, %v3092_v56  ;;  %v6710_v58 = vld [vmem:[%s7160_s29 + $0x260] ss:$12 sps:$4 sm:$0xff]   ;;  %v6720_v56 = vld [vmem:[%s7160_s29 + $0x290] ss:$12 sps:$4 sm:$0xff]   ;;  %v6724_v32 = vld [vmem:[%s7160_s29 + $0x368] ss:$12 sps:$4 sm:$0xff]  }
 0x373   : > { %v3415_v34 = vmul.f32 %v3403_v4, %v7589_v3  ;;  %v3424_v3 = vld [vmem:[%s8130_s2] sm:$0xff]  ;;  %v6719_v4 = vld [vmem:[%s7160_s29 + $0x350] ss:$12 sps:$4 sm:$0xff]  }
 0x374   : > { %v3416_v35 = vmul.f32 %v3404_v14, %v7593_v6  ;;  %v3426_v6 = vstv %s3419_s26  ;;  %v6729_v14 = vld [vmem:[%s7160_s29 + $0x380] ss:$12 sps:$4 sm:$0xff]  }
 0x375   : > { %v7766_v33 = vpack.c.bf16 %v3415_v34, %v3409_v20  ;;  %v3427_v44 = vadd.f32 %v3426_v6, %v3424_v3  ;;  %v3428_v23 = vadd.f32 %v3426_v6, %v3425_v16  ;;  %v6705_v20 = vld [vmem:[%s7160_s29 + $0x248] ss:$12 sps:$4 sm:$0xff]   ;;  %v6679_v16 = vld [vmem:[%s7160_s29 + $0x244] ss:$12 sps:$4 sm:$0xff]  }
 0x376   : > { %v3514_v60 = vpack.c.bf16 %v3416_v35, %v3410_v57  ;;  %5918 = vmatpush3.bf16.msra.mxu0 %v6705_v20  ;;  %v6714_v57 = vld [vmem:[%s7160_s29 + $0x338] ss:$12 sps:$4 sm:$0xff]   ;;  %v6725_v34 = vld [vmem:[%s7160_s29 + $0x2a8] ss:$12 sps:$4 sm:$0xff]   ;;  %v6730_v35 = vld [vmem:[%s7160_s29 + $0x2c0] ss:$12 sps:$4 sm:$0xff]  }
 0x377   : > { %v5736_v54 = vmul.f32 -1.442695, %v3427_v44  ;;  %v5737_v1 = vmul.f32 -1.442695, %v3428_v23  ;;  %5919 = vmatprep.subr.bf16.mxu0 %v6709_v36  ;;  %v6677_v44 = vld [vmem:[%s7160_s29 + $0x240] ss:$12 sps:$4 sm:$0xff]  }
 0x378   : > { %v6682_v23 = vld [vmem:[%s7160_s29 + $0x25c] ss:$12 sps:$4 sm:$0xff]  }
 0x379   : > { %6921 = vpow2.f32 %v5736_v54  ;;  %v6680_v54 = vld [vmem:[%s7160_s29 + $0x258] ss:$12 sps:$4 sm:$0xff]  }
 0x37a   : > { %6923 = vpow2.f32 %v5737_v1  ;;  %5920 = vmatpush3.bf16.msra.mxu0 %v6710_v58  ;;  %v6685_v1 = vld [vmem:[%s7160_s29 + $0x274] ss:$12 sps:$4 sm:$0xff]  }
 0x37b   : > { %5921 = vmatprep.subr.bf16.mxu0 %v6714_v57  ;;  %v6741_v57 = vld [vmem:[%s7160_s29 + $0x3c0] ss:$12 sps:$4 sm:$0xff]  }
 0x37e   : > { %5922 = vmatpush3.bf16.msra.mxu0 %v6715_v31  ;;  %v6745_v31 = vld [vmem:[%s7160_s29 + $0x8] ss:$12 sps:$4 sm:$0xff]  }
 0x37f   : > { %5923 = vmatprep.subr.bf16.mxu0 %v6719_v4  ;;  %v6748_v4 = vld [vmem:[%s7160_s29 + $0x3dc] ss:$12 sps:$4 sm:$0xff]  }
 0x382   : > { %5924 = vmatpush3.bf16.msra.mxu0 %v6720_v56  ;;  %v6749_v56 = vld [vmem:[%s7160_s29 + $0xe0] ss:$12 sps:$4 sm:$0xff]  }
 0x383   : > { %5925 = vmatprep.subr.bf16.mxu0 %v6724_v32 }
 0x386   : > { %5926 = vmatpush3.bf16.msra.mxu0 %v6725_v34  ;;  %v6746_v34 = vld [vmem:[%s7160_s29 + $0x3d8] ss:$12 sps:$4 sm:$0xff]  }
 0x387   : > { %5927 = vmatprep.subr.bf16.mxu0 %v6729_v14  ;;  %v6750_v14 = vld [vmem:[%s7160_s29 + $0x20] ss:$12 sps:$4 sm:$0xff]  }
 0x38a   : > { %5928 = vmatpush3.bf16.msra.mxu0 %v6730_v35 }
 0x3a0   : > { %v3074_v13 = vpop.f32.mrb[16].mxu0 }
 0x3a1   : > { %v3076_v37 = vpop.f32.mrb[17].mxu0 }
 0x3a2   : > { %v3078_v41 = vpop.f32.mrb[18].mxu0 }
 0x3a3   : > { %v3443_v28 = vpack.c.bf16 %v3078_v41, %v3074_v13  ;;  %v3080_v43 = vpop.f32.mrb[19].mxu0  ;;  %v6735_v13 = vld [vmem:[%s7160_s29 + $0x2d8] ss:$12 sps:$4 sm:$0xff]  }
 0x3a4   : > { %v3444_v63 = vpack.c.bf16 %v3080_v43, %v3076_v37 }
 0x3a6   : > { %6011 = vmatpush3.bf16.xpose.msra.mxu1 %v3444_v63 }
 0x3a7   : > { %3520 = vmatprep.subr.bf16.mxu1 %v3515_v59  ;;  %v6922_v59 = vpop.eup %6921 }
 0x3a8   : > { %v6924_v46 = vpop.eup %6923  ;;  %v3435_v29 = vadd.f32 1.0, %v6922_v59  ;;  %v6691_v59 = vld [vmem:[%s7160_s29 + $0x2a4] ss:$12 sps:$4 sm:$0xff]  }
 0x3a9   : > { %v3436_v47 = vadd.f32 1.0, %v6924_v46  ;;  %v6689_v46 = vld [vmem:[%s7160_s29 + $0x2a0] ss:$12 sps:$4 sm:$0xff]  }
 0x3aa   : > { %6925 = vrcp.f32 %v3435_v29  ;;  %v6694_v29 = vld [vmem:[%s7160_s29 + $0x2bc] ss:$12 sps:$4 sm:$0xff]  }
 0x3ab   : > { %6927 = vrcp.f32 %v3436_v47  ;;  %v6692_v47 = vld [vmem:[%s7160_s29 + $0x2b8] ss:$12 sps:$4 sm:$0xff]  }
 0x3ad   : > { %6013 = vmatmul.mubr.bf16.vlgmr.msra.gmra.mrb[12].mxu1 %v3443_v28 }
 0x3ae   : > { %3521 = vmatpush1.bf16.msra.mxu1 %v3514_v60  ;;  %3552 = vmatprep.mubr.bf16.mxu1 %v7048_v0  ;;  %v6734_v60 = vld [vmem:[%s7160_s29 + $0x398] ss:$12 sps:$4 sm:$0xff]  }
 0x3af   : > { %6016 = vmatprep.subr.bf16.mxu1 %v7049_v21  ;;  %5929 = vmatprep.subr.bf16.mxu0 %v6734_v60  ;;  %v6753_v60 = vld [vmem:[%s7160_s29 + $0x3f4] ss:$12 sps:$4 sm:$0xff]  }
 0x3b0   : > { %5930 = vmatpush3.bf16.msra.mxu0 %v6735_v13  ;;  %v6754_v13 = vld [vmem:[%s7160_s29 + $0xf8] ss:$12 sps:$4 sm:$0xff]  }
 0x3b4   : > { %v6926_v22 = vpop.eup %6925 }
 0x3b5   : > { %v6928_v49 = vpop.eup %6927  ;;  %v3441_v24 = vsel %vm3422_vm13, %v6926_v22, -inf  ;;  %v6700_v22 = vld [vmem:[%s7160_s29 + $0x2ec] ss:$12 sps:$4 sm:$0xff]  }
 0x3b6   : > { %v3442_v62 = vsel %vm3423_vm14, %v6928_v49, -inf  ;;  %v6698_v49 = vld [vmem:[%s7160_s29 + $0x2e8] ss:$12 sps:$4 sm:$0xff]  }
 0x480   : > { %v3479_v11 = vpop.f32.mrb[12].mxu1 }
 0x481   : > { %v3486_v50 = vmul.f32 0.14433756, %v3479_v11  ;;  %v6014_v52 = vpop.f32.mrb[13].mxu1  ;;  %v6703_v11 = vld [vmem:[%s7160_s29 + $0x304] ss:$12 sps:$4 sm:$0xff]  }
 0x482   : > { %v3482_v45 = vpop.f32.mrb[14].mxu1  ;;  %v6706_v52 = vld [vmem:[%s7160_s29 + $0x318] ss:$12 sps:$4 sm:$0xff]  }
 0x483   : > { %v3487_v9 = vmul.f32 0.14433756, %v3482_v45  ;;  %v6015_v42 = vpop.f32.mrb[15].mxu1  ;;  %v3488_v25 = vadd.f32 %v3486_v50, %v3441_v24  ;;  %v6701_v24 = vld [vmem:[%s7160_s29 + $0x300] ss:$12 sps:$4 sm:$0xff]  }
 0x484   : > { %v6708_v50 = vld [vmem:[%s7160_s29 + $0x31c] ss:$12 sps:$4 sm:$0xff]   ;;  %v6713_v45 = vld [vmem:[%s7160_s29 + $0x334] ss:$12 sps:$4 sm:$0xff]  }
 0x485   : > { %v3491_v61 = vsel %vm3490_vm15, %v3488_v25, -inf  ;;  %v3489_v18 = vadd.f32 %v3487_v9, %v3442_v62  ;;  %v6711_v62 = vld [vmem:[%s7160_s29 + $0x330] ss:$12 sps:$4 sm:$0xff]   ;;  %v6718_v9 = vld [vmem:[%s7160_s29 + $0x34c] ss:$12 sps:$4 sm:$0xff]  }
 0x486   : > { %3492 = vmax.xlane.f32.xlu0 %v3491_v61  ;;  %v6716_v42 = vld [vmem:[%s7160_s29 + $0x348] ss:$12 sps:$4 sm:$0xff]   ;;  %v6721_v61 = vld [vmem:[%s7160_s29 + $0x360] ss:$12 sps:$4 sm:$0xff]  }
 0x487   : > { %v3494_v40 = vsel %vm3490_vm15, %v3489_v18, -inf }
 0x488   : > { %3495 = vmax.xlane.f32.xlu1 %v3494_v40  ;;  %v6726_v40 = vld [vmem:[%s7160_s29 + $0x378] ss:$12 sps:$4 sm:$0xff]  }
 0x513   : > { %v3493_v2 = vpop.xlane.xlu0 %3492 }
 0x514   : > { %v3497_v5 = vsub.f32 %v3488_v25, %v3493_v2  ;;  %v6723_v25 = vld [vmem:[%s7160_s29 + $0x364] ss:$12 sps:$4 sm:$0xff]   ;;  %v6733_v2 = vld [vmem:[%s7160_s29 + $0x394] ss:$12 sps:$4 sm:$0xff]  }
 0x515   : > { %v3496_v7 = vpop.xlane.xlu1 %3495 }
 0x516   : > { %v3499_v48 = vmul.f32 1.442695, %v3497_v5  ;;  %v3498_v8 = vsub.f32 %v3489_v18, %v3496_v7  ;;  %v6728_v18 = vld [vmem:[%s7160_s29 + $0x37c] ss:$12 sps:$4 sm:$0xff]  }
 0x517   : > { %v6731_v5 = vld [vmem:[%s7160_s29 + $0x390] ss:$12 sps:$4 sm:$0xff]   ;;  %v6736_v7 = vld [vmem:[%s7160_s29 + $0x3a8] ss:$12 sps:$4 sm:$0xff]  }
 0x518   : > { %6929 = vpow2.f32 %v3499_v48  ;;  %v3501_v39 = vmul.f32 1.442695, %v3498_v8  ;;  %v6738_v48 = vld [vmem:[%s7160_s29 + $0x3ac] ss:$12 sps:$4 sm:$0xff]   ;;  %v6739_v8 = vld [vmem:[%s7160_s29 + $0x3b0] ss:$12 sps:$4 sm:$0xff]  }
 0x519   : > { %5931 = vmatprep.subr.bf16.mxu0 %v6739_v8  ;;  %v6795_v8 = vld [vmem:[%s7160_s29 + $0x470] ss:$12 sps:$4 sm:$0xff]  }
 0x51a   : > { %6931 = vpow2.f32 %v3501_v39  ;;  %v6740_v39 = vld [vmem:[%s7160_s29 + $0x2f0] ss:$12 sps:$4 sm:$0xff]  }
 0x51b   : > { %5932 = vmatpush3.bf16.msra.mxu0 %v6740_v39  ;;  %v6796_v39 = vld [vmem:[%s7160_s29 + $0x230] ss:$12 sps:$4 sm:$0xff]  }
 0x522   : > { %v6930_v15 = vpop.eup %6929 }
 0x523   : > { %v3503_v17 = vsel %vm3490_vm15, %v6930_v15, 0.0 }
 0x524   : > { %v6932_v51 = vpop.eup %6931  ;;  %3504 = vadd.xlane.f32.xlu0 %v3503_v17  ;;  %v6744_v17 = vld [vmem:[%s7160_s29 + $0xc8] ss:$12 sps:$4 sm:$0xff]  }
 0x525   : > { %v3506_v12 = vsel %vm3490_vm15, %v6932_v51, 0.0  ;;  %5948 = vmatprep.subr.bf16.mxu0 %v6744_v17  ;;  %v6797_v17 = vld [vmem:[%s7160_s29] ss:$12 sps:$4 sm:$0xff]  }
 0x526   : > { %3507 = vadd.xlane.f32.xlu1 %v3506_v12 }
 0x5b1   : > { %v3505_v37 = vpop.xlane.xlu0 %3504 }
 0x5b2   : > { %6933 = vrcp.f32 %v3505_v37 }
 0x5b3   : > { %v3508_v41 = vpop.xlane.xlu1 %3507 }
 0x5b4   : > { %6935 = vrcp.f32 %v3508_v41 }
 0x5bc   : > { %v6934_v28 = vpop.eup %6933 }
 0x5bd   : > { %v3511_v63 = vmul.f32 %v6934_v28, %v6930_v15  ;;  %v6743_v15 = vld [vmem:[%s7160_s29 + $0x3c4] ss:$12 sps:$4 sm:$0xff]  }
 0x5be   : > { %v6936_v43 = vpop.eup %6935 }
 0x5bf   : > { %v3512_v3 = vmul.f32 %v6936_v43, %v6932_v51  ;;  %v6751_v43 = vld [vmem:[%s7160_s29 + $0x3f0] ss:$12 sps:$4 sm:$0xff]  }
 0x5c1   : > { %v3513_v6 = vpack.c.bf16 %v3512_v3, %v3511_v63  ;;  %v6755_v63 = vld [vmem:[%s7160_s29 + $0x38] ss:$12 sps:$4 sm:$0xff]  }
 0x5c2   : > { %v6758_v3 = vld [vmem:[%s7160_s29 + $0x40c] ss:$12 sps:$4 sm:$0xff]  }
 0x5c3   : > { %5738 = vmatmul.mubr.msk.bf16.vlgmr.msra.gmra.mrb[16].mxu1 %vm3490_vm15, %v3513_v6 }
 0x5c4   : > { %6017 = vmatpush3.bf16.msra.mxu1 %v3516_v10  ;;  %6018 = vmatprep.mubr.msk.bf16.mxu1 %vm7050_vm4, %v7049_v21  ;;  %v6686_v10 = vld [vmem:[%s7160_s29 + $0x288] ss:$12 sps:$4 sm:$0xff]  }
 0x5c5   : > { %4186 = vmatprep.subr.bf16.mxu1 %v6679_v16  ;;  %v6756_v16 = vld [vmem:[%s7160_s29 + $0x408] ss:$12 sps:$4 sm:$0xff]  }
 0x5cb   : > { %6019 = vmatmul.mubr.msk.bf16.vlgmr.msra.gmra.mrb[20].mxu1 %vm3490_vm15, %v3513_v6  ;;  %v6759_v6 = vld [vmem:[%s7160_s29 + $0x110] ss:$12 sps:$4 sm:$0xff]  }
 0x5cc   : > { %4187 = vmatpush1.bf16.msra.mxu1 %v6677_v44  ;;  %v6760_v44 = vld [vmem:[%s7160_s29 + $0x50] ss:$12 sps:$4 sm:$0xff]  }
 0x5cd   : > { %4188 = vmatprep.subr.bf16.mxu1 %v6682_v23  ;;  %v6763_v23 = vld [vmem:[%s7160_s29 + $0x424] ss:$12 sps:$4 sm:$0xff]  }
 0x5d0   : > { %4189 = vmatpush1.bf16.msra.mxu1 %v6680_v54  ;;  %v6764_v54 = vld [vmem:[%s7160_s29 + $0x128] ss:$12 sps:$4 sm:$0xff]  }
 0x5d1   : > { %4190 = vmatprep.subr.bf16.mxu1 %v6685_v1  ;;  %v6761_v1 = vld [vmem:[%s7160_s29 + $0x420] ss:$12 sps:$4 sm:$0xff]  }
 0x5d4   : > { %4191 = vmatpush1.bf16.msra.mxu1 %v6683_v53  ;;  %v6765_v53 = vld [vmem:[%s7160_s29 + $0x68] ss:$12 sps:$4 sm:$0xff]  }
 0x5d5   : > { %4192 = vmatprep.subr.bf16.mxu1 %v6688_v27  ;;  %v6768_v27 = vld [vmem:[%s7160_s29 + $0x43c] ss:$12 sps:$4 sm:$0xff]  }
 0x5d8   : > { %4193 = vmatpush1.bf16.msra.mxu1 %v6686_v10  ;;  %v6769_v10 = vld [vmem:[%s7160_s29 + $0x140] ss:$12 sps:$4 sm:$0xff]  }
 0x5d9   : > { %4194 = vmatprep.subr.bf16.mxu1 %v6691_v59  ;;  %v6766_v59 = vld [vmem:[%s7160_s29 + $0x438] ss:$12 sps:$4 sm:$0xff]  }
 0x5dc   : > { %4195 = vmatpush1.bf16.msra.mxu1 %v6689_v46  ;;  %v6770_v46 = vld [vmem:[%s7160_s29 + $0x80] ss:$12 sps:$4 sm:$0xff]  }
 0x5dd   : > { %4196 = vmatprep.subr.bf16.mxu1 %v6694_v29  ;;  %v6773_v29 = vld [vmem:[%s7160_s29 + $0x454] ss:$12 sps:$4 sm:$0xff]  }
 0x5e0   : > { %4197 = vmatpush1.bf16.msra.mxu1 %v6692_v47  ;;  %v6774_v47 = vld [vmem:[%s7160_s29 + $0x158] ss:$12 sps:$4 sm:$0xff]  }
 0x5e1   : > { %4198 = vmatprep.subr.bf16.mxu1 %v6697_v26  ;;  %v6771_v26 = vld [vmem:[%s7160_s29 + $0x450] ss:$12 sps:$4 sm:$0xff]  }
 0x5e4   : > { %4199 = vmatpush1.bf16.msra.mxu1 %v6695_v30  ;;  %v6775_v30 = vld [vmem:[%s7160_s29 + $0x98] ss:$12 sps:$4 sm:$0xff]  }
 0x5e5   : > { %4200 = vmatprep.subr.bf16.mxu1 %v6700_v22  ;;  %v6778_v22 = vld [vmem:[%s7160_s29 + $0x46c] ss:$12 sps:$4 sm:$0xff]  }
 0x5e8   : > { %4201 = vmatpush1.bf16.msra.mxu1 %v6698_v49  ;;  %v6779_v49 = vld [vmem:[%s7160_s29 + $0x170] ss:$12 sps:$4 sm:$0xff]  }
 0x5e9   : > { %4202 = vmatprep.subr.bf16.mxu1 %v6703_v11  ;;  %v6776_v11 = vld [vmem:[%s7160_s29 + $0x468] ss:$12 sps:$4 sm:$0xff]  }
 0x5ec   : > { %4203 = vmatpush1.bf16.msra.mxu1 %v6701_v24  ;;  %v6780_v24 = vld [vmem:[%s7160_s29 + $0xb0] ss:$12 sps:$4 sm:$0xff]  }
 0x5ed   : > { %4204 = vmatprep.subr.bf16.mxu1 %v6708_v50  ;;  %v6781_v50 = vld [vmem:[%s7160_s29 + $0x3c8] ss:$12 sps:$4 sm:$0xff]  }
 0x5f0   : > { %4205 = vmatpush1.bf16.msra.mxu1 %v6706_v52  ;;  %v6782_v52 = vld [vmem:[%s7160_s29 + $0x188] ss:$12 sps:$4 sm:$0xff]  }
 0x5f1   : > { %4206 = vmatprep.subr.bf16.mxu1 %v6713_v45  ;;  %v6783_v45 = vld [vmem:[%s7160_s29 + $0x3e0] ss:$12 sps:$4 sm:$0xff]  }
 0x5f4   : > { %4207 = vmatpush1.bf16.msra.mxu1 %v6711_v62  ;;  %v6784_v62 = vld [vmem:[%s7160_s29 + $0x1a0] ss:$12 sps:$4 sm:$0xff]  }
 0x5f5   : > { %4208 = vmatprep.subr.bf16.mxu1 %v6718_v9  ;;  %v6785_v9 = vld [vmem:[%s7160_s29 + $0x3f8] ss:$12 sps:$4 sm:$0xff]  }
 0x5f8   : > { %4209 = vmatpush1.bf16.msra.mxu1 %v6716_v42  ;;  %v6786_v42 = vld [vmem:[%s7160_s29 + $0x1b8] ss:$12 sps:$4 sm:$0xff]  }
 0x5f9   : > { %4210 = vmatprep.subr.bf16.mxu1 %v6723_v25  ;;  %v6787_v25 = vld [vmem:[%s7160_s29 + $0x410] ss:$12 sps:$4 sm:$0xff]  }
 0x5fc   : > { %4211 = vmatpush1.bf16.msra.mxu1 %v6721_v61  ;;  %v6788_v61 = vld [vmem:[%s7160_s29 + $0x1d0] ss:$12 sps:$4 sm:$0xff]  }
 0x5fd   : > { %4212 = vmatprep.subr.bf16.mxu1 %v6728_v18  ;;  %v6789_v18 = vld [vmem:[%s7160_s29 + $0x428] ss:$12 sps:$4 sm:$0xff]  }
 0x600   : > { %4213 = vmatpush1.bf16.msra.mxu1 %v6726_v40  ;;  %v6790_v40 = vld [vmem:[%s7160_s29 + $0x1e8] ss:$12 sps:$4 sm:$0xff]  }
 0x601   : > { %4214 = vmatprep.subr.bf16.mxu1 %v6733_v2  ;;  %v6791_v2 = vld [vmem:[%s7160_s29 + $0x440] ss:$12 sps:$4 sm:$0xff]  }
 0x604   : > { %4215 = vmatpush1.bf16.msra.mxu1 %v6731_v5  ;;  %v6792_v5 = vld [vmem:[%s7160_s29 + $0x200] ss:$12 sps:$4 sm:$0xff]  }
 0x605   : > { %4216 = vmatprep.subr.bf16.mxu1 %v6738_v48  ;;  %v6794_v48 = vld [vmem:[%s7160_s29 + $0x218] ss:$12 sps:$4 sm:$0xff]  }
 0x608   : > { %4217 = vmatpush1.bf16.msra.mxu1 %v6736_v7  ;;  %v6793_v7 = vld [vmem:[%s7160_s29 + $0x458] ss:$12 sps:$4 sm:$0xff]  }
 0x609   : > { %4229 = vmatprep.subr.bf16.mxu1 %v6743_v15  ;;  %v6799_v15 = vld [vmem:[%s7160_s29 + $0x4] ss:$12 sps:$4 sm:$0xff]  }
 0x696   : > { %v3554_v51 = vpop.f32.mrb[16].mxu1 }
 0x697   : > { %v3556_v12 = vpop.f32.mrb[17].mxu1 }
 0x698   : > { %v3558_v19 = vpop.f32.mrb[18].mxu1 }
 0x699   : > { %v3703_v20 = vpack.c.bf16 %v3558_v19, %v3554_v51  ;;  %v3560_v36 = vpop.f32.mrb[19].mxu1  ;;  %v6802_v51 = vld [vmem:[%s7160_s29 + $0x1c] ss:$12 sps:$4 sm:$0xff]  }
 0x69a   : > { %v3704_v58 = vpack.c.bf16 %v3560_v36, %v3556_v12  ;;  %v6800_v12 = vld [vmem:[%s7160_s29 + $0x18] ss:$12 sps:$4 sm:$0xff]   ;;  %v6803_v19 = vld [vmem:[%s7160_s29 + $0x30] ss:$12 sps:$4 sm:$0xff]   ;;  %v6806_v36 = vld [vmem:[%s7160_s29 + $0x48] ss:$12 sps:$4 sm:$0xff]  }
 0x69c   : > { %4218 = vmatprep.mubr.bf16.mxu1 %v3704_v58  ;;  %4304 = vmatprep.mubr.bf16.mxu0 %v3704_v58  ;;  %v6811_v58 = vld [vmem:[%s7160_s29 + $0x64] ss:$12 sps:$4 sm:$0xff]  }
 0x69d   : > { %4219 = vmatmul.mubr.bf16.vlgmr.msra.gmra.mrb[24].mxu1 %v3703_v20  ;;  %4305 = vmatmul.mubr.bf16.vlgmr.msra.gmra.mrb[20].mxu0 %v3703_v20  ;;  %v6808_v20 = vld [vmem:[%s7160_s29 + $0x4c] ss:$12 sps:$4 sm:$0xff]  }
 0x69e   : > { %4230 = vmatpush1.bf16.msra.mxu1 %v6741_v57  ;;  %5949 = vmatpush3.bf16.msra.mxu0 %v6745_v31  ;;  %v3597_v32 = vpop.f32.mrb[20].mxu1  ;;  %v6809_v57 = vld [vmem:[%s7160_s29 + $0x60] ss:$12 sps:$4 sm:$0xff]   ;;  %v6812_v31 = vld [vmem:[%s7160_s29 + $0x78] ss:$12 sps:$4 sm:$0xff]  }
 0x69f   : > { %4856 = vmatprep.mubr.bf16.mxu0 %v7669_v38  ;;  %v6020_v35 = vpop.f32.mrb[21].mxu1  ;;  %4231 = vmatprep.subr.bf16.mxu1 %v6748_v4  ;;  %v6817_v4 = vld [vmem:[%s7160_s29 + $0x94] ss:$12 sps:$4 sm:$0xff]  }
 0x6a0   : > { %v3600_v37 = vpop.f32.mrb[22].mxu1  ;;  %5950 = vmatprep.subr.bf16.mxu0 %v6749_v56  ;;  %4261 = vmatprep.mubr.bf16.mxu1 %v7048_v0  ;;  %v6815_v56 = vld [vmem:[%s7160_s29 + $0x90] ss:$12 sps:$4 sm:$0xff]   ;;  %v6821_v35 = vld [vmem:[%s7160_s29 + $0xc0] ss:$12 sps:$4 sm:$0xff]  }
 0x6a1   : > { %v7857_v41 = vpack.c.bf16 %v3600_v37, %v3597_v32  ;;  %v6021_v28 = vpop.f32.mrb[23].mxu1  ;;  %v6820_v32 = vld [vmem:[%s7160_s29 + $0xac] ss:$12 sps:$4 sm:$0xff]   ;;  %v6829_v37 = vld [vmem:[%s7160_s29 + $0xf4] ss:$12 sps:$4 sm:$0xff]  }
 0x6a2   : > { %4232 = vmatpush1.bf16.msra.mxu1 %v6746_v34  ;;  %5951 = vmatpush3.bf16.msra.mxu0 %v6750_v14  ;;  %v6818_v34 = vld [vmem:[%s7160_s29 + $0xa8] ss:$12 sps:$4 sm:$0xff]   ;;  %v6823_v14 = vld [vmem:[%s7160_s29 + $0xc4] ss:$12 sps:$4 sm:$0xff]   ;;  %v6832_v28 = vld [vmem:[%s7160_s29 + $0x10c] ss:$12 sps:$4 sm:$0xff]  }
 0x6a3   : > { %4233 = vmatprep.subr.bf16.mxu1 %v6753_v60  ;;  %5952 = vmatprep.subr.bf16.mxu0 %v6754_v13  ;;  %v6826_v60 = vld [vmem:[%s7160_s29 + $0xdc] ss:$12 sps:$4 sm:$0xff]   ;;  %v6824_v13 = vld [vmem:[%s7160_s29 + $0xd8] ss:$12 sps:$4 sm:$0xff]  }
 0x6a6   : > { %4234 = vmatpush1.bf16.msra.mxu1 %v6751_v43  ;;  %5953 = vmatpush3.bf16.msra.mxu0 %v6755_v63  ;;  %v6830_v43 = vld [vmem:[%s7160_s29 + $0x108] ss:$12 sps:$4 sm:$0xff]   ;;  %v6835_v63 = vld [vmem:[%s7160_s29 + $0x124] ss:$12 sps:$4 sm:$0xff]  }
 0x6a7   : > { %4235 = vmatprep.subr.bf16.mxu1 %v6758_v3  ;;  %5954 = vmatprep.subr.bf16.mxu0 %v6759_v6  ;;  %v6833_v3 = vld [vmem:[%s7160_s29 + $0x120] ss:$12 sps:$4 sm:$0xff]   ;;  %v6838_v6 = vld [vmem:[%s7160_s29 + $0x13c] ss:$12 sps:$4 sm:$0xff]  }
 0x6aa   : > { %4236 = vmatpush1.bf16.msra.mxu1 %v6756_v16  ;;  %5955 = vmatpush3.bf16.msra.mxu0 %v6760_v44  ;;  %v6836_v16 = vld [vmem:[%s7160_s29 + $0x138] ss:$12 sps:$4 sm:$0xff]   ;;  %v6841_v44 = vld [vmem:[%s7160_s29 + $0x154] ss:$12 sps:$4 sm:$0xff]  }
 0x6ab   : > { %4237 = vmatprep.subr.bf16.mxu1 %v6763_v23  ;;  %5956 = vmatprep.subr.bf16.mxu0 %v6764_v54  ;;  %v6839_v23 = vld [vmem:[%s7160_s29 + $0x150] ss:$12 sps:$4 sm:$0xff]   ;;  %v6844_v54 = vld [vmem:[%s7160_s29 + $0x16c] ss:$12 sps:$4 sm:$0xff]  }
 0x6ae   : > { %4238 = vmatpush1.bf16.msra.mxu1 %v6761_v1  ;;  %5957 = vmatpush3.bf16.msra.mxu0 %v6765_v53  ;;  %v6842_v1 = vld [vmem:[%s7160_s29 + $0x168] ss:$12 sps:$4 sm:$0xff]   ;;  %v6847_v53 = vld [vmem:[%s7160_s29 + $0x184] ss:$12 sps:$4 sm:$0xff]  }
 0x6af   : > { %4239 = vmatprep.subr.bf16.mxu1 %v6768_v27  ;;  %5958 = vmatprep.subr.bf16.mxu0 %v6769_v10  ;;  %v6845_v27 = vld [vmem:[%s7160_s29 + $0x180] ss:$12 sps:$4 sm:$0xff]   ;;  %v6850_v10 = vld [vmem:[%s7160_s29 + $0x19c] ss:$12 sps:$4 sm:$0xff]  }
 0x6b2   : > { %4240 = vmatpush1.bf16.msra.mxu1 %v6766_v59  ;;  %5959 = vmatpush3.bf16.msra.mxu0 %v6770_v46  ;;  %v6848_v59 = vld [vmem:[%s7160_s29 + $0x198] ss:$12 sps:$4 sm:$0xff]   ;;  %v6853_v46 = vld [vmem:[%s7160_s29 + $0x1b4] ss:$12 sps:$4 sm:$0xff]  }
 0x6b3   : > { %4241 = vmatprep.subr.bf16.mxu1 %v6773_v29  ;;  %5960 = vmatprep.subr.bf16.mxu0 %v6774_v47  ;;  %v6851_v29 = vld [vmem:[%s7160_s29 + $0x1b0] ss:$12 sps:$4 sm:$0xff]   ;;  %v6856_v47 = vld [vmem:[%s7160_s29 + $0x1cc] ss:$12 sps:$4 sm:$0xff]  }
 0x6b6   : > { %4242 = vmatpush1.bf16.msra.mxu1 %v6771_v26  ;;  %5961 = vmatpush3.bf16.msra.mxu0 %v6775_v30  ;;  %v6854_v26 = vld [vmem:[%s7160_s29 + $0x1c8] ss:$12 sps:$4 sm:$0xff]   ;;  %v6857_v30 = vld [vmem:[%s7160_s29 + $0x1e0] ss:$12 sps:$4 sm:$0xff]  }
 0x6b7   : > { %4243 = vmatprep.subr.bf16.mxu1 %v6778_v22  ;;  %5962 = vmatprep.subr.bf16.mxu0 %v6779_v49  ;;  %v6862_v22 = vld [vmem:[%s7160_s29 + $0x1fc] ss:$12 sps:$4 sm:$0xff]   ;;  %v6865_v49 = vld [vmem:[%s7160_s29 + $0x214] ss:$12 sps:$4 sm:$0xff]  }
 0x6ba   : > { %4244 = vmatpush1.bf16.msra.mxu1 %v6776_v11  ;;  %5963 = vmatpush3.bf16.msra.mxu0 %v6780_v24  ;;  %v6863_v11 = vld [vmem:[%s7160_s29 + $0x210] ss:$12 sps:$4 sm:$0xff]   ;;  %v6868_v24 = vld [vmem:[%s7160_s29 + $0x22c] ss:$12 sps:$4 sm:$0xff]  }
 0x6bb   : > { %6022 = vmatprep.subr.bf16.mxu1 %v7049_v21  ;;  %6042 = vmatprep.subr.bf16.mxu0 %v7049_v21 }
 0x6bd   : > { %4262 = vmatmul.mubr.bf16.vlgmr.msra.gmra.mrb[24].mxu1 %v7857_v41  ;;  %4857 = vmatmul.mubr.bf16.vlgmr.msra.gmra.mrb[24].mxu0 %v7667_v55 }
 0x6be   : > { %6023 = vmatpush3.bf16.msra.mxu1 %v6781_v50  ;;  %6043 = vmatpush3.bf16.msra.mxu0 %v6782_v52  ;;  %v6866_v50 = vld [vmem:[%s7160_s29 + $0x228] ss:$12 sps:$4 sm:$0xff]  }
 0x6bf   : > { %6024 = vmatprep.subr.bf16.mxu1 %v7049_v21  ;;  %6044 = vmatprep.subr.bf16.mxu0 %v7049_v21 }
 0x6c0   : > { %6038 = vmatprep.mubr.msk.bf16.mxu1 %vm7050_vm4, %v7049_v21  ;;  %6058 = vmatprep.mubr.msk.bf16.mxu0 %vm7050_vm4, %v7049_v21 }
 0x6c2   : > { %6025 = vmatpush3.bf16.msra.mxu1 %v6783_v45  ;;  %6045 = vmatpush3.bf16.msra.mxu0 %v6784_v62 }
 0x6c3   : > { %6026 = vmatprep.subr.bf16.mxu1 %v7049_v21  ;;  %6046 = vmatprep.subr.bf16.mxu0 %v7049_v21 }
 0x6c6   : > { %6027 = vmatpush3.bf16.msra.mxu1 %v6785_v9  ;;  %6047 = vmatpush3.bf16.msra.mxu0 %v6786_v42 }
 0x6c7   : > { %6028 = vmatprep.subr.bf16.mxu1 %v7049_v21  ;;  %6048 = vmatprep.subr.bf16.mxu0 %v7049_v21 }
 0x6ca   : > { %6029 = vmatpush3.bf16.msra.mxu1 %v6787_v25  ;;  %6049 = vmatpush3.bf16.msra.mxu0 %v6788_v61 }
 0x6cb   : > { %6030 = vmatprep.subr.bf16.mxu1 %v7049_v21  ;;  %6050 = vmatprep.subr.bf16.mxu0 %v7049_v21 }
 0x6ce   : > { %6031 = vmatpush3.bf16.msra.mxu1 %v6789_v18  ;;  %6051 = vmatpush3.bf16.msra.mxu0 %v6790_v40 }
 0x6cf   : > { %6032 = vmatprep.subr.bf16.mxu1 %v7049_v21  ;;  %6052 = vmatprep.subr.bf16.mxu0 %v7049_v21 }
 0x6d2   : > { %6033 = vmatpush3.bf16.msra.mxu1 %v6791_v2  ;;  %6053 = vmatpush3.bf16.msra.mxu0 %v6792_v5 }
 0x6d3   : > { %6034 = vmatprep.subr.bf16.mxu1 %v7049_v21  ;;  %6054 = vmatprep.subr.bf16.mxu0 %v7049_v21 }
 0x6d6   : > { %6035 = vmatpush3.bf16.msra.mxu1 %v6793_v7  ;;  %6055 = vmatpush3.bf16.msra.mxu0 %v6794_v48 }
 0x6d7   : > { %6036 = vmatprep.subr.bf16.mxu1 %v7049_v21  ;;  %6056 = vmatprep.subr.bf16.mxu0 %v7049_v21  ;;  %v6805_v21 = vld [vmem:[%s7160_s29 + $0x34] ss:$12 sps:$4 sm:$0xff]  }
 0x6da   : > { %6037 = vmatpush3.bf16.msra.mxu1 %v6795_v8  ;;  %6057 = vmatpush3.bf16.msra.mxu0 %v6796_v39 }
 0x6db   : > { %4738 = vmatprep.subr.bf16.mxu1 %v6799_v15 }
 0x6dd   : > { %6039 = vmatmul.mubr.bf16.vlgmr.msra.gmra.mrb[28].mxu1 %v7857_v41  ;;  %6059 = vmatmul.mubr.bf16.vlgmr.msra.gmra.mrb[28].mxu0 %v7766_v33  ;;  %v6827_v41 = vld [vmem:[%s7160_s29 + $0xf0] ss:$12 sps:$4 sm:$0xff]  }
 0x6de   : > { %4739 = vmatpush1.bf16.msra.mxu1 %v6797_v17  ;;  %4770 = vmatprep.mubr.bf16.mxu1 %v7669_v38  ;;  %v6814_v38 = vld [vmem:[%s7160_s29 + $0x7c] ss:$12 sps:$4 sm:$0xff]  }
 0x6df   : > { %4740 = vmatprep.subr.bf16.mxu1 %v6802_v51 }
 0x6e2   : > { %4741 = vmatpush1.bf16.msra.mxu1 %v6800_v12 }
 0x6e3   : > { %4742 = vmatprep.subr.bf16.mxu1 %v6805_v21 }
 0x6e6   : > { %4743 = vmatpush1.bf16.msra.mxu1 %v6803_v19 }
 0x6e7   : > { %4744 = vmatprep.subr.bf16.mxu1 %v6808_v20 }
 0x6ea   : > { %4745 = vmatpush1.bf16.msra.mxu1 %v6806_v36 }
 0x6eb   : > { %4746 = vmatprep.subr.bf16.mxu1 %v6811_v58 }
 0x6ee   : > { %4747 = vmatpush1.bf16.msra.mxu1 %v6809_v57  ;;  %v6940_v57 = vld [vmem:[#allocation2 + $0x10] sm:$0xff] }
 0x6ef   : > { %4748 = vmatprep.subr.bf16.mxu1 %v6814_v38 }
 0x6f2   : > { %4749 = vmatpush1.bf16.msra.mxu1 %v6812_v31 }
 0x6f3   : > { %4750 = vmatprep.subr.bf16.mxu1 %v6817_v4  ;;  %v6941_v4 = vld [vmem:[#allocation2 + $0x28] sm:$0xff] }
 0x6f6   : > { %4751 = vmatpush1.bf16.msra.mxu1 %v6815_v56 }
 0x6f7   : > { %4752 = vmatprep.subr.bf16.mxu1 %v6820_v32 }
 0x6fa   : > { %4753 = vmatpush1.bf16.msra.mxu1 %v6818_v34  ;;  %v6942_v34 = vld [vmem:[#allocation2] sm:$0xff] }
 0x6fb   : > { %4754 = vmatprep.subr.bf16.mxu1 %v6823_v14 }
 0x6fe   : > { %4755 = vmatpush1.bf16.msra.mxu1 %v6821_v35 }
 0x6ff   : > { %4756 = vmatprep.subr.bf16.mxu1 %v6826_v60  ;;  %v6943_v60 = vld [vmem:[#allocation2 + $0x8] sm:$0xff] }
 0x702   : > { %4757 = vmatpush1.bf16.msra.mxu1 %v6824_v13 }
 0x703   : > { %4758 = vmatprep.subr.bf16.mxu1 %v6829_v37 }
 0x706   : > { %4759 = vmatpush1.bf16.msra.mxu1 %v6827_v41  ;;  %v6944_v41 = vld [vmem:[#allocation2 + $0x18] sm:$0xff] }
 0x707   : > { %4760 = vmatprep.subr.bf16.mxu1 %v6832_v28 }
 0x70a   : > { %4761 = vmatpush1.bf16.msra.mxu1 %v6830_v43 }
 0x70b   : > { %4762 = vmatprep.subr.bf16.mxu1 %v6835_v63  ;;  %v6945_v63 = vld [vmem:[#allocation2 + $0x20] sm:$0xff] }
 0x70e   : > { %4763 = vmatpush1.bf16.msra.mxu1 %v6833_v3 }
 0x70f   : > { %4764 = vmatprep.subr.bf16.mxu1 %v6838_v6 }
 0x712   : > { %4765 = vmatpush1.bf16.msra.mxu1 %v6836_v16 }
 0x713   : > { %4766 = vmatprep.subr.bf16.mxu1 %v6841_v44 }
 0x716   : > { %4767 = vmatpush1.bf16.msra.mxu1 %v6839_v23 }
 0x717   : > { %4768 = vmatprep.subr.bf16.mxu1 %v6844_v54  ;;  %v6946_v54 = vld [vmem:[%s8136_s8 + $0x40] sm:$0xff] (!%p5884_p3)  }
 0x718   : > { %5979 = vmatprep.subr.bf16.mxu0 (!%p5884_p3), %v6946_v54 }
 0x71a   : > { %4769 = vmatpush1.bf16.msra.mxu1 %v6842_v1  ;;  %v6947_v1 = vld [vmem:[%s8136_s8 + $0x80] sm:$0xff] (!%p5884_p3)  }
 0x71b   : > { %4781 = vmatprep.subr.bf16.mxu1 %v6847_v53  ;;  %v6948_v53 = vld [vmem:[%s8136_s8] sm:$0xff] (!%p5884_p3)  }
 0x71c   : > { %5980 = vmatpush3.bf16.msra.mxu0 (!%p5884_p3), %v6948_v53 }
 0x71d   : > { %4771 = vmatmul.mubr.bf16.vlgmr.msra.gmra.mrb[24].mxu1 %v7667_v55  ;;  %v6859_v55 = vld [vmem:[%s7160_s29 + $0x1e4] ss:$12 sps:$4 sm:$0xff]  }
 0x71e   : > { %4782 = vmatpush1.bf16.msra.mxu1 %v6845_v27  ;;  %4813 = vmatprep.mubr.bf16.mxu1 %v7048_v0  ;;  %v6860_v0 = vld [vmem:[%s7160_s29 + $0x1f8] ss:$12 sps:$4 sm:$0xff]   ;;  %v7051_v27 = vmov (!%p5884_p3), 0.0  }
 0x71f   : > { %4783 = vmatprep.subr.bf16.mxu1 %v6850_v10 }
 0x722   : > { %4784 = vmatpush1.bf16.msra.mxu1 %v6848_v59 }
 0x723   : > { %4785 = vmatprep.subr.bf16.mxu1 %v6853_v46 }
 0x726   : > { %4786 = vmatpush1.bf16.msra.mxu1 %v6851_v29 }
 0x727   : > { %4787 = vmatprep.subr.bf16.mxu1 %v6856_v47 }
 0x72a   : > { %4788 = vmatpush1.bf16.msra.mxu1 %v6854_v26 }
 0x72b   : > { %4789 = vmatprep.subr.bf16.mxu1 %v6859_v55 }
 0x72e   : > { %4790 = vmatpush1.bf16.msra.mxu1 %v6857_v30 }
 0x72f   : > { %4791 = vmatprep.subr.bf16.mxu1 %v6862_v22 }
 0x732   : > { %4792 = vmatpush1.bf16.msra.mxu1 %v6860_v0 }
 0x733   : > { %4793 = vmatprep.subr.bf16.mxu1 %v6865_v49 }
 0x736   : > { %4794 = vmatpush1.bf16.msra.mxu1 %v6863_v11 }
 0x737   : > { %4795 = vmatprep.subr.bf16.mxu1 %v6868_v24 }
 0x73a   : > { %4796 = vmatpush1.bf16.msra.mxu1 %v6866_v50 }
 0x73b   : > { %6062 = vmatprep.subr.bf16.mxu1 (!%p5884_p3), %v7051_v27 }
 0x73d   : > { %4814 = vmatmul.mubr.bf16.vlgmr.msra.gmra.mrb[24].mxu1 %v7766_v33 }
 0x73e   : > { %6063 = vmatpush3.bf16.msra.mxu1 (!%p5884_p3), %v6947_v1  ;;  %6078 = vmatprep.mubr.msk.bf16.mxu1 (!%p5884_p3), %vm7052_vm0, %v7051_v27 }
 0x73f   : > { %6064 = vmatprep.subr.bf16.mxu1 (!%p5884_p3), %v7051_v27 }
 0x770   : > { %v5933_v52 = vpop.f32.mrb[20].mxu0 }
 0x771   : > { %v5934_v45 = vpop.f32.mrb[21].mxu0 }
 0x772   : > { %v5935_v62 = vadd.f32 %v5934_v45, %v5933_v52  ;;  %v5936_v9 = vpop.f32.mrb[22].mxu0 }
 0x773   : > { %v5937_v42 = vpop.f32.mrb[23].mxu0 }
 0x774   : > { %v5938_v25 = vadd.f32 %v5937_v42, %v5936_v9 }
 0x790   : > { %v5964_v61 = vpop.f32.mrb[24].mxu0 }
 0x791   : > { %v5965_v18 = vpop.f32.mrb[25].mxu0 }
 0x792   : > { %v5966_v40 = vadd.f32 %v5965_v18, %v5964_v61  ;;  %v5967_v2 = vpop.f32.mrb[26].mxu0  ;;  %v6949_v61 = vld [vmem:[%s8136_s8 + $0x48] sm:$0xff] (!%p5884_p3)  }
 0x793   : > { %v5968_v5 = vpop.f32.mrb[27].mxu0  ;;  %v6950_v18 = vld [vmem:[%s8136_s8 + $0x88] sm:$0xff] (!%p5884_p3)   ;;  %5981 = vmatprep.subr.bf16.mxu0 (!%p5884_p3), %v6949_v61 }
 0x794   : > { %v5969_v7 = vadd.f32 %v5968_v5, %v5967_v2  ;;  %6065 = vmatpush3.bf16.msra.mxu1 (!%p5884_p3), %v6950_v18  ;;  %v6952_v2 = vld [vmem:[%s8136_s8 + $0x50] sm:$0xff] (!%p5884_p3)  }
 0x795   : > { %6066 = vmatprep.subr.bf16.mxu1 (!%p5884_p3), %v7051_v27  ;;  %v6953_v5 = vld [vmem:[%s8136_s8 + $0x90] sm:$0xff] (!%p5884_p3)  }
 0x798   : > { %6067 = vmatpush3.bf16.msra.mxu1 (!%p5884_p3), %v6953_v5 }
 0x799   : > { %6068 = vmatprep.subr.bf16.mxu1 (!%p5884_p3), %v7051_v27 }
 0x7b0   : > { %v4347_v48 = vpop.f32.mrb[28].mxu1  ;;  %v4899_v8 = vpop.f32.mrb[28].mxu0 }
 0x7b1   : > { %v4348_v39 = vadd.f32 %v5935_v62, %v4347_v48  ;;  %v6040_v15 = vpop.f32.mrb[29].mxu1  ;;  %v6060_v17 = vpop.f32.mrb[29].mxu0  ;;  %v6955_v48 = vld [vmem:[%s8136_s8 + $0x58] sm:$0xff] (!%p5884_p3)  }
 0x7b2   : > { %v4350_v51 = vpop.f32.mrb[30].mxu1  ;;  %v4902_v12 = vpop.f32.mrb[30].mxu0  ;;  %v6958_v15 = vld [vmem:[%s8136_s8 + $0x60] sm:$0xff] (!%p5884_p3)  }
 0x7b3   : > { %v4859_v33 = vadd.f32 %v5966_v40, %v4348_v39  ;;  %v4351_v21 = vadd.f32 %v5938_v25, %v4350_v51  ;;  %v6041_v19 = vpop.f32.mrb[31].mxu1  ;;  %v6061_v20 = vpop.f32.mrb[31].mxu0  ;;  %v6951_v40 = vld [vmem:[%s8136_s8 + $0x8] sm:$0xff] (!%p5884_p3)   ;;  %v6957_v39 = vld [vmem:[%s8136_s8 + $0x18] sm:$0xff] (!%p5884_p3)   ;;  %v6959_v17 = vld [vmem:[%s8136_s8 + $0xa0] sm:$0xff] (!%p5884_p3)  }
 0x7b4   : > { %5982 = vmatpush3.bf16.msra.mxu0 (!%p5884_p3), %v6951_v40  ;;  %v6960_v51 = vld [vmem:[%s8136_s8 + $0x20] sm:$0xff] (!%p5884_p3)   ;;  %v6964_v19 = vld [vmem:[%s8136_s8 + $0x70] sm:$0xff] (!%p5884_p3)  }
 0x7b5   : > { %v4900_v36 = vadd.f32 %v4899_v8, %v4859_v33  ;;  %v4862_v58 = vadd.f32 %v5969_v7, %v4351_v21  ;;  %v6954_v7 = vld [vmem:[%s8136_s8 + $0x10] sm:$0xff] (!%p5884_p3)   ;;  %5983 = vmatprep.subr.bf16.mxu0 (!%p5884_p3), %v6952_v2  ;;  %v6956_v8 = vld [vmem:[%s8136_s8 + $0x98] sm:$0xff] (!%p5884_p3)   ;;  %v6962_v33 = vld [vmem:[%s8136_s8 + $0xa8] sm:$0xff] (!%p5884_p3)  }
 0x7b6   : > { %6069 = vmatpush3.bf16.msra.mxu1 (!%p5884_p3), %v6956_v8  ;;  %v6963_v21 = vld [vmem:[%s8136_s8 + $0x28] sm:$0xff] (!%p5884_p3)   ;;  %v6965_v20 = vld [vmem:[%s8136_s8 + $0xb0] sm:$0xff] (!%p5884_p3)  }
 0x7b7   : > { %v4908_v38 = vadd.f32 %v6940_v57, %v4900_v36  ;;  %v4903_v31 = vadd.f32 %v4902_v12, %v4862_v58  ;;  %6070 = vmatprep.subr.bf16.mxu1 (!%p5884_p3), %v7051_v27  ;;  %v6961_v12 = vld [vmem:[%s8136_s8 + $0x68] sm:$0xff] (!%p5884_p3)   ;;  %v6966_v36 = vld [vmem:[%s8136_s8 + $0x30] sm:$0xff] (!%p5884_p3)   ;;  %v6967_v58 = vld [vmem:[%s8136_s8 + $0x78] sm:$0xff] (!%p5884_p3)  }
 0x7b8   : > { %5984 = vmatpush3.bf16.msra.mxu0 (!%p5884_p3), %v6954_v7  ;;  %v6968_v57 = vld [vmem:[%s8136_s8 + $0xb8] sm:$0xff] (!%p5884_p3)  }
 0x7b9   : > { %4914 = vst [vmem:[#allocation2 + $0x10] sm:$0xff] %v4908_v38  ;;  %v4911_v56 = vadd.f32 %v6941_v4, %v4903_v31  ;;  %5985 = vmatprep.subr.bf16.mxu0 (!%p5884_p3), %v6955_v48 }
 0x7ba   : > { %6071 = vmatpush3.bf16.msra.mxu1 (!%p5884_p3), %v6959_v17 }
 0x7bb   : > { %4917 = vst [vmem:[#allocation2 + $0x28] sm:$0xff] %v4911_v56  ;;  %6072 = vmatprep.subr.bf16.mxu1 (!%p5884_p3), %v7051_v27 }
 0x7bc   : > { %5986 = vmatpush3.bf16.msra.mxu0 (!%p5884_p3), %v6957_v39 }
 0x7bd   : > { %5987 = vmatprep.subr.bf16.mxu0 (!%p5884_p3), %v6958_v15 }
 0x7be   : > { %6073 = vmatpush3.bf16.msra.mxu1 (!%p5884_p3), %v6962_v33 }
 0x7bf   : > { %6074 = vmatprep.subr.bf16.mxu1 (!%p5884_p3), %v7051_v27 }
 0x7c0   : > { %5988 = vmatpush3.bf16.msra.mxu0 (!%p5884_p3), %v6960_v51 }
 0x7c1   : > { %5989 = vmatprep.subr.bf16.mxu0 (!%p5884_p3), %v6961_v12 }
 0x7c2   : > { %6075 = vmatpush3.bf16.msra.mxu1 (!%p5884_p3), %v6965_v20 }
 0x7c3   : > { %6076 = vmatprep.subr.bf16.mxu1 (!%p5884_p3), %v7051_v27 }
 0x7c4   : > { %5990 = vmatpush3.bf16.msra.mxu0 (!%p5884_p3), %v6963_v21 }
 0x7c5   : > { %5991 = vmatprep.subr.bf16.mxu0 (!%p5884_p3), %v6964_v19 }
 0x7c6   : > { %6077 = vmatpush3.bf16.msra.mxu1 (!%p5884_p3), %v6968_v57 }
 0x7c8   : > { %5992 = vmatpush3.bf16.msra.mxu0 (!%p5884_p3), %v6966_v36 }
 0x7c9   : > { %5993 = vmatprep.subr.bf16.mxu0 (!%p5884_p3), %v6967_v58 }
 0x810   : > { %v4815_v32 = vpop.f32.mrb[24].mxu1  ;;  %4921 = sbr.rel (%p5884_p3) target bundleno = 2614 (0xa36), region = 68 }
 0x811   : > { %v4906_v14 = vadd.f32 %v6942_v34, %v4815_v32  ;;  %v4817_v35 = vpop.f32.mrb[25].mxu1  ;;  %v4966_v34 = vlaneseq (!%p5884_p3) }
 0x812   : > { %v4907_v13 = vadd.f32 %v6943_v60, %v4817_v35  ;;  %v4819_v37 = vpop.f32.mrb[26].mxu1 }
 0x813   : > { %4912 = vst [vmem:[#allocation2] sm:$0xff] %v4906_v14  ;;  %v4909_v28 = vadd.f32 %v6944_v41, %v4819_v37  ;;  %v4821_v43 = vpop.f32.mrb[27].mxu1  ;;  %v4967_v60 = vshrl.u32 (!%p5884_p3), %v4966_v34, 7  ;;  %v4964_v41 = vld [vmem:[%s8134_s6] sm:$0x7] (!%p5884_p3) }
 0x814   : > { %4913 = vst [vmem:[#allocation2 + $0x8] sm:$0xff] %v4907_v13  ;;  %v4910_v3 = vadd.f32 %v6945_v63, %v4821_v43  ;;  %v4922_v6 = vadd.f32 (!%p5884_p3), %v4907_v13, %v4906_v14 }
 0x815   : > { %4915 = vst [vmem:[#allocation2 + $0x18] sm:$0xff] %v4909_v28  ;;  %v4976_v37 = vsub.s32 (!%p5884_p3), 2, %v4967_v60 }
 0x816   : > { %4916 = vst [vmem:[#allocation2 + $0x20] sm:$0xff] %v4910_v3  ;;  %v4926_v16 = vadd.f32 (!%p5884_p3), %v4910_v3, %v4909_v28  ;;  %v4923_v44 = vadd.f32 (!%p5884_p3), %v4922_v6, %v4908_v38  ;;  %v4987_v6 = vld [vmem:[%s8135_s7] sm:$0x7] (!%p5884_p3) }
 0x817   : > { %v5000_v27 = vrot.slane %v4987_v6, %v4976_v37 }
 0x818   : > { %4924 = vadd.xlane.f32.xlu0 %v4923_v44  ;;  %v4927_v23 = vadd.f32 %v4926_v16, %v4911_v56  ;;  %v4977_v44 = vrot.slane %v4964_v41, %v4976_v37 }
 0x81c   : > { %4928 = vadd.xlane.f32.xlu0 %v4927_v23 }
 0x8a5   : > { %v4925_v10 = vpop.xlane.xlu0 %4924 }
 0x8a6   : > { %v4930_v59 = vmul.f32 0.0026041667, %v4925_v10 }
 0x8a8   : > { %v7985_v46 = vsub.f32 %v4906_v14, %v4930_v59  ;;  %v7987_v29 = vsub.f32 %v4907_v13, %v4930_v59  ;;  %v7989_v47 = vsub.f32 %v4908_v38, %v4930_v59  ;;  %v6969_v38 = vld [vmem:[%s8136_s8 + $0x38] sm:$0xff]   ;;  %v4972_v13 = vsub.s32 1, %v4967_v60 }
 0x8a9   : > { %v4929_v26 = vpop.xlane.xlu0 %4928  ;;  %5994 = vmatpush3.bf16.msra.mxu0 %v6969_v38 }
 0x8aa   : > { %v4931_v55 = vmul.f32 0.0026041667, %v4929_v26  ;;  %v4938_v30 = vmul.f32 %v7985_v46, %v7985_v46  ;;  %v4939_v22 = vmul.f32 %v7987_v29, %v7987_v29  ;;  %v4940_v0 = vmul.f32 %v7989_v47, %v7989_v47 }
 0x8ab   : > { %v4996_v53 = vrot.slane %v4987_v6, %v4972_v13 }
 0x8ac   : > { %v7997_v49 = vsub.f32 %v4909_v28, %v4931_v55  ;;  %v7999_v11 = vsub.f32 %v4910_v3, %v4931_v55  ;;  %v8001_v24 = vsub.f32 %v4911_v56, %v4931_v55  ;;  %v4944_v50 = vadd.f32 %v4939_v22, %v4938_v30 }
 0x8ad   : > { %v4968_v28 = vsub.s32 0, %v4967_v60  ;;  %v4973_v3 = vrot.slane %v4964_v41, %v4972_v13 }
 0x8ae   : > { %v4945_v52 = vadd.f32 %v4944_v50, %v4940_v0  ;;  %v4941_v45 = vmul.f32 %v7997_v49, %v7997_v49  ;;  %v4942_v62 = vmul.f32 %v7999_v11, %v7999_v11  ;;  %v4943_v9 = vmul.f32 %v8001_v24, %v8001_v24 }
 0x8af   : > { %v4969_v54 = vrot.slane %v4964_v41, %v4968_v28  ;;  %v4992_v22 = vrot.slane %v4987_v6, %v4968_v28 }
 0x8b0   : > { %4946 = vadd.xlane.f32.xlu1 %v4945_v52  ;;  %v4948_v42 = vadd.f32 %v4942_v62, %v4941_v45 }
 0x8b2   : > { %v4949_v25 = vadd.f32 %v4948_v42, %v4943_v9 }
 0x8b4   : > { %4950 = vadd.xlane.f32.xlu1 %v4949_v25 }
 0x93d   : > { %v4947_v31 = vpop.xlane.xlu1 %4946 }
 0x93e   : > { %v4952_v4 = vmul.f32 0.0026041667, %v4947_v31 }
 0x940   : > { %v4954_v56 = vadd.f32 1e-05, %v4952_v4 }
 0x941   : > { %v4951_v32 = vpop.xlane.xlu1 %4950 }
 0x942   : > { %6970 = vrsqrt.f32 %v4954_v56  ;;  %v4953_v14 = vmul.f32 0.0026041667, %v4951_v32 }
 0x944   : > { %v4955_v35 = vadd.f32 1e-05, %v4953_v14 }
 0x946   : > { %6972 = vrsqrt.f32 %v4955_v35 }
 0x94c   : > { %v6971_v43 = vpop.eup %6970 }
 0x94d   : > { %v4959_v63 = vmul.f32 %v6971_v43, %v7987_v29  ;;  %v4960_v16 = vmul.f32 %v6971_v43, %v7989_v47  ;;  %v4958_v23 = vmul.f32 %v6971_v43, %v7985_v46 }
 0x94f   : > { %v4982_v59 = vmul.f32 %v4973_v3, %v4959_v63  ;;  %v4983_v29 = vmul.f32 %v4977_v44, %v4960_v16  ;;  %v4981_v30 = vmul.f32 %v4969_v54, %v4958_v23 }
 0x950   : > { %v6973_v1 = vpop.eup %6972 }
 0x951   : > { %v4962_v10 = vmul.f32 %v6973_v1, %v7999_v11  ;;  %v4963_v26 = vmul.f32 %v6973_v1, %v8001_v24  ;;  %v4961_v55 = vmul.f32 %v6973_v1, %v7997_v49  ;;  %v5005_v52 = vadd.f32 %v4996_v53, %v4982_v59 }
 0x952   : > { %v5006_v46 = vadd.f32 %v5000_v27, %v4983_v29  ;;  %v5004_v9 = vadd.f32 %v4992_v22, %v4981_v30 }
 0x953   : > { %v4985_v0 = vmul.f32 %v4973_v3, %v4962_v10  ;;  %v4986_v50 = vmul.f32 %v4977_v44, %v4963_v26  ;;  %v4984_v47 = vmul.f32 %v4969_v54, %v4961_v55 }
 0x955   : > { %v5008_v45 = vadd.f32 %v4996_v53, %v4985_v0  ;;  %v5009_v62 = vadd.f32 %v5000_v27, %v4986_v50  ;;  %v5007_v42 = vadd.f32 %v4992_v22, %v4984_v47 }
 0x957   : > { %v5011_v25 = vpack.c.bf16 %v5008_v45, %v5005_v52  ;;  %v5012_v61 = vpack.c.bf16 %v5009_v62, %v5006_v46  ;;  %v5010_v11 = vpack.c.bf16 %v5007_v42, %v5004_v9 }
 0x959   : > { %5237 = vmatprep.mubr.bf16.mxu0 %v5011_v25  ;;  %6079 = vmatmul.mubr.bf16.vlgmr.msra.gmra.mrb[0].mxu1 %v5012_v61 }
 0x95a   : > { %5238 = vmatmul.mubr.bf16.vlgmr.msra.gmra.mrb[0].mxu0 %v5010_v11 }
 0xa2c   : > { %v5280_v24 = vpop.f32.mrb[0].mxu1 }
 0xa2d   : > { %v5995_v18 = vpop.f32.mrb[0].mxu0  ;;  %v6080_v49 = vpop.f32.mrb[1].mxu1 }
 0xa2e   : > { %v5996_v40 = vpop.f32.mrb[1].mxu0  ;;  %v5283_v2 = vpop.f32.mrb[2].mxu1 }
 0xa2f   : > { %v5997_v5 = vadd.f32 %v5996_v40, %v5995_v18  ;;  %v5998_v7 = vpop.f32.mrb[2].mxu0  ;;  %v6081_v48 = vpop.f32.mrb[3].mxu1 }
 0xa30   : > { %v5999_v8 = vpop.f32.mrb[3].mxu0 }
 0xa31   : > { %v5281_v39 = vadd.f32 %v5997_v5, %v5280_v24  ;;  %v6000_v15 = vadd.f32 %v5999_v8, %v5998_v7 }
 0xa33   : > { %5287 = vst [vmem:[#allocation6] sm:$0xff] %v5281_v39  ;;  %v5284_v17 = vadd.f32 %v6000_v15, %v5283_v2 }
 0xa35   : > { %5288 = vst [vmem:[#allocation6 + $0x8] sm:$0xff] %v5284_v17 }
 0xa36 PF: > { %p8093_p4 = scmp.eq.s32.totalorder %s5390_s12, 7  ;;  %s7053_s21 = smov [#allocation6]  }
 0xa37   : > { %s5298_s22 = sshll.u32 %s7053_s21, 4  ;;  %s5299_s22 = int_to_ptr.vmem [resolvable:$true] %s5298_s22 }
 0xa38   : > { %s6989_s23 = scalar_lea.vmem %s5299_s22, 256  ;;  %p6996_p8 = scmp.lt.s32.totalorder %s5299_s22, %s5299_s22 }
 0xa39   : > { %p6990_p5 = scmp.ne.s32.totalorder %s5299_s22, %s6989_s23  ;;  %p6997_p9 = scmp.lt.s32.totalorder %s6989_s23, %s6989_s23 }
 0xa3b   : > { %p6991_p6 = pnand %p6990_p5, %p8093_p4  ;;  %p6998_p10 = por %p6997_p9, %p6996_p8 }
 0xa3d   : > { %p6992_p7 = pneg %p6991_p6 }
 0xa3f   : > { %p6999_p11 = pnand %p6998_p10, %p6992_p7 }
 0xa41   : > { %7002 = shalt.err (!%p6999_p11)
}
 0xa42   : > { %s7003_s12 = scalar_lea.hbm %s8137_s9, 256 }
 0xa43   : > { %p7004_p12 = scmp.ne.s32.totalorder %s8137_s9, %s7003_s12  ;;  %p7009_p1 = scmp.lt.u32.totalorder %s7003_s12, %s8137_s9 }
 0xa45   : > { %p7005_p13 = pnand %p7004_p12, %p8093_p4 }
 0xa47   : > { %p7006_p0 = pneg %p7005_p13 }
 0xa49   : > { %p7011_p2 = pnand %p7009_p1, %p7006_p0 }
 0xa4b   : > { %7014 = shalt.err (!%p7011_p2)
}
 0xa4c   : > { %s7054_s14 = smov 128   ;;  %s7055_s15 = smov 8  }
 0xa4d   : > { %6129 = dma.vmem_to_hbm [thread:$0]  (%p8093_p4), %s5299_s22, 256, %s8137_s9, [#allocation4], %s7054_s14, %s7054_s14, %s7055_s15  }
 0xa4e   : > { %7032 = dma.done.wait (%p8093_p4), [#allocation4], 256  }
 0xa4f   : > { %7034 = vsyncadd (%p8093_p4), [#allocation4], 4294967040 }
 0xa50 PF: > { %s21_s11 = sadd.s32 1, %s7045_s11   ;;  %s8141_s30 = smov %s7041_s10 }
 0xa51   : > { %p18_p3 = scmp.ge.s32.totalorder %s21_s11, 10   ;;  %s8142_s10 = smov %s8144_s13 }
 0xa53   :  { %20 = sbr.rel (!%p18_p3) target bundleno = 3 (0x3), region = 103 }
 0xa5a   :  { %5314 = vsyncpa [#allocation4], 1 }
 0xa5b   :  { %5316 = vsyncpa [#allocation4 + $0x1], 1 }
 0xa5c   :  { %5317 = vsyncpa [#allocation5], 1 }
 0xa5d   :  { %5319 = vsyncpa [#allocation5 + $0x1], 1 }

</bundles_post_ra>
